<compile_context>
chip_gen: v7x
topology: tpu7x:2x2x1
jax: 0.10.0
libtpu: 0.0.40
codegen_flags: <defaults>
</compile_context>

<pallas_src>
import numpy as np

import jax
import jax.numpy as jnp
from jax.experimental import pallas as pl
from jax.experimental.pallas import tpu as pltpu


# ---------------------------------------------------------------------------
# Fused Pallas kernel: conv stack + flatten + feature MLP + add
# ---------------------------------------------------------------------------
def _encoder_kernel(img_ref, feat_ref,
                    t0_ref, cb0_ref, t1_ref, cb1_ref, t2_ref, cb2_ref,
                    fpool_ref,
                    fc0w_ref, fc0b_ref, fc1w_ref, fc1b_ref, fc2w_ref, fc2b_ref,
                    out_ref):
    f32 = jnp.float32

    def leaky(v):
        # LeakyReLU(0.2); Dropout / Dropout2d are identity in eval mode.
        return jnp.where(v >= 0, v, 0.2 * v)

    # --- image encoder: each Conv2d(4,2,1) is ONE wide MXU dot against a
    #     constant operand folding im2col + stride + padding (+ NCHW relayout
    #     for layer 0).  Intermediates are (B, 512) -> (B, 256) -> (B, 128):
    #     lane-dense, fully VMEM/vreg resident.
    x = img_ref[...]                                                    # (B, C*H*W)
    x = leaky(jnp.dot(x, t0_ref[...], preferred_element_type=f32) + cb0_ref[...])
    x = leaky(jnp.dot(x, t1_ref[...], preferred_element_type=f32) + cb1_ref[...])
    x = leaky(jnp.dot(x, t2_ref[...], preferred_element_type=f32) + cb2_ref[...])

    # --- image_flatten Linear(HW -> 1): one small dot against flat_w ⊗ I.
    #     (flat_b is folded into the fc2 bias.)
    img_emb = jnp.dot(x, fpool_ref[...], preferred_element_type=f32)    # (B, nh)

    # --- feature encoder on the VPU: M=B, K<=16 dots would each cost a full
    #     MXU push + serial result-FIFO pop for <0.1% utilization, so do the
    #     K-step broadcast-multiply-accumulate on the otherwise idle VALUs.
    def vpu_linear(a, w, b):
        acc = a[:, 0:1] * w[0:1, :]
        for k in range(1, a.shape[1]):                 # static unroll, K <= 16
            acc = acc + a[:, k:k + 1] * w[k:k + 1, :]
        return acc + b

    f = leaky(vpu_linear(feat_ref[...], fc0w_ref[...], fc0b_ref[...]))
    f = leaky(vpu_linear(f, fc1w_ref[...], fc1b_ref[...]))
    f = vpu_linear(f, fc2w_ref[...], fc2b_ref[...])    # fc2 bias includes flat_b

    out_ref[...] = (img_emb + f).astype(out_ref.dtype)


def _full_spec(x):
    zeros = (0,) * x.ndim
    return pl.BlockSpec(x.shape, lambda: zeros)


def encoder_forward(prep, image, feature):
    """Fused Encoder forward: a single pallas_call, everything VMEM-resident."""
    B = image.shape[0]
    nh = prep["fc2_w"].shape[1]
    # Pure row-major reshape of the contiguous NCHW tensor (no transpose, no
    # extra HBM pass): the channel permutation is baked into t0's row order.
    x0 = image.reshape(B, -1)

    inputs = [
        x0, feature,
        prep["t0"], prep["cb0"],
        prep["t1"], prep["cb1"],
        prep["t2"], prep["cb2"],
        prep["fpool"],
        prep["fc0_w"], prep["fc0_b"],
        prep["fc1_w"], prep["fc1_b"],
        prep["fc2_w"], prep["fc2_b"],
    ]

    mxu_flops = 2 * B * sum(int(prep[k].shape[0]) * int(prep[k].shape[1])
                            for k in ("t0", "t1", "t2", "fpool"))
    mlp_flops = 2 * B * sum(int(prep[k].shape[0]) * int(prep[k].shape[1])
                            for k in ("fc0_w", "fc1_w", "fc2_w"))
    bytes_accessed = sum(4 * int(np.prod(a.shape)) for a in inputs) + 4 * B * nh

    return pl.pallas_call(
        _encoder_kernel,
        out_shape=jax.ShapeDtypeStruct((B, nh), jnp.float32),
        in_specs=[_full_spec(a) for a in inputs],
        out_specs=pl.BlockSpec((B, nh), lambda: (0, 0)),
        compiler_params=pltpu.CompilerParams(vmem_limit_bytes=32 * 1024 * 1024),
        cost_estimate=pl.CostEstimate(flops=int(mxu_flops + mlp_flops),
                                      transcendentals=0,
                                      bytes_accessed=int(bytes_accessed)),
    )(*inputs)


# ---------------------------------------------------------------------------
# One-time parameter preprocessing (outside the jitted forward)
# ---------------------------------------------------------------------------
def prepare_params(params, *, img_channels, img_size, num_hidden):
    """Build the constant matmul operands the fused kernel consumes.

    T_l[(h,w,ci), (oh,ow,co)] = W_l[co, ci, kh, kw] with h = 2*oh + kh - 1,
    w = 2*ow + kw - 1 (zero outside the image) folds im2col, the stride-2 tap
    selection and the zero padding of Conv2d(4,2,1) into one matrix.  For
    layer 0 the rows are permuted to NCHW order so the wrapper needs no
    transpose.  All operands are batch-independent (O(B) activation scaling).
    """
    prep = {}
    chans = [img_channels, num_hidden // 4, num_hidden // 2, num_hidden]
    S = img_size
    for l in range(3):
        cin, cout = chans[l], chans[l + 1]
        So = S // 2
        w = np.asarray(params[f"conv{l}_w"], dtype=np.float32)   # (cout,cin,4,4)
        b = np.asarray(params[f"conv{l}_b"], dtype=np.float32)   # (cout,)

        T = np.zeros((S * S * cin, So * So * cout), np.float32)
        for oh in range(So):
            for kh in range(4):
                h = 2 * oh + kh - 1
                if not (0 <= h < S):
                    continue
                for ow in range(So):
                    for kw in range(4):
                        ww = 2 * ow + kw - 1
                        if not (0 <= ww < S):
                            continue
                        r0 = (h * S + ww) * cin
                        c0 = (oh * So + ow) * cout
                        T[r0:r0 + cin, c0:c0 + cout] = w[:, :, kh, kw].T

        if l == 0:
            # Re-order rows from (h, w, c) to the raw NCHW flatten (c, h, w):
            # the kernel input is then just image.reshape(B, C*H*W).
            c_idx = np.repeat(np.arange(cin), S * S)
            hw_idx = np.tile(np.arange(S * S), cin)
            T = T[hw_idx * cin + c_idx, :]

        prep[f"t{l}"] = jnp.asarray(T)
        prep[f"cb{l}"] = jnp.asarray(np.tile(b, So * So).reshape(1, So * So * cout))
        S = So

    # image_flatten Linear(HW -> 1): fpool[(oh,ow,co), co2] = flat_w[oh*So+ow]*(co==co2)
    hw = S * S
    flat_w = np.asarray(params["flat_w"], dtype=np.float32).reshape(hw, 1)
    prep["fpool"] = jnp.asarray(np.kron(flat_w, np.eye(num_hidden, dtype=np.float32)))

    # feature MLP; fold flat_b into the last bias (out = img_emb + flat_b + feat_emb)
    prep["fc0_w"] = params["fc0_w"]
    prep["fc0_b"] = params["fc0_b"].reshape(1, -1)
    prep["fc1_w"] = params["fc1_w"]
    prep["fc1_b"] = params["fc1_b"].reshape(1, -1)
    prep["fc2_w"] = params["fc2_w"]
    prep["fc2_b"] = (params["fc2_b"] + params["flat_b"]).reshape(1, -1)
    return prep


# ---------------------------------------------------------------------------
# Pure-XLA reference of the same eval-mode forward (for a correctness check)
# ---------------------------------------------------------------------------
def reference_forward(params, image, feature):
    hp = jax.lax.Precision.HIGHEST
    x = image
    for l in range(3):
        x = jax.lax.conv_general_dilated(
            x, params[f"conv{l}_w"], window_strides=(2, 2),
            padding=((1, 1), (1, 1)),
            dimension_numbers=("NCHW", "OIHW", "NCHW"), precision=hp)
        x = x + params[f"conv{l}_b"][None, :, None, None]
        x = jnp.where(x >= 0, x, 0.2 * x)
    B, C, Ho, Wo = x.shape
    img_emb = jnp.matmul(x.reshape(B, C, Ho * Wo), params["flat_w"],
                         precision=hp) + params["flat_b"]
    f = jnp.matmul(feature, params["fc0_w"], precision=hp) + params["fc0_b"]
    f = jnp.where(f >= 0, f, 0.2 * f)
    f = jnp.matmul(f, params["fc1_w"], precision=hp) + params["fc1_b"]
    f = jnp.where(f >= 0, f, 0.2 * f)
    f = jnp.matmul(f, params["fc2_w"], precision=hp) + params["fc2_b"]
    return img_emb[..., 0] + f


# ---------------------------------------------------------------------------
# Deterministic parameter init + run
# ---------------------------------------------------------------------------
def init_params(key, img_channels, img_size, num_hidden, feature_dim):
    nh = num_hidden
    hw = (img_size // 2 ** 3) ** 2
    shapes = {
        "conv0_w": (nh // 4, img_channels, 4, 4), "conv0_b": (nh // 4,),
        "conv1_w": (nh // 2, nh // 4, 4, 4),      "conv1_b": (nh // 2,),
        "conv2_w": (nh, nh // 2, 4, 4),           "conv2_b": (nh,),
        "flat_w": (hw, 1),                        "flat_b": (1,),
        "fc0_w": (feature_dim, nh // 4),          "fc0_b": (nh // 4,),
        "fc1_w": (nh // 4, nh // 2),              "fc1_b": (nh // 2,),
        "fc2_w": (nh // 2, nh),                   "fc2_b": (nh,),
    }
    params = {}
    keys = jax.random.split(key, len(shapes))
    for k, (name, shp) in zip(keys, sorted(shapes.items())):
        params[name] = 0.1 * jax.random.normal(k, shp, jnp.float32)
    return params


if __name__ == "__main__":
    B, img_channels, img_size = 2, 3, 16
    num_hidden, feature_dim = 32, 8

    root = jax.random.PRNGKey(0)
    k_params, k_img, k_feat = jax.random.split(root, 3)
    params = init_params(k_params, img_channels, img_size, num_hidden, feature_dim)

    image = jax.random.normal(k_img, (B, img_channels, img_size, img_size), jnp.float32)
    feature = jax.random.normal(k_feat, (B, feature_dim), jnp.float32)

    prep = prepare_params(params, img_channels=img_channels,
                          img_size=img_size, num_hidden=num_hidden)

    out = jax.jit(encoder_forward)(prep, image, feature)
    out = jax.block_until_ready(out)
    assert out.shape == (B, num_hidden), out.shape
    assert jnp.isfinite(out).all()

    # numerical check of the fused kernel against the pure-XLA reference
    ref = reference_forward(params, image, feature)
    err = float(jnp.max(jnp.abs(out - ref)))
    assert jnp.allclose(out, ref, atol=1e-2, rtol=1e-2), f"max |err| = {err}"

    print("KERNEL_OK")
</pallas_src>

<mosaic_0001>
module attributes {stable_mosaic.version = 11 : i64} {
  func.func @_encoder_kernel(%arg0: memref<2x768xf32, #tpu.memory_space<vmem>>, %arg1: memref<2x8xf32, #tpu.memory_space<vmem>>, %arg2: memref<768x512xf32, #tpu.memory_space<vmem>>, %arg3: memref<1x512xf32, #tpu.memory_space<vmem>>, %arg4: memref<512x256xf32, #tpu.memory_space<vmem>>, %arg5: memref<1x256xf32, #tpu.memory_space<vmem>>, %arg6: memref<256x128xf32, #tpu.memory_space<vmem>>, %arg7: memref<1x128xf32, #tpu.memory_space<vmem>>, %arg8: memref<128x32xf32, #tpu.memory_space<vmem>>, %arg9: memref<8x8xf32, #tpu.memory_space<vmem>>, %arg10: memref<1x8xf32, #tpu.memory_space<vmem>>, %arg11: memref<8x16xf32, #tpu.memory_space<vmem>>, %arg12: memref<1x16xf32, #tpu.memory_space<vmem>>, %arg13: memref<16x32xf32, #tpu.memory_space<vmem>>, %arg14: memref<1x32xf32, #tpu.memory_space<vmem>>, %arg15: memref<2x32xf32, #tpu.memory_space<vmem>>) attributes {dimension_semantics = [], scalar_prefetch = 0 : i64, scratch_operands = 0 : i64, tpu.core_type = #tpu.core_type<tc>} {
    %c0 = arith.constant 0 : index
    %c0_0 = arith.constant 0 : index
    %0 = vector.load %arg0[%c0, %c0_0] : memref<2x768xf32, #tpu.memory_space<vmem>>, vector<2x768xf32>
    %c0_1 = arith.constant 0 : index
    %c0_2 = arith.constant 0 : index
    %1 = vector.load %arg2[%c0_1, %c0_2] : memref<768x512xf32, #tpu.memory_space<vmem>>, vector<768x512xf32>
    %cst = arith.constant dense<0.000000e+00> : vector<2x512xf32>
    %2 = tpu.matmul %0, %1, %cst {dimension_numbers = #tpu.dot_dimension_numbers<[1], [0], [0], [1], [0, 0, 1, 1], [], []>} : vector<2x768xf32>, vector<768x512xf32>, vector<2x512xf32> -> vector<2x512xf32>
    %c0_3 = arith.constant 0 : index
    %c0_4 = arith.constant 0 : index
    %3 = vector.load %arg3[%c0_3, %c0_4] : memref<1x512xf32, #tpu.memory_space<vmem>>, vector<1x512xf32>
    %4 = vector.broadcast %3 : vector<1x512xf32> to vector<2x512xf32>
    %5 = arith.addf %2, %4 : vector<2x512xf32>
    %cst_5 = arith.constant 0.000000e+00 : f32
    %6 = vector.broadcast %cst_5 : f32 to vector<2x512xf32>
    %7 = arith.cmpf oge, %5, %6 : vector<2x512xf32>
    %cst_6 = arith.constant 2.000000e-01 : f32
    %8 = vector.broadcast %cst_6 : f32 to vector<2x512xf32>
    %9 = arith.mulf %8, %5 : vector<2x512xf32>
    %10 = arith.select %7, %5, %9 : vector<2x512xi1>, vector<2x512xf32>
    %c0_7 = arith.constant 0 : index
    %c0_8 = arith.constant 0 : index
    %11 = vector.load %arg4[%c0_7, %c0_8] : memref<512x256xf32, #tpu.memory_space<vmem>>, vector<512x256xf32>
    %cst_9 = arith.constant dense<0.000000e+00> : vector<2x256xf32>
    %12 = tpu.matmul %10, %11, %cst_9 {dimension_numbers = #tpu.dot_dimension_numbers<[1], [0], [0], [1], [0, 0, 1, 1], [], []>} : vector<2x512xf32>, vector<512x256xf32>, vector<2x256xf32> -> vector<2x256xf32>
    %c0_10 = arith.constant 0 : index
    %c0_11 = arith.constant 0 : index
    %13 = vector.load %arg5[%c0_10, %c0_11] : memref<1x256xf32, #tpu.memory_space<vmem>>, vector<1x256xf32>
    %14 = vector.broadcast %13 : vector<1x256xf32> to vector<2x256xf32>
    %15 = arith.addf %12, %14 : vector<2x256xf32>
    %cst_12 = arith.constant 0.000000e+00 : f32
    %16 = vector.broadcast %cst_12 : f32 to vector<2x256xf32>
    %17 = arith.cmpf oge, %15, %16 : vector<2x256xf32>
    %cst_13 = arith.constant 2.000000e-01 : f32
    %18 = vector.broadcast %cst_13 : f32 to vector<2x256xf32>
    %19 = arith.mulf %18, %15 : vector<2x256xf32>
    %20 = arith.select %17, %15, %19 : vector<2x256xi1>, vector<2x256xf32>
    %c0_14 = arith.constant 0 : index
    %c0_15 = arith.constant 0 : index
    %21 = vector.load %arg6[%c0_14, %c0_15] : memref<256x128xf32, #tpu.memory_space<vmem>>, vector<256x128xf32>
    %cst_16 = arith.constant dense<0.000000e+00> : vector<2x128xf32>
    %22 = tpu.matmul %20, %21, %cst_16 {dimension_numbers = #tpu.dot_dimension_numbers<[1], [0], [0], [1], [0, 0, 1, 1], [], []>} : vector<2x256xf32>, vector<256x128xf32>, vector<2x128xf32> -> vector<2x128xf32>
    %c0_17 = arith.constant 0 : index
    %c0_18 = arith.constant 0 : index
    %23 = vector.load %arg7[%c0_17, %c0_18] : memref<1x128xf32, #tpu.memory_space<vmem>>, vector<1x128xf32>
    %24 = vector.broadcast %23 : vector<1x128xf32> to vector<2x128xf32>
    %25 = arith.addf %22, %24 : vector<2x128xf32>
    %cst_19 = arith.constant 0.000000e+00 : f32
    %26 = vector.broadcast %cst_19 : f32 to vector<2x128xf32>
    %27 = arith.cmpf oge, %25, %26 : vector<2x128xf32>
    %cst_20 = arith.constant 2.000000e-01 : f32
    %28 = vector.broadcast %cst_20 : f32 to vector<2x128xf32>
    %29 = arith.mulf %28, %25 : vector<2x128xf32>
    %30 = arith.select %27, %25, %29 : vector<2x128xi1>, vector<2x128xf32>
    %c0_21 = arith.constant 0 : index
    %c0_22 = arith.constant 0 : index
    %31 = vector.load %arg8[%c0_21, %c0_22] : memref<128x32xf32, #tpu.memory_space<vmem>>, vector<128x32xf32>
    %cst_23 = arith.constant dense<0.000000e+00> : vector<2x32xf32>
    %32 = tpu.matmul %30, %31, %cst_23 {dimension_numbers = #tpu.dot_dimension_numbers<[1], [0], [0], [1], [0, 0, 1, 1], [], []>} : vector<2x128xf32>, vector<128x32xf32>, vector<2x32xf32> -> vector<2x32xf32>
    %c0_24 = arith.constant 0 : index
    %c0_25 = arith.constant 0 : index
    %33 = vector.load %arg1[%c0_24, %c0_25] : memref<2x8xf32, #tpu.memory_space<vmem>>, vector<2x8xf32>
    %c0_26 = arith.constant 0 : index
    %c0_27 = arith.constant 0 : index
    %34 = vector.load %arg9[%c0_26, %c0_27] : memref<8x8xf32, #tpu.memory_space<vmem>>, vector<8x8xf32>
    %c0_28 = arith.constant 0 : index
    %c0_29 = arith.constant 0 : index
    %35 = vector.load %arg10[%c0_28, %c0_29] : memref<1x8xf32, #tpu.memory_space<vmem>>, vector<1x8xf32>
    %36 = vector.extract_strided_slice %33 {offsets = [0, 0], sizes = [2, 1], strides = [1, 1]} : vector<2x8xf32> to vector<2x1xf32>
    %37 = vector.extract_strided_slice %34 {offsets = [0, 0], sizes = [1, 8], strides = [1, 1]} : vector<8x8xf32> to vector<1x8xf32>
    %38 = vector.broadcast %36 : vector<2x1xf32> to vector<2x8xf32>
    %39 = vector.broadcast %37 : vector<1x8xf32> to vector<2x8xf32>
    %40 = arith.mulf %38, %39 : vector<2x8xf32>
    %41 = vector.extract_strided_slice %33 {offsets = [0, 1], sizes = [2, 1], strides = [1, 1]} : vector<2x8xf32> to vector<2x1xf32>
    %42 = vector.extract_strided_slice %34 {offsets = [1, 0], sizes = [1, 8], strides = [1, 1]} : vector<8x8xf32> to vector<1x8xf32>
    %43 = vector.broadcast %41 : vector<2x1xf32> to vector<2x8xf32>
    %44 = vector.broadcast %42 : vector<1x8xf32> to vector<2x8xf32>
    %45 = arith.mulf %43, %44 : vector<2x8xf32>
    %46 = arith.addf %40, %45 : vector<2x8xf32>
    %47 = vector.extract_strided_slice %33 {offsets = [0, 2], sizes = [2, 1], strides = [1, 1]} : vector<2x8xf32> to vector<2x1xf32>
    %48 = vector.extract_strided_slice %34 {offsets = [2, 0], sizes = [1, 8], strides = [1, 1]} : vector<8x8xf32> to vector<1x8xf32>
    %49 = vector.broadcast %47 : vector<2x1xf32> to vector<2x8xf32>
    %50 = vector.broadcast %48 : vector<1x8xf32> to vector<2x8xf32>
    %51 = arith.mulf %49, %50 : vector<2x8xf32>
    %52 = arith.addf %46, %51 : vector<2x8xf32>
    %53 = vector.extract_strided_slice %33 {offsets = [0, 3], sizes = [2, 1], strides = [1, 1]} : vector<2x8xf32> to vector<2x1xf32>
    %54 = vector.extract_strided_slice %34 {offsets = [3, 0], sizes = [1, 8], strides = [1, 1]} : vector<8x8xf32> to vector<1x8xf32>
    %55 = vector.broadcast %53 : vector<2x1xf32> to vector<2x8xf32>
    %56 = vector.broadcast %54 : vector<1x8xf32> to vector<2x8xf32>
    %57 = arith.mulf %55, %56 : vector<2x8xf32>
    %58 = arith.addf %52, %57 : vector<2x8xf32>
    %59 = vector.extract_strided_slice %33 {offsets = [0, 4], sizes = [2, 1], strides = [1, 1]} : vector<2x8xf32> to vector<2x1xf32>
    %60 = vector.extract_strided_slice %34 {offsets = [4, 0], sizes = [1, 8], strides = [1, 1]} : vector<8x8xf32> to vector<1x8xf32>
    %61 = vector.broadcast %59 : vector<2x1xf32> to vector<2x8xf32>
    %62 = vector.broadcast %60 : vector<1x8xf32> to vector<2x8xf32>
    %63 = arith.mulf %61, %62 : vector<2x8xf32>
    %64 = arith.addf %58, %63 : vector<2x8xf32>
    %65 = vector.extract_strided_slice %33 {offsets = [0, 5], sizes = [2, 1], strides = [1, 1]} : vector<2x8xf32> to vector<2x1xf32>
    %66 = vector.extract_strided_slice %34 {offsets = [5, 0], sizes = [1, 8], strides = [1, 1]} : vector<8x8xf32> to vector<1x8xf32>
    %67 = vector.broadcast %65 : vector<2x1xf32> to vector<2x8xf32>
    %68 = vector.broadcast %66 : vector<1x8xf32> to vector<2x8xf32>
    %69 = arith.mulf %67, %68 : vector<2x8xf32>
    %70 = arith.addf %64, %69 : vector<2x8xf32>
    %71 = vector.extract_strided_slice %33 {offsets = [0, 6], sizes = [2, 1], strides = [1, 1]} : vector<2x8xf32> to vector<2x1xf32>
    %72 = vector.extract_strided_slice %34 {offsets = [6, 0], sizes = [1, 8], strides = [1, 1]} : vector<8x8xf32> to vector<1x8xf32>
    %73 = vector.broadcast %71 : vector<2x1xf32> to vector<2x8xf32>
    %74 = vector.broadcast %72 : vector<1x8xf32> to vector<2x8xf32>
    %75 = arith.mulf %73, %74 : vector<2x8xf32>
    %76 = arith.addf %70, %75 : vector<2x8xf32>
    %77 = vector.extract_strided_slice %33 {offsets = [0, 7], sizes = [2, 1], strides = [1, 1]} : vector<2x8xf32> to vector<2x1xf32>
    %78 = vector.extract_strided_slice %34 {offsets = [7, 0], sizes = [1, 8], strides = [1, 1]} : vector<8x8xf32> to vector<1x8xf32>
    %79 = vector.broadcast %77 : vector<2x1xf32> to vector<2x8xf32>
    %80 = vector.broadcast %78 : vector<1x8xf32> to vector<2x8xf32>
    %81 = arith.mulf %79, %80 : vector<2x8xf32>
    %82 = arith.addf %76, %81 : vector<2x8xf32>
    %83 = vector.broadcast %35 : vector<1x8xf32> to vector<2x8xf32>
    %84 = arith.addf %82, %83 : vector<2x8xf32>
    %cst_30 = arith.constant 0.000000e+00 : f32
    %85 = vector.broadcast %cst_30 : f32 to vector<2x8xf32>
    %86 = arith.cmpf oge, %84, %85 : vector<2x8xf32>
    %cst_31 = arith.constant 2.000000e-01 : f32
    %87 = vector.broadcast %cst_31 : f32 to vector<2x8xf32>
    %88 = arith.mulf %87, %84 : vector<2x8xf32>
    %89 = arith.select %86, %84, %88 : vector<2x8xi1>, vector<2x8xf32>
    %c0_32 = arith.constant 0 : index
    %c0_33 = arith.constant 0 : index
    %90 = vector.load %arg11[%c0_32, %c0_33] : memref<8x16xf32, #tpu.memory_space<vmem>>, vector<8x16xf32>
    %c0_34 = arith.constant 0 : index
    %c0_35 = arith.constant 0 : index
    %91 = vector.load %arg12[%c0_34, %c0_35] : memref<1x16xf32, #tpu.memory_space<vmem>>, vector<1x16xf32>
    %92 = vector.extract_strided_slice %89 {offsets = [0, 0], sizes = [2, 1], strides = [1, 1]} : vector<2x8xf32> to vector<2x1xf32>
    %93 = vector.extract_strided_slice %90 {offsets = [0, 0], sizes = [1, 16], strides = [1, 1]} : vector<8x16xf32> to vector<1x16xf32>
    %94 = vector.broadcast %92 : vector<2x1xf32> to vector<2x16xf32>
    %95 = vector.broadcast %93 : vector<1x16xf32> to vector<2x16xf32>
    %96 = arith.mulf %94, %95 : vector<2x16xf32>
    %97 = vector.extract_strided_slice %89 {offsets = [0, 1], sizes = [2, 1], strides = [1, 1]} : vector<2x8xf32> to vector<2x1xf32>
    %98 = vector.extract_strided_slice %90 {offsets = [1, 0], sizes = [1, 16], strides = [1, 1]} : vector<8x16xf32> to vector<1x16xf32>
    %99 = vector.broadcast %97 : vector<2x1xf32> to vector<2x16xf32>
    %100 = vector.broadcast %98 : vector<1x16xf32> to vector<2x16xf32>
    %101 = arith.mulf %99, %100 : vector<2x16xf32>
    %102 = arith.addf %96, %101 : vector<2x16xf32>
    %103 = vector.extract_strided_slice %89 {offsets = [0, 2], sizes = [2, 1], strides = [1, 1]} : vector<2x8xf32> to vector<2x1xf32>
    %104 = vector.extract_strided_slice %90 {offsets = [2, 0], sizes = [1, 16], strides = [1, 1]} : vector<8x16xf32> to vector<1x16xf32>
    %105 = vector.broadcast %103 : vector<2x1xf32> to vector<2x16xf32>
    %106 = vector.broadcast %104 : vector<1x16xf32> to vector<2x16xf32>
    %107 = arith.mulf %105, %106 : vector<2x16xf32>
    %108 = arith.addf %102, %107 : vector<2x16xf32>
    %109 = vector.extract_strided_slice %89 {offsets = [0, 3], sizes = [2, 1], strides = [1, 1]} : vector<2x8xf32> to vector<2x1xf32>
    %110 = vector.extract_strided_slice %90 {offsets = [3, 0], sizes = [1, 16], strides = [1, 1]} : vector<8x16xf32> to vector<1x16xf32>
    %111 = vector.broadcast %109 : vector<2x1xf32> to vector<2x16xf32>
    %112 = vector.broadcast %110 : vector<1x16xf32> to vector<2x16xf32>
    %113 = arith.mulf %111, %112 : vector<2x16xf32>
    %114 = arith.addf %108, %113 : vector<2x16xf32>
    %115 = vector.extract_strided_slice %89 {offsets = [0, 4], sizes = [2, 1], strides = [1, 1]} : vector<2x8xf32> to vector<2x1xf32>
    %116 = vector.extract_strided_slice %90 {offsets = [4, 0], sizes = [1, 16], strides = [1, 1]} : vector<8x16xf32> to vector<1x16xf32>
    %117 = vector.broadcast %115 : vector<2x1xf32> to vector<2x16xf32>
    %118 = vector.broadcast %116 : vector<1x16xf32> to vector<2x16xf32>
    %119 = arith.mulf %117, %118 : vector<2x16xf32>
    %120 = arith.addf %114, %119 : vector<2x16xf32>
    %121 = vector.extract_strided_slice %89 {offsets = [0, 5], sizes = [2, 1], strides = [1, 1]} : vector<2x8xf32> to vector<2x1xf32>
    %122 = vector.extract_strided_slice %90 {offsets = [5, 0], sizes = [1, 16], strides = [1, 1]} : vector<8x16xf32> to vector<1x16xf32>
    %123 = vector.broadcast %121 : vector<2x1xf32> to vector<2x16xf32>
    %124 = vector.broadcast %122 : vector<1x16xf32> to vector<2x16xf32>
    %125 = arith.mulf %123, %124 : vector<2x16xf32>
    %126 = arith.addf %120, %125 : vector<2x16xf32>
    %127 = vector.extract_strided_slice %89 {offsets = [0, 6], sizes = [2, 1], strides = [1, 1]} : vector<2x8xf32> to vector<2x1xf32>
    %128 = vector.extract_strided_slice %90 {offsets = [6, 0], sizes = [1, 16], strides = [1, 1]} : vector<8x16xf32> to vector<1x16xf32>
    %129 = vector.broadcast %127 : vector<2x1xf32> to vector<2x16xf32>
    %130 = vector.broadcast %128 : vector<1x16xf32> to vector<2x16xf32>
    %131 = arith.mulf %129, %130 : vector<2x16xf32>
    %132 = arith.addf %126, %131 : vector<2x16xf32>
    %133 = vector.extract_strided_slice %89 {offsets = [0, 7], sizes = [2, 1], strides = [1, 1]} : vector<2x8xf32> to vector<2x1xf32>
    %134 = vector.extract_strided_slice %90 {offsets = [7, 0], sizes = [1, 16], strides = [1, 1]} : vector<8x16xf32> to vector<1x16xf32>
    %135 = vector.broadcast %133 : vector<2x1xf32> to vector<2x16xf32>
    %136 = vector.broadcast %134 : vector<1x16xf32> to vector<2x16xf32>
    %137 = arith.mulf %135, %136 : vector<2x16xf32>
    %138 = arith.addf %132, %137 : vector<2x16xf32>
    %139 = vector.broadcast %91 : vector<1x16xf32> to vector<2x16xf32>
    %140 = arith.addf %138, %139 : vector<2x16xf32>
    %cst_36 = arith.constant 0.000000e+00 : f32
    %141 = vector.broadcast %cst_36 : f32 to vector<2x16xf32>
    %142 = arith.cmpf oge, %140, %141 : vector<2x16xf32>
    %cst_37 = arith.constant 2.000000e-01 : f32
    %143 = vector.broadcast %cst_37 : f32 to vector<2x16xf32>
    %144 = arith.mulf %143, %140 : vector<2x16xf32>
    %145 = arith.select %142, %140, %144 : vector<2x16xi1>, vector<2x16xf32>
    %c0_38 = arith.constant 0 : index
    %c0_39 = arith.constant 0 : index
    %146 = vector.load %arg13[%c0_38, %c0_39] : memref<16x32xf32, #tpu.memory_space<vmem>>, vector<16x32xf32>
    %c0_40 = arith.constant 0 : index
    %c0_41 = arith.constant 0 : index
    %147 = vector.load %arg14[%c0_40, %c0_41] : memref<1x32xf32, #tpu.memory_space<vmem>>, vector<1x32xf32>
    %148 = vector.extract_strided_slice %145 {offsets = [0, 0], sizes = [2, 1], strides = [1, 1]} : vector<2x16xf32> to vector<2x1xf32>
    %149 = vector.extract_strided_slice %146 {offsets = [0, 0], sizes = [1, 32], strides = [1, 1]} : vector<16x32xf32> to vector<1x32xf32>
    %150 = vector.broadcast %148 : vector<2x1xf32> to vector<2x32xf32>
    %151 = vector.broadcast %149 : vector<1x32xf32> to vector<2x32xf32>
    %152 = arith.mulf %150, %151 : vector<2x32xf32>
    %153 = vector.extract_strided_slice %145 {offsets = [0, 1], sizes = [2, 1], strides = [1, 1]} : vector<2x16xf32> to vector<2x1xf32>
    %154 = vector.extract_strided_slice %146 {offsets = [1, 0], sizes = [1, 32], strides = [1, 1]} : vector<16x32xf32> to vector<1x32xf32>
    %155 = vector.broadcast %153 : vector<2x1xf32> to vector<2x32xf32>
    %156 = vector.broadcast %154 : vector<1x32xf32> to vector<2x32xf32>
    %157 = arith.mulf %155, %156 : vector<2x32xf32>
    %158 = arith.addf %152, %157 : vector<2x32xf32>
    %159 = vector.extract_strided_slice %145 {offsets = [0, 2], sizes = [2, 1], strides = [1, 1]} : vector<2x16xf32> to vector<2x1xf32>
    %160 = vector.extract_strided_slice %146 {offsets = [2, 0], sizes = [1, 32], strides = [1, 1]} : vector<16x32xf32> to vector<1x32xf32>
    %161 = vector.broadcast %159 : vector<2x1xf32> to vector<2x32xf32>
    %162 = vector.broadcast %160 : vector<1x32xf32> to vector<2x32xf32>
    %163 = arith.mulf %161, %162 : vector<2x32xf32>
    %164 = arith.addf %158, %163 : vector<2x32xf32>
    %165 = vector.extract_strided_slice %145 {offsets = [0, 3], sizes = [2, 1], strides = [1, 1]} : vector<2x16xf32> to vector<2x1xf32>
    %166 = vector.extract_strided_slice %146 {offsets = [3, 0], sizes = [1, 32], strides = [1, 1]} : vector<16x32xf32> to vector<1x32xf32>
    %167 = vector.broadcast %165 : vector<2x1xf32> to vector<2x32xf32>
    %168 = vector.broadcast %166 : vector<1x32xf32> to vector<2x32xf32>
    %169 = arith.mulf %167, %168 : vector<2x32xf32>
    %170 = arith.addf %164, %169 : vector<2x32xf32>
    %171 = vector.extract_strided_slice %145 {offsets = [0, 4], sizes = [2, 1], strides = [1, 1]} : vector<2x16xf32> to vector<2x1xf32>
    %172 = vector.extract_strided_slice %146 {offsets = [4, 0], sizes = [1, 32], strides = [1, 1]} : vector<16x32xf32> to vector<1x32xf32>
    %173 = vector.broadcast %171 : vector<2x1xf32> to vector<2x32xf32>
    %174 = vector.broadcast %172 : vector<1x32xf32> to vector<2x32xf32>
    %175 = arith.mulf %173, %174 : vector<2x32xf32>
    %176 = arith.addf %170, %175 : vector<2x32xf32>
    %177 = vector.extract_strided_slice %145 {offsets = [0, 5], sizes = [2, 1], strides = [1, 1]} : vector<2x16xf32> to vector<2x1xf32>
    %178 = vector.extract_strided_slice %146 {offsets = [5, 0], sizes = [1, 32], strides = [1, 1]} : vector<16x32xf32> to vector<1x32xf32>
    %179 = vector.broadcast %177 : vector<2x1xf32> to vector<2x32xf32>
    %180 = vector.broadcast %178 : vector<1x32xf32> to vector<2x32xf32>
    %181 = arith.mulf %179, %180 : vector<2x32xf32>
    %182 = arith.addf %176, %181 : vector<2x32xf32>
    %183 = vector.extract_strided_slice %145 {offsets = [0, 6], sizes = [2, 1], strides = [1, 1]} : vector<2x16xf32> to vector<2x1xf32>
    %184 = vector.extract_strided_slice %146 {offsets = [6, 0], sizes = [1, 32], strides = [1, 1]} : vector<16x32xf32> to vector<1x32xf32>
    %185 = vector.broadcast %183 : vector<2x1xf32> to vector<2x32xf32>
    %186 = vector.broadcast %184 : vector<1x32xf32> to vector<2x32xf32>
    %187 = arith.mulf %185, %186 : vector<2x32xf32>
    %188 = arith.addf %182, %187 : vector<2x32xf32>
    %189 = vector.extract_strided_slice %145 {offsets = [0, 7], sizes = [2, 1], strides = [1, 1]} : vector<2x16xf32> to vector<2x1xf32>
    %190 = vector.extract_strided_slice %146 {offsets = [7, 0], sizes = [1, 32], strides = [1, 1]} : vector<16x32xf32> to vector<1x32xf32>
    %191 = vector.broadcast %189 : vector<2x1xf32> to vector<2x32xf32>
    %192 = vector.broadcast %190 : vector<1x32xf32> to vector<2x32xf32>
    %193 = arith.mulf %191, %192 : vector<2x32xf32>
    %194 = arith.addf %188, %193 : vector<2x32xf32>
    %195 = vector.extract_strided_slice %145 {offsets = [0, 8], sizes = [2, 1], strides = [1, 1]} : vector<2x16xf32> to vector<2x1xf32>
    %196 = vector.extract_strided_slice %146 {offsets = [8, 0], sizes = [1, 32], strides = [1, 1]} : vector<16x32xf32> to vector<1x32xf32>
    %197 = vector.broadcast %195 : vector<2x1xf32> to vector<2x32xf32>
    %198 = vector.broadcast %196 : vector<1x32xf32> to vector<2x32xf32>
    %199 = arith.mulf %197, %198 : vector<2x32xf32>
    %200 = arith.addf %194, %199 : vector<2x32xf32>
    %201 = vector.extract_strided_slice %145 {offsets = [0, 9], sizes = [2, 1], strides = [1, 1]} : vector<2x16xf32> to vector<2x1xf32>
    %202 = vector.extract_strided_slice %146 {offsets = [9, 0], sizes = [1, 32], strides = [1, 1]} : vector<16x32xf32> to vector<1x32xf32>
    %203 = vector.broadcast %201 : vector<2x1xf32> to vector<2x32xf32>
    %204 = vector.broadcast %202 : vector<1x32xf32> to vector<2x32xf32>
    %205 = arith.mulf %203, %204 : vector<2x32xf32>
    %206 = arith.addf %200, %205 : vector<2x32xf32>
    %207 = vector.extract_strided_slice %145 {offsets = [0, 10], sizes = [2, 1], strides = [1, 1]} : vector<2x16xf32> to vector<2x1xf32>
    %208 = vector.extract_strided_slice %146 {offsets = [10, 0], sizes = [1, 32], strides = [1, 1]} : vector<16x32xf32> to vector<1x32xf32>
    %209 = vector.broadcast %207 : vector<2x1xf32> to vector<2x32xf32>
    %210 = vector.broadcast %208 : vector<1x32xf32> to vector<2x32xf32>
    %211 = arith.mulf %209, %210 : vector<2x32xf32>
    %212 = arith.addf %206, %211 : vector<2x32xf32>
    %213 = vector.extract_strided_slice %145 {offsets = [0, 11], sizes = [2, 1], strides = [1, 1]} : vector<2x16xf32> to vector<2x1xf32>
    %214 = vector.extract_strided_slice %146 {offsets = [11, 0], sizes = [1, 32], strides = [1, 1]} : vector<16x32xf32> to vector<1x32xf32>
    %215 = vector.broadcast %213 : vector<2x1xf32> to vector<2x32xf32>
    %216 = vector.broadcast %214 : vector<1x32xf32> to vector<2x32xf32>
    %217 = arith.mulf %215, %216 : vector<2x32xf32>
    %218 = arith.addf %212, %217 : vector<2x32xf32>
    %219 = vector.extract_strided_slice %145 {offsets = [0, 12], sizes = [2, 1], strides = [1, 1]} : vector<2x16xf32> to vector<2x1xf32>
    %220 = vector.extract_strided_slice %146 {offsets = [12, 0], sizes = [1, 32], strides = [1, 1]} : vector<16x32xf32> to vector<1x32xf32>
    %221 = vector.broadcast %219 : vector<2x1xf32> to vector<2x32xf32>
    %222 = vector.broadcast %220 : vector<1x32xf32> to vector<2x32xf32>
    %223 = arith.mulf %221, %222 : vector<2x32xf32>
    %224 = arith.addf %218, %223 : vector<2x32xf32>
    %225 = vector.extract_strided_slice %145 {offsets = [0, 13], sizes = [2, 1], strides = [1, 1]} : vector<2x16xf32> to vector<2x1xf32>
    %226 = vector.extract_strided_slice %146 {offsets = [13, 0], sizes = [1, 32], strides = [1, 1]} : vector<16x32xf32> to vector<1x32xf32>
    %227 = vector.broadcast %225 : vector<2x1xf32> to vector<2x32xf32>
    %228 = vector.broadcast %226 : vector<1x32xf32> to vector<2x32xf32>
    %229 = arith.mulf %227, %228 : vector<2x32xf32>
    %230 = arith.addf %224, %229 : vector<2x32xf32>
    %231 = vector.extract_strided_slice %145 {offsets = [0, 14], sizes = [2, 1], strides = [1, 1]} : vector<2x16xf32> to vector<2x1xf32>
    %232 = vector.extract_strided_slice %146 {offsets = [14, 0], sizes = [1, 32], strides = [1, 1]} : vector<16x32xf32> to vector<1x32xf32>
    %233 = vector.broadcast %231 : vector<2x1xf32> to vector<2x32xf32>
    %234 = vector.broadcast %232 : vector<1x32xf32> to vector<2x32xf32>
    %235 = arith.mulf %233, %234 : vector<2x32xf32>
    %236 = arith.addf %230, %235 : vector<2x32xf32>
    %237 = vector.extract_strided_slice %145 {offsets = [0, 15], sizes = [2, 1], strides = [1, 1]} : vector<2x16xf32> to vector<2x1xf32>
    %238 = vector.extract_strided_slice %146 {offsets = [15, 0], sizes = [1, 32], strides = [1, 1]} : vector<16x32xf32> to vector<1x32xf32>
    %239 = vector.broadcast %237 : vector<2x1xf32> to vector<2x32xf32>
    %240 = vector.broadcast %238 : vector<1x32xf32> to vector<2x32xf32>
    %241 = arith.mulf %239, %240 : vector<2x32xf32>
    %242 = arith.addf %236, %241 : vector<2x32xf32>
    %243 = vector.broadcast %147 : vector<1x32xf32> to vector<2x32xf32>
    %244 = arith.addf %242, %243 : vector<2x32xf32>
    %245 = arith.addf %32, %244 : vector<2x32xf32>
    %c0_42 = arith.constant 0 : index
    %c0_43 = arith.constant 0 : index
    %246 = vector.load %arg15[%c0_42, %c0_43] : memref<2x32xf32, #tpu.memory_space<vmem>>, vector<2x32xf32>
    tpu.vector_store %arg15[%c0_42, %c0_43], %245 {strides = array<i32>} : memref<2x32xf32, #tpu.memory_space<vmem>>, vector<2x32xf32>,
    return
  }
}

</mosaic_0001>

<bundles_post_ra>
// kernel: encoder_forward.1
= control target key start
LH: loop header
LB: loop body
LE: loop exit
PB: predicated region body
PF: predicated region fallthrough
CT: control target
= control target key end

     0   :  { %20 = vsyncpa [#allocation3], 0  ;;  %s3517_s0 = inlined_call_operand.vmem [shape: f32[2,768], index: 0, kind: input, shape index: {}]   ;;  %s3518_s1 = inlined_call_operand.hbm [shape: f32[2,8], index: 1, kind: input, shape index: {}]   ;;  %s3519_s2 = inlined_call_operand.hbm [shape: f32[768,512], index: 2, kind: input, shape index: {}]   ;;  %s3520_s3 = inlined_call_operand.hbm [shape: f32[1,512], index: 3, kind: input, shape index: {}]   ;;  %s3521_s4 = inlined_call_operand.hbm [shape: f32[512,256], index: 4, kind: input, shape index: {}]   ;;  %s3522_s5 = inlined_call_operand.hbm [shape: f32[1,256], index: 5, kind: input, shape index: {}]   ;;  %s3523_s6 = inlined_call_operand.hbm [shape: f32[256,128], index: 6, kind: input, shape index: {}]   ;;  %s3524_s7 = inlined_call_operand.hbm [shape: f32[1,128], index: 7, kind: input, shape index: {}]   ;;  %s3525_s8 = inlined_call_operand.vmem [shape: f32[128,32], index: 8, kind: input, shape index: {}]   ;;  %s3526_s9 = inlined_call_operand.hbm [shape: f32[8,8], index: 9, kind: input, shape index: {}]   ;;  %s3527_s10 = inlined_call_operand.hbm [shape: f32[1,8], index: 10, kind: input, shape index: {}]   ;;  %s3528_s11 = inlined_call_operand.hbm [shape: f32[8,16], index: 11, kind: input, shape index: {}]   ;;  %s3529_s12 = inlined_call_operand.hbm [shape: f32[1,16], index: 12, kind: input, shape index: {}]   ;;  %s3530_s13 = inlined_call_operand.hbm [shape: f32[16,32], index: 13, kind: input, shape index: {}]   ;;  %s3531_s14 = inlined_call_operand.hbm [shape: f32[1,32], index: 14, kind: input, shape index: {}]   ;;  %s3532_s15 = inlined_call_operand.hbm [shape: f32[2,32], index: 15, kind: output, shape index: {}]  }
   0x1   :  { %21 = vsyncpa [#allocation6], 0 }
   0x2   :  { %22 = vsyncpa [#allocation9], 0 }
   0x3   :  { %23 = vsyncpa [#allocation12], 0 }
   0x4   :  { %24 = vsyncpa [#allocation15], 0 }
   0x5   :  { %25 = vsyncpa [#allocation18], 0 }
   0x6   :  { %26 = vsyncpa [#allocation21], 0 }
   0x7   :  { %27 = vsyncpa [#allocation4], 0  ;;  %s3026_s18 = smov [#allocation5]   ;;  %s2702_s22 = scalar_lea.hbm %s3519_s2, 49152 }
   0x8   :  { %s45_s19 = sshll.u32 %s3026_s18, 4  ;;  %p2703_p0 = scmp.ne.s32.totalorder %s3519_s2, %s2702_s22  ;;  %s46_s19 = int_to_ptr.vmem [resolvable:$true] %s45_s19 }
   0x9   :  { %p2706_p1 = scmp.lt.u32.totalorder %s2702_s22, %s3519_s2 }
   0xb   :  { %p2708_p2 = pnand %p2706_p1, %p2703_p0 }
   0xd   :  { %2711 = shalt.err (!%p2708_p2)
}
   0xe   :  { %s2712_s27 = scalar_lea.vmem %s46_s19, 49152  ;;  %p2717_p4 = scmp.lt.s32.totalorder %s46_s19, %s46_s19 }
   0xf   :  { %p2713_p3 = scmp.ne.s32.totalorder %s46_s19, %s2712_s27  ;;  %p2718_p5 = scmp.lt.s32.totalorder %s2712_s27, %s2712_s27 }
  0x11   :  { %p2719_p6 = por %p2718_p5, %p2717_p4 }
  0x13   :  { %p2720_p7 = pnand %p2719_p6, %p2713_p3 }
  0x15   :  { %2723 = shalt.err (!%p2720_p7)
}
  0x16   :  { %s3027_s28 = smov 512   ;;  %s3028_s29 = smov 32  }
  0x17   :  { %51 = dma.hbm_to_vmem [thread:$0]  %s3519_s2, 49152, %s46_s19, [#allocation6], %s3027_s28, %s3027_s28, %s3028_s29  }
  0x18   :  { %s3029_s17 = smov [#allocation8]   ;;  %s2724_s22 = scalar_lea.hbm %s3521_s4, 16384 }
  0x19   :  { %s67_s18 = sshll.u32 %s3029_s17, 4  ;;  %p2725_p8 = scmp.ne.s32.totalorder %s3521_s4, %s2724_s22  ;;  %s68_s18 = int_to_ptr.vmem [resolvable:$true] %s67_s18 }
  0x1a   :  { %p2728_p9 = scmp.lt.u32.totalorder %s2724_s22, %s3521_s4 }
  0x1c   :  { %p2730_p10 = pnand %p2728_p9, %p2725_p8 }
  0x1e   :  { %2733 = shalt.err (!%p2730_p10)
}
  0x1f   :  { %s2734_s27 = scalar_lea.vmem %s68_s18, 16384  ;;  %p2739_p12 = scmp.lt.s32.totalorder %s68_s18, %s68_s18 }
  0x20   :  { %p2735_p11 = scmp.ne.s32.totalorder %s68_s18, %s2734_s27  ;;  %p2740_p13 = scmp.lt.s32.totalorder %s2734_s27, %s2734_s27 }
  0x22   :  { %p2741_p0 = por %p2740_p13, %p2739_p12 }
  0x24   :  { %p2742_p1 = pnand %p2741_p0, %p2735_p11 }
  0x26   :  { %2745 = shalt.err (!%p2742_p1)
}
  0x27   :  { %s3030_s2 = smov 256   ;;  %s3031_s19 = smov 16  }
  0x28   :  { %73 = dma.hbm_to_vmem [thread:$0]  %s3521_s4, 16384, %s68_s18, [#allocation9], %s3030_s2, %s3030_s2, %s3031_s19  }
  0x29   :  { %s3032_s30 = smov [#allocation11]   ;;  %s2746_s21 = scalar_lea.hbm %s3523_s6, 4096 }
  0x2a   :  { %s89_s16 = sshll.u32 %s3032_s30, 4  ;;  %p2747_p2 = scmp.ne.s32.totalorder %s3523_s6, %s2746_s21  ;;  %s90_s16 = int_to_ptr.vmem [resolvable:$true] %s89_s16 }
  0x2b   :  { %p2750_p3 = scmp.lt.u32.totalorder %s2746_s21, %s3523_s6 }
  0x2d   :  { %p2752_p4 = pnand %p2750_p3, %p2747_p2 }
  0x2f   :  { %2755 = shalt.err (!%p2752_p4)
}
  0x30   :  { %s2756_s26 = scalar_lea.vmem %s90_s16, 4096  ;;  %p2761_p6 = scmp.lt.s32.totalorder %s90_s16, %s90_s16 }
  0x31   :  { %p2757_p5 = scmp.ne.s32.totalorder %s90_s16, %s2756_s26  ;;  %p2762_p7 = scmp.lt.s32.totalorder %s2756_s26, %s2756_s26 }
  0x33   :  { %p2763_p8 = por %p2762_p7, %p2761_p6 }
  0x35   :  { %p2764_p9 = pnand %p2763_p8, %p2757_p5 }
  0x37   :  { %2767 = shalt.err (!%p2764_p9)
}
  0x38   :  { %s3033_s4 = smov 128   ;;  %s3034_s18 = smov 8  }
  0x39   :  { %95 = dma.hbm_to_vmem [thread:$0]  %s3523_s6, 4096, %s90_s16, [#allocation12], %s3033_s4, %s3033_s4, %s3034_s18  }
  0x3a   :  { %s3035_s19 = smov [#allocation14]   ;;  %s3036_s29 = smov [#allocation17]  }
  0x3b   :  { %s114_s28 = sshll.u32 %s3035_s19, 4  ;;  %s134_s30 = sshll.u32 %s3036_s29, 4  ;;  %s115_s28 = int_to_ptr.vmem [resolvable:$true] %s114_s28  ;;  %s135_s30 = int_to_ptr.vmem [resolvable:$true] %s134_s30 }
  0x3c   :  { %s2768_s21 = scalar_lea.hbm %s3526_s9, 128 }
  0x3d   :  { %p2769_p10 = scmp.ne.s32.totalorder %s3526_s9, %s2768_s21  ;;  %p2772_p11 = scmp.lt.u32.totalorder %s2768_s21, %s3526_s9 }
  0x3f   :  { %p2774_p12 = pnand %p2772_p11, %p2769_p10 }
  0x41   :  { %2777 = shalt.err (!%p2774_p12)
}
  0x42   :  { %s2778_s6 = scalar_lea.vmem %s115_s28, 128  ;;  %p2783_p0 = scmp.lt.s32.totalorder %s115_s28, %s115_s28 }
  0x43   :  { %p2779_p13 = scmp.ne.s32.totalorder %s115_s28, %s2778_s6  ;;  %p2784_p1 = scmp.lt.s32.totalorder %s2778_s6, %s2778_s6 }
  0x45   :  { %p2785_p2 = por %p2784_p1, %p2783_p0 }
  0x47   :  { %p2786_p3 = pnand %p2785_p2, %p2779_p13 }
  0x49   :  { %2789 = shalt.err (!%p2786_p3)
}
  0x4a   :  { %117 = dma.hbm_to_vmem [thread:$0]  %s3526_s9, 128, %s115_s28, [#allocation15]  }
  0x4b   :  { %s2790_s19 = scalar_lea.hbm %s3528_s11, 128 }
  0x4c   :  { %p2791_p4 = scmp.ne.s32.totalorder %s3528_s11, %s2790_s19  ;;  %p2794_p5 = scmp.lt.u32.totalorder %s2790_s19, %s3528_s11 }
  0x4e   :  { %p2796_p6 = pnand %p2794_p5, %p2791_p4 }
  0x50   :  { %2799 = shalt.err (!%p2796_p6)
}
  0x51   :  { %s2800_s22 = scalar_lea.vmem %s135_s30, 128  ;;  %p2805_p8 = scmp.lt.s32.totalorder %s135_s30, %s135_s30 }
  0x52   :  { %p2801_p7 = scmp.ne.s32.totalorder %s135_s30, %s2800_s22  ;;  %p2806_p9 = scmp.lt.s32.totalorder %s2800_s22, %s2800_s22 }
  0x54   :  { %p2807_p10 = por %p2806_p9, %p2805_p8 }
  0x56   :  { %p2808_p11 = pnand %p2807_p10, %p2801_p7 }
  0x58   :  { %2811 = shalt.err (!%p2808_p11)
}
  0x59   :  { %137 = dma.hbm_to_vmem [thread:$0]  %s3528_s11, 128, %s135_s30, [#allocation18]  }
  0x5a   :  { %s3037_s23 = smov [#allocation20]   ;;  %s3038_s25 = smov [#allocation2]  }
  0x5b   :  { %s153_s24 = sshll.u32 %s3037_s23, 4  ;;  %s36_s6 = sshll.u32 %s3038_s25, 4  ;;  %s154_s24 = int_to_ptr.vmem [resolvable:$true] %s153_s24  ;;  %s37_s6 = int_to_ptr.vmem [resolvable:$true] %s36_s6 }
  0x5c   :  { %s2812_s27 = scalar_lea.hbm %s3530_s13, 256 }
  0x5d   :  { %p2813_p12 = scmp.ne.s32.totalorder %s3530_s13, %s2812_s27  ;;  %p2816_p13 = scmp.lt.u32.totalorder %s2812_s27, %s3530_s13 }
  0x5f   :  { %p2818_p0 = pnand %p2816_p13, %p2813_p12 }
  0x61   :  { %2821 = shalt.err (!%p2818_p0)
}
  0x62   :  { %s2822_s11 = scalar_lea.vmem %s154_s24, 256  ;;  %p2827_p2 = scmp.lt.s32.totalorder %s154_s24, %s154_s24 }
  0x63   :  { %p2823_p1 = scmp.ne.s32.totalorder %s154_s24, %s2822_s11  ;;  %p2828_p3 = scmp.lt.s32.totalorder %s2822_s11, %s2822_s11 }
  0x65   :  { %p2829_p4 = por %p2828_p3, %p2827_p2 }
  0x67   :  { %p2830_p5 = pnand %p2829_p4, %p2823_p1 }
  0x69   :  { %2833 = shalt.err (!%p2830_p5)
}
  0x6a   :  { %159 = dma.hbm_to_vmem [thread:$0]  %s3530_s13, 256, %s154_s24, [#allocation21], %s3033_s4, %s3033_s4, %s3034_s18  }
  0x6b   :  { %s2834_s9 = scalar_lea.hbm %s3518_s1, 32 }
  0x6c   :  { %p2835_p6 = scmp.ne.s32.totalorder %s3518_s1, %s2834_s9  ;;  %p2838_p7 = scmp.lt.u32.totalorder %s2834_s9, %s3518_s1 }
  0x6e   :  { %p2840_p8 = pnand %p2838_p7, %p2835_p6 }
  0x70   :  { %2843 = shalt.err (!%p2840_p8)
}
  0x71   :  { %s2844_s26 = scalar_lea.vmem %s37_s6, 32  ;;  %p2849_p10 = scmp.lt.s32.totalorder %s37_s6, %s37_s6 }
  0x72   :  { %p2845_p9 = scmp.ne.s32.totalorder %s37_s6, %s2844_s26  ;;  %p2850_p11 = scmp.lt.s32.totalorder %s2844_s26, %s2844_s26 }
  0x74   :  { %p2851_p12 = por %p2850_p11, %p2849_p10 }
  0x76   :  { %p2852_p13 = pnand %p2851_p12, %p2845_p9 }
  0x78   :  { %2855 = shalt.err (!%p2852_p13)
}
  0x79   :  { %39 = dma.hbm_to_vmem [thread:$0]  %s3518_s1, 32, %s37_s6, [#allocation3]  }
  0x7a   :  { %s3039_s18 = smov [#allocation7]   ;;  %s3040_s27 = smov [#allocation10]  }
  0x7b   :  { %s58_s24 = sshll.u32 %s3039_s18, 4  ;;  %s80_s2 = sshll.u32 %s3040_s27, 4  ;;  %s59_s24 = int_to_ptr.vmem [resolvable:$true] %s58_s24  ;;  %s81_s2 = int_to_ptr.vmem [resolvable:$true] %s80_s2 }
  0x7c   :  { %s2856_s17 = scalar_lea.hbm %s3520_s3, 64 }
  0x7d   :  { %p2857_p0 = scmp.ne.s32.totalorder %s3520_s3, %s2856_s17  ;;  %p2860_p1 = scmp.lt.u32.totalorder %s2856_s17, %s3520_s3 }
  0x7f   :  { %p2862_p2 = pnand %p2860_p1, %p2857_p0 }
  0x81   :  { %2865 = shalt.err (!%p2862_p2)
}
  0x82   :  { %s2866_s1 = scalar_lea.vmem %s59_s24, 64  ;;  %p2871_p4 = scmp.lt.s32.totalorder %s59_s24, %s59_s24 }
  0x83   :  { %p2867_p3 = scmp.ne.s32.totalorder %s59_s24, %s2866_s1  ;;  %p2872_p5 = scmp.lt.s32.totalorder %s2866_s1, %s2866_s1 }
  0x85   :  { %p2873_p6 = por %p2872_p5, %p2871_p4 }
  0x87   :  { %p2874_p7 = pnand %p2873_p6, %p2867_p3 }
  0x89   :  { %2877 = shalt.err (!%p2874_p7)
}
  0x8a   :  { %61 = dma.hbm_to_vmem [thread:$0]  %s3520_s3, 64, %s59_s24, [#allocation6]  }
  0x8b   :  { %s2878_s23 = scalar_lea.hbm %s3522_s5, 32 }
  0x8c   :  { %p2879_p8 = scmp.ne.s32.totalorder %s3522_s5, %s2878_s23  ;;  %p2882_p9 = scmp.lt.u32.totalorder %s2878_s23, %s3522_s5 }
  0x8e   :  { %p2884_p10 = pnand %p2882_p9, %p2879_p8 }
  0x90   :  { %2887 = shalt.err (!%p2884_p10)
}
  0x91   :  { %s2888_s4 = scalar_lea.vmem %s81_s2, 32  ;;  %p2893_p12 = scmp.lt.s32.totalorder %s81_s2, %s81_s2 }
  0x92   :  { %p2889_p11 = scmp.ne.s32.totalorder %s81_s2, %s2888_s4  ;;  %p2894_p13 = scmp.lt.s32.totalorder %s2888_s4, %s2888_s4 }
  0x94   :  { %p2895_p0 = por %p2894_p13, %p2893_p12 }
  0x96   :  { %p2896_p1 = pnand %p2895_p0, %p2889_p11 }
  0x98   :  { %2899 = shalt.err (!%p2896_p1)
}
  0x99   :  { %83 = dma.hbm_to_vmem [thread:$0]  %s3522_s5, 32, %s81_s2, [#allocation9]  }
  0x9a   :  { %s3041_s24 = smov [#allocation13]   ;;  %s3042_s19 = smov [#allocation16]  }
  0x9b   :  { %s102_s27 = sshll.u32 %s3041_s24, 4  ;;  %s124_s29 = sshll.u32 %s3042_s19, 4  ;;  %s103_s27 = int_to_ptr.vmem [resolvable:$true] %s102_s27  ;;  %s125_s29 = int_to_ptr.vmem [resolvable:$true] %s124_s29 }
  0x9c   :  { %s2900_s30 = scalar_lea.hbm %s3524_s7, 16 }
  0x9d   :  { %p2901_p2 = scmp.ne.s32.totalorder %s3524_s7, %s2900_s30  ;;  %p2904_p3 = scmp.lt.u32.totalorder %s2900_s30, %s3524_s7 }
  0x9f   :  { %p2906_p4 = pnand %p2904_p3, %p2901_p2 }
  0xa1   :  { %2909 = shalt.err (!%p2906_p4)
}
  0xa2   :  { %s2910_s5 = scalar_lea.vmem %s103_s27, 16  ;;  %s2914_s2 = scalar_lea.vmem %s103_s27, 32 }
  0xa3   :  { %p2911_p5 = scmp.ne.s32.totalorder %s103_s27, %s2910_s5  ;;  %p2915_p6 = scmp.lt.s32.totalorder %s103_s27, %s103_s27 }
  0xa4   :  { %p2916_p7 = scmp.lt.s32.totalorder %s2914_s2, %s2910_s5 }
  0xa6   :  { %p2917_p8 = por %p2916_p7, %p2915_p6 }
  0xa8   :  { %p2918_p9 = pnand %p2917_p8, %p2911_p5 }
  0xaa   :  { %2921 = shalt.err (!%p2918_p9)
}
  0xab   :  { %105 = dma.hbm_to_vmem [thread:$0]  %s3524_s7, 16, %s103_s27, [#allocation12]  }
  0xac   :  { %s2922_s25 = scalar_lea.hbm %s3527_s10, 16 }
  0xad   :  { %p2923_p10 = scmp.ne.s32.totalorder %s3527_s10, %s2922_s25  ;;  %p2926_p11 = scmp.lt.u32.totalorder %s2922_s25, %s3527_s10 }
  0xaf   :  { %p2928_p12 = pnand %p2926_p11, %p2923_p10 }
  0xb1   :  { %2931 = shalt.err (!%p2928_p12)
}
  0xb2   :  { %s2932_s3 = scalar_lea.vmem %s125_s29, 16  ;;  %s2936_s18 = scalar_lea.vmem %s125_s29, 32 }
  0xb3   :  { %p2933_p13 = scmp.ne.s32.totalorder %s125_s29, %s2932_s3  ;;  %p2937_p0 = scmp.lt.s32.totalorder %s125_s29, %s125_s29 }
  0xb4   :  { %p2938_p1 = scmp.lt.s32.totalorder %s2936_s18, %s2932_s3 }
  0xb6   :  { %p2939_p2 = por %p2938_p1, %p2937_p0 }
  0xb8   :  { %p2940_p3 = pnand %p2939_p2, %p2933_p13 }
  0xba   :  { %2943 = shalt.err (!%p2940_p3)
}
  0xbb   :  { %127 = dma.hbm_to_vmem [thread:$0]  %s3527_s10, 16, %s125_s29, [#allocation15]  }
  0xbc   :  { %s3043_s27 = smov [#allocation19]   ;;  %s3044_s17 = smov [#allocation22]  }
  0xbd   :  { %s144_s19 = sshll.u32 %s3043_s27, 4  ;;  %s166_s11 = sshll.u32 %s3044_s17, 4  ;;  %s145_s19 = int_to_ptr.vmem [resolvable:$true] %s144_s19  ;;  %s167_s11 = int_to_ptr.vmem [resolvable:$true] %s166_s11 }
  0xbe   :  { %s2944_s21 = scalar_lea.hbm %s3529_s12, 16 }
  0xbf   :  { %p2945_p4 = scmp.ne.s32.totalorder %s3529_s12, %s2944_s21  ;;  %p2948_p5 = scmp.lt.u32.totalorder %s2944_s21, %s3529_s12 }
  0xc1   :  { %p2950_p6 = pnand %p2948_p5, %p2945_p4 }
  0xc3   :  { %2953 = shalt.err (!%p2950_p6)
}
  0xc4   :  { %s2954_s10 = scalar_lea.vmem %s145_s19, 16  ;;  %s2958_s29 = scalar_lea.vmem %s145_s19, 32 }
  0xc5   :  { %p2955_p7 = scmp.ne.s32.totalorder %s145_s19, %s2954_s10  ;;  %p2959_p8 = scmp.lt.s32.totalorder %s145_s19, %s145_s19 }
  0xc6   :  { %p2960_p9 = scmp.lt.s32.totalorder %s2958_s29, %s2954_s10 }
  0xc8   :  { %p2961_p10 = por %p2960_p9, %p2959_p8 }
  0xca   :  { %p2962_p11 = pnand %p2961_p10, %p2955_p7 }
  0xcc   :  { %2965 = shalt.err (!%p2962_p11)
}
  0xcd   :  { %147 = dma.hbm_to_vmem [thread:$0]  %s3529_s12, 16, %s145_s19, [#allocation18]  }
  0xce   :  { %s2966_s25 = scalar_lea.hbm %s3531_s14, 16 }
  0xcf   :  { %p2967_p12 = scmp.ne.s32.totalorder %s3531_s14, %s2966_s25  ;;  %p2970_p13 = scmp.lt.u32.totalorder %s2966_s25, %s3531_s14 }
  0xd1   :  { %p2972_p0 = pnand %p2970_p13, %p2967_p12 }
  0xd3   :  { %2975 = shalt.err (!%p2972_p0)
}
  0xd4   :  { %s2976_s3 = scalar_lea.vmem %s167_s11, 16  ;;  %s2980_s18 = scalar_lea.vmem %s167_s11, 32 }
  0xd5   :  { %p2977_p1 = scmp.ne.s32.totalorder %s167_s11, %s2976_s3  ;;  %p2981_p2 = scmp.lt.s32.totalorder %s167_s11, %s167_s11 }
  0xd6   :  { %p2982_p3 = scmp.lt.s32.totalorder %s2980_s18, %s2976_s3 }
  0xd8   :  { %p2983_p4 = por %p2982_p3, %p2981_p2 }
  0xda   :  { %p2984_p5 = pnand %p2983_p4, %p2977_p1 }
  0xdc   :  { %2987 = shalt.err (!%p2984_p5)
}
  0xdd   :  { %169 = dma.hbm_to_vmem [thread:$0]  %s3531_s14, 16, %s167_s11, [#allocation21]  }
  0xde   :  { %3010 = dma.done.wait [#allocation3], 32  }
  0xdf   :  { %3011 = vsyncadd [#allocation3], 4294967264 }
  0xe0   :  { %3012 = dma.done.wait [#allocation6], 49216  }
  0xe1   :  { %3013 = vsyncadd [#allocation6], 4294918080 }
  0xe2   :  { %3014 = dma.done.wait [#allocation9], 16416  }
  0xe3   :  { %3015 = vsyncadd [#allocation9], 4294950880 }
  0xe4   :  { %3016 = dma.done.wait [#allocation12], 4112  }
  0xe5   :  { %3017 = vsyncadd [#allocation12], 4294963184 }
  0xe6   :  { %3018 = dma.done.wait [#allocation15], 144  }
  0xe7   :  { %3019 = vsyncadd [#allocation15], 4294967152 }
  0xe8   :  { %3020 = dma.done.wait [#allocation18], 144  }
  0xe9   :  { %3021 = vsyncadd [#allocation18], 4294967152 }
  0xea   :  { %3022 = dma.done.wait [#allocation21], 272  }
  0xeb   :  { %3023 = vsyncadd [#allocation21], 4294967024  ;;  %v212_v0 = vld [vmem:[#allocation5 + $0x8] sm:$0xff]  ;;  %v214_v2 = vld [vmem:[#allocation5 + $0x18] sm:$0xff]  ;;  %vm3063_vm8 = vmmov 0   ;;  %vm1929_vm10 = vcmask 254976  }
  0xec   :  { %v216_v1 = vld [vmem:[#allocation5 + $0x28] sm:$0xff]  ;;  %v218_v4 = vld [vmem:[#allocation5 + $0x38] sm:$0xff]  ;;  %v211_v5 = vld [vmem:[#allocation5] sm:$0xff] }
  0xed   :  { %v2044_v3 = vpack.c.bf16 %v216_v1, %v212_v0  ;;  %v215_v6 = vld [vmem:[#allocation5 + $0x20] sm:$0xff]  ;;  %v2236_v7 = vpack.c.bf16 %v218_v4, %v214_v2  ;;  %v213_v9 = vld [vmem:[#allocation5 + $0x10] sm:$0xff]  ;;  %v220_v11 = vld [vmem:[#allocation5 + $0x48] sm:$0xff] }
  0xee   :  { %v2046_v8 = vpack.c.bf16 %v215_v6, %v211_v5  ;;  %v217_v10 = vld [vmem:[#allocation5 + $0x30] sm:$0xff]  ;;  %v224_v13 = vld [vmem:[#allocation5 + $0x68] sm:$0xff]  ;;  %v222_v14 = vld [vmem:[#allocation5 + $0x58] sm:$0xff] }
  0xef   :  { %2045 = vmatprep.subr.bf16.mxu0 %v2044_v3  ;;  %v2238_v12 = vpack.c.bf16 %v217_v10, %v213_v9  ;;  %v226_v15 = vld [vmem:[#allocation5 + $0x78] sm:$0xff]  ;;  %2237 = vmatprep.subr.bf16.mxu1 %v2236_v7  ;;  %v2048_v16 = vpack.c.bf16 %v224_v13, %v220_v11  ;;  %v219_v18 = vld [vmem:[#allocation5 + $0x40] sm:$0xff]  ;;  %v221_v20 = vld [vmem:[#allocation5 + $0x50] sm:$0xff] }
  0xf0   :  { %2047 = vmatpush1.bf16.msra.mxu0 %v2046_v8  ;;  %v2240_v17 = vpack.c.bf16 %v226_v15, %v222_v14  ;;  %v223_v19 = vld [vmem:[#allocation5 + $0x60] sm:$0xff]  ;;  %v225_v22 = vld [vmem:[#allocation5 + $0x70] sm:$0xff]  ;;  %v228_v23 = vld [vmem:[#allocation5 + $0x88] sm:$0xff] }
  0xf1   :  { %2239 = vmatpush1.bf16.msra.mxu1 %v2238_v12  ;;  %v2050_v21 = vpack.c.bf16 %v223_v19, %v219_v18  ;;  %v232_v24 = vld [vmem:[#allocation5 + $0xa8] sm:$0xff]  ;;  %2049 = vmatprep.subr.bf16.mxu0 %v2048_v16  ;;  %v2242_v25 = vpack.c.bf16 %v225_v22, %v221_v20  ;;  %v230_v27 = vld [vmem:[#allocation5 + $0x98] sm:$0xff]  ;;  %v227_v29 = vld [vmem:[#allocation5 + $0x80] sm:$0xff] }
  0xf2   :  { %2241 = vmatprep.subr.bf16.mxu1 %v2240_v17  ;;  %v2052_v26 = vpack.c.bf16 %v232_v24, %v228_v23  ;;  %v234_v28 = vld [vmem:[#allocation5 + $0xb8] sm:$0xff]  ;;  %v231_v31 = vld [vmem:[#allocation5 + $0xa0] sm:$0xff]  ;;  %v229_v32 = vld [vmem:[#allocation5 + $0x90] sm:$0xff] }
  0xf3   :  { %v2244_v30 = vpack.c.bf16 %v234_v28, %v230_v27  ;;  %v233_v33 = vld [vmem:[#allocation5 + $0xb0] sm:$0xff]  ;;  %v2054_v34 = vpack.c.bf16 %v231_v31, %v227_v29  ;;  %v236_v35 = vld [vmem:[#allocation5 + $0xc8] sm:$0xff]  ;;  %v238_v37 = vld [vmem:[#allocation5 + $0xd8] sm:$0xff] }
  0xf4   :  { %2051 = vmatpush1.bf16.msra.mxu0 %v2050_v21  ;;  %v240_v36 = vld [vmem:[#allocation5 + $0xe8] sm:$0xff]  ;;  %v2246_v38 = vpack.c.bf16 %v233_v33, %v229_v32  ;;  %v242_v40 = vld [vmem:[#allocation5 + $0xf8] sm:$0xff]  ;;  %v235_v41 = vld [vmem:[#allocation5 + $0xc0] sm:$0xff] }
  0xf5   :  { %2243 = vmatpush1.bf16.msra.mxu1 %v2242_v25  ;;  %2053 = vmatprep.subr.bf16.mxu0 %v2052_v26  ;;  %v2056_v39 = vpack.c.bf16 %v240_v36, %v236_v35  ;;  %v239_v42 = vld [vmem:[#allocation5 + $0xe0] sm:$0xff]  ;;  %v2248_v43 = vpack.c.bf16 %v242_v40, %v238_v37  ;;  %v237_v44 = vld [vmem:[#allocation5 + $0xd0] sm:$0xff]  ;;  %v244_v46 = vld [vmem:[#allocation5 + $0x108] sm:$0xff] }
  0xf6   :  { %2245 = vmatprep.subr.bf16.mxu1 %v2244_v30  ;;  %v241_v45 = vld [vmem:[#allocation5 + $0xf0] sm:$0xff]  ;;  %v248_v47 = vld [vmem:[#allocation5 + $0x128] sm:$0xff]  ;;  %v246_v48 = vld [vmem:[#allocation5 + $0x118] sm:$0xff]  ;;  %v2058_v50 = vpack.c.bf16 %v239_v42, %v235_v41 }
  0xf7   :  { %v250_v49 = vld [vmem:[#allocation5 + $0x138] sm:$0xff]  ;;  %v2250_v51 = vpack.c.bf16 %v241_v45, %v237_v44  ;;  %v2060_v52 = vpack.c.bf16 %v248_v47, %v244_v46  ;;  %v243_v53 = vld [vmem:[#allocation5 + $0x100] sm:$0xff]  ;;  %v245_v55 = vld [vmem:[#allocation5 + $0x110] sm:$0xff]  ;;  %v597_v46 = vlaneseq  ;;  %v3045_v47 = vmov 1983009808  }
  0xf8   :  { %2055 = vmatpush1.bf16.msra.mxu0 %v2054_v34  ;;  %v247_v54 = vld [vmem:[#allocation5 + $0x120] sm:$0xff]  ;;  %v2252_v56 = vpack.c.bf16 %v250_v49, %v246_v48  ;;  %v249_v57 = vld [vmem:[#allocation5 + $0x130] sm:$0xff]  ;;  %v252_v58 = vld [vmem:[#allocation5 + $0x148] sm:$0xff]  ;;  %v621_v48 = vunpack.c.l.s4 %v3045_v47 }
  0xf9   :  { %2247 = vmatpush1.bf16.msra.mxu1 %v2246_v38  ;;  %2057 = vmatprep.subr.bf16.mxu0 %v2056_v39  ;;  %v256_v59 = vld [vmem:[#allocation5 + $0x168] sm:$0xff]  ;;  %v254_v60 = vld [vmem:[#allocation5 + $0x158] sm:$0xff]  ;;  %v2062_v62 = vpack.c.bf16 %v247_v54, %v243_v53  ;;  %v2254_v63 = vpack.c.bf16 %v249_v57, %v245_v55  ;;  %v251_v1 = vld [vmem:[#allocation5 + $0x140] sm:$0xff] }
  0xfa   :  { %2249 = vmatprep.subr.bf16.mxu1 %v2248_v43  ;;  %v258_v61 = vld [vmem:[#allocation5 + $0x178] sm:$0xff]  ;;  %v2064_v0 = vpack.c.bf16 %v256_v59, %v252_v58  ;;  %v255_v2 = vld [vmem:[#allocation5 + $0x160] sm:$0xff]  ;;  %v253_v3 = vld [vmem:[#allocation5 + $0x150] sm:$0xff] }
  0xfb   :  { %v2256_v4 = vpack.c.bf16 %v258_v61, %v254_v60  ;;  %v257_v5 = vld [vmem:[#allocation5 + $0x170] sm:$0xff]  ;;  %v260_v6 = vld [vmem:[#allocation5 + $0x188] sm:$0xff]  ;;  %v262_v8 = vld [vmem:[#allocation5 + $0x198] sm:$0xff]  ;;  %v2066_v10 = vpack.c.bf16 %v255_v2, %v251_v1  ;;  %v3308_v61 = vshrl.u32 %v597_v46, 7 }
  0xfc   :  { %2059 = vmatpush1.bf16.msra.mxu0 %v2058_v50  ;;  %v264_v7 = vld [vmem:[#allocation5 + $0x1a8] sm:$0xff]  ;;  %v266_v9 = vld [vmem:[#allocation5 + $0x1b8] sm:$0xff]  ;;  %v2258_v11 = vpack.c.bf16 %v257_v5, %v253_v3  ;;  %v259_v13 = vld [vmem:[#allocation5 + $0x180] sm:$0xff] }
  0xfd   :  { %2251 = vmatpush1.bf16.msra.mxu1 %v2250_v51  ;;  %2061 = vmatprep.subr.bf16.mxu0 %v2060_v52  ;;  %v2068_v12 = vpack.c.bf16 %v264_v7, %v260_v6  ;;  %v263_v14 = vld [vmem:[#allocation5 + $0x1a0] sm:$0xff]  ;;  %v261_v15 = vld [vmem:[#allocation5 + $0x190] sm:$0xff]  ;;  %v2260_v16 = vpack.c.bf16 %v266_v9, %v262_v8  ;;  %v268_v18 = vld [vmem:[#allocation5 + $0x1c8] sm:$0xff] }
  0xfe   :  { %2253 = vmatprep.subr.bf16.mxu1 %v2252_v56  ;;  %v265_v17 = vld [vmem:[#allocation5 + $0x1b0] sm:$0xff]  ;;  %v272_v19 = vld [vmem:[#allocation5 + $0x1e8] sm:$0xff]  ;;  %v270_v20 = vld [vmem:[#allocation5 + $0x1d8] sm:$0xff]  ;;  %v2070_v22 = vpack.c.bf16 %v263_v14, %v259_v13 }
  0xff   :  { %v274_v21 = vld [vmem:[#allocation5 + $0x1f8] sm:$0xff]  ;;  %v2262_v23 = vpack.c.bf16 %v265_v17, %v261_v15  ;;  %v2072_v24 = vpack.c.bf16 %v272_v19, %v268_v18  ;;  %v267_v25 = vld [vmem:[#allocation5 + $0x1c0] sm:$0xff]  ;;  %v269_v27 = vld [vmem:[#allocation5 + $0x1d0] sm:$0xff] }
 0x100   :  { %2063 = vmatpush1.bf16.msra.mxu0 %v2062_v62  ;;  %v271_v26 = vld [vmem:[#allocation5 + $0x1e0] sm:$0xff]  ;;  %v2264_v28 = vpack.c.bf16 %v274_v21, %v270_v20  ;;  %v273_v29 = vld [vmem:[#allocation5 + $0x1f0] sm:$0xff]  ;;  %v276_v30 = vld [vmem:[#allocation5 + $0x208] sm:$0xff]  ;;  %v622_v62 = vunpack.c.0.s8 %v621_v48 }
 0x101   :  { %2255 = vmatpush1.bf16.msra.mxu1 %v2254_v63  ;;  %2065 = vmatprep.subr.bf16.mxu0 %v2064_v0  ;;  %v280_v31 = vld [vmem:[#allocation5 + $0x228] sm:$0xff]  ;;  %v278_v32 = vld [vmem:[#allocation5 + $0x218] sm:$0xff]  ;;  %v2074_v34 = vpack.c.bf16 %v271_v26, %v267_v25  ;;  %v2266_v35 = vpack.c.bf16 %v273_v29, %v269_v27  ;;  %v275_v37 = vld [vmem:[#allocation5 + $0x200] sm:$0xff] }
 0x102   :  { %2257 = vmatprep.subr.bf16.mxu1 %v2256_v4  ;;  %v282_v33 = vld [vmem:[#allocation5 + $0x238] sm:$0xff]  ;;  %v2076_v36 = vpack.c.bf16 %v280_v31, %v276_v30  ;;  %v279_v38 = vld [vmem:[#allocation5 + $0x220] sm:$0xff]  ;;  %v277_v39 = vld [vmem:[#allocation5 + $0x210] sm:$0xff] }
 0x103   :  { %v2268_v40 = vpack.c.bf16 %v282_v33, %v278_v32  ;;  %v281_v41 = vld [vmem:[#allocation5 + $0x230] sm:$0xff]  ;;  %v284_v42 = vld [vmem:[#allocation5 + $0x248] sm:$0xff]  ;;  %v286_v44 = vld [vmem:[#allocation5 + $0x258] sm:$0xff]  ;;  %v2078_v49 = vpack.c.bf16 %v279_v38, %v275_v37 }
 0x104   :  { %2067 = vmatpush1.bf16.msra.mxu0 %v2066_v10  ;;  %v288_v43 = vld [vmem:[#allocation5 + $0x268] sm:$0xff]  ;;  %v290_v45 = vld [vmem:[#allocation5 + $0x278] sm:$0xff]  ;;  %v2270_v50 = vpack.c.bf16 %v281_v41, %v277_v39  ;;  %v283_v52 = vld [vmem:[#allocation5 + $0x240] sm:$0xff] }
 0x105   :  { %2259 = vmatpush1.bf16.msra.mxu1 %v2258_v11  ;;  %2069 = vmatprep.subr.bf16.mxu0 %v2068_v12  ;;  %v2080_v51 = vpack.c.bf16 %v288_v43, %v284_v42  ;;  %v287_v53 = vld [vmem:[#allocation5 + $0x260] sm:$0xff]  ;;  %v285_v54 = vld [vmem:[#allocation5 + $0x250] sm:$0xff]  ;;  %v2272_v55 = vpack.c.bf16 %v290_v45, %v286_v44  ;;  %v292_v57 = vld [vmem:[#allocation5 + $0x288] sm:$0xff]  ;;  %v3311_v11 = vsub.s32 %v622_v62, %v3308_v61 }
 0x106   :  { %2261 = vmatprep.subr.bf16.mxu1 %v2260_v16  ;;  %v289_v56 = vld [vmem:[#allocation5 + $0x270] sm:$0xff]  ;;  %v296_v58 = vld [vmem:[#allocation5 + $0x2a8] sm:$0xff]  ;;  %v294_v59 = vld [vmem:[#allocation5 + $0x298] sm:$0xff]  ;;  %v2082_v63 = vpack.c.bf16 %v287_v53, %v283_v52 }
 0x107   :  { %v298_v60 = vld [vmem:[#allocation5 + $0x2b8] sm:$0xff]  ;;  %v2274_v0 = vpack.c.bf16 %v289_v56, %v285_v54  ;;  %v2084_v1 = vpack.c.bf16 %v296_v58, %v292_v57  ;;  %v291_v2 = vld [vmem:[#allocation5 + $0x280] sm:$0xff]  ;;  %v293_v4 = vld [vmem:[#allocation5 + $0x290] sm:$0xff] }
 0x108   :  { %2071 = vmatpush1.bf16.msra.mxu0 %v2070_v22  ;;  %v295_v3 = vld [vmem:[#allocation5 + $0x2a0] sm:$0xff]  ;;  %v2276_v5 = vpack.c.bf16 %v298_v60, %v294_v59  ;;  %v297_v6 = vld [vmem:[#allocation5 + $0x2b0] sm:$0xff]  ;;  %v300_v7 = vld [vmem:[#allocation5 + $0x2c8] sm:$0xff] }
 0x109   :  { %2263 = vmatpush1.bf16.msra.mxu1 %v2262_v23  ;;  %2073 = vmatprep.subr.bf16.mxu0 %v2072_v24  ;;  %v304_v8 = vld [vmem:[#allocation5 + $0x2e8] sm:$0xff]  ;;  %v302_v9 = vld [vmem:[#allocation5 + $0x2d8] sm:$0xff]  ;;  %v2086_v12 = vpack.c.bf16 %v295_v3, %v291_v2  ;;  %v299_v13 = vld [vmem:[#allocation5 + $0x2c0] sm:$0xff]  ;;  %v2278_v14 = vpack.c.bf16 %v297_v6, %v293_v4 }
 0x10a   :  { %2265 = vmatprep.subr.bf16.mxu1 %v2264_v28  ;;  %v306_v10 = vld [vmem:[#allocation5 + $0x2f8] sm:$0xff]  ;;  %v2088_v15 = vpack.c.bf16 %v304_v8, %v300_v7  ;;  %v303_v16 = vld [vmem:[#allocation5 + $0x2e0] sm:$0xff]  ;;  %v301_v17 = vld [vmem:[#allocation5 + $0x2d0] sm:$0xff] }
 0x10b   :  { %v305_v18 = vld [vmem:[#allocation5 + $0x2f0] sm:$0xff]  ;;  %v2280_v19 = vpack.c.bf16 %v306_v10, %v302_v9  ;;  %v308_v20 = vld [vmem:[#allocation5 + $0x308] sm:$0xff]  ;;  %v3316_v22 = vld [vmem:[%s3517_s0] sm:$0xff]  ;;  %v2090_v26 = vpack.c.bf16 %v303_v16, %v299_v13 }
 0x10c   :  { %2075 = vmatpush1.bf16.msra.mxu0 %v2074_v34  ;;  %v312_v21 = vld [vmem:[#allocation5 + $0x328] sm:$0xff]  ;;  %v310_v23 = vld [vmem:[#allocation5 + $0x318] sm:$0xff]  ;;  %v3320_v25 = vrot.slane %v3316_v22, %v3311_v11  ;;  %v2282_v27 = vpack.c.bf16 %v305_v18, %v301_v17  ;;  %v307_v29 = vld [vmem:[#allocation5 + $0x300] sm:$0xff]  ;;  %v619_v8 = vcombine.high %v3316_v22, %v3316_v22 }
 0x10d   :  { %2267 = vmatpush1.bf16.msra.mxu1 %v2266_v35  ;;  %2077 = vmatprep.subr.bf16.mxu0 %v2076_v36  ;;  %v314_v24 = vld [vmem:[#allocation5 + $0x338] sm:$0xff]  ;;  %v2092_v28 = vpack.c.bf16 %v312_v21, %v308_v20  ;;  %v311_v30 = vld [vmem:[#allocation5 + $0x320] sm:$0xff]  ;;  %v309_v31 = vld [vmem:[#allocation5 + $0x310] sm:$0xff] }
 0x10e   :  { %2269 = vmatprep.subr.bf16.mxu1 %v2268_v40  ;;  %v634_v32 = vcombine.high %v3320_v25, %v3320_v25  ;;  %v2284_v33 = vpack.c.bf16 %v314_v24, %v310_v23  ;;  %v313_v34 = vld [vmem:[#allocation5 + $0x330] sm:$0xff]  ;;  %v316_v35 = vld [vmem:[#allocation5 + $0x348] sm:$0xff]  ;;  %v318_v37 = vld [vmem:[#allocation5 + $0x358] sm:$0xff]  ;;  %v2094_v39 = vpack.c.bf16 %v311_v30, %v307_v29  ;;  %v3327_v22 = vrot.slane %v619_v8, %v3311_v11 }
 0x10f   :  { %v320_v36 = vld [vmem:[#allocation5 + $0x368] sm:$0xff]  ;;  %v322_v38 = vld [vmem:[#allocation5 + $0x378] sm:$0xff]  ;;  %v2286_v40 = vpack.c.bf16 %v313_v34, %v309_v31  ;;  %v315_v42 = vld [vmem:[#allocation5 + $0x340] sm:$0xff] }
 0x110   :  { %2079 = vmatpush1.bf16.msra.mxu0 %v2078_v49  ;;  %714 = vmatprep.mubr.f32.mxu0 %v634_v32  ;;  %v2096_v41 = vpack.c.bf16 %v320_v36, %v316_v35  ;;  %v319_v43 = vld [vmem:[#allocation5 + $0x360] sm:$0xff]  ;;  %v317_v44 = vld [vmem:[#allocation5 + $0x350] sm:$0xff]  ;;  %v2288_v45 = vpack.c.bf16 %v322_v38, %v318_v37  ;;  %v324_v47 = vld [vmem:[#allocation5 + $0x388] sm:$0xff]  ;;  %v635_v11 = vcombine.high %v3327_v22, %v3327_v22 }
 0x111   :  { %2271 = vmatpush1.bf16.msra.mxu1 %v2270_v50  ;;  %2081 = vmatprep.subr.bf16.mxu0 %v2080_v51  ;;  %v321_v46 = vld [vmem:[#allocation5 + $0x370] sm:$0xff]  ;;  %v328_v48 = vld [vmem:[#allocation5 + $0x3a8] sm:$0xff]  ;;  %v326_v49 = vld [vmem:[#allocation5 + $0x398] sm:$0xff]  ;;  %v2098_v51 = vpack.c.bf16 %v319_v43, %v315_v42 }
 0x112   :  { %2273 = vmatprep.subr.bf16.mxu1 %v2272_v55  ;;  %927 = vmatprep.mubr.f32.mxu1 %v634_v32  ;;  %v330_v50 = vld [vmem:[#allocation5 + $0x3b8] sm:$0xff]  ;;  %v2290_v52 = vpack.c.bf16 %v321_v46, %v317_v44  ;;  %v2100_v53 = vpack.c.bf16 %v328_v48, %v324_v47  ;;  %v323_v54 = vld [vmem:[#allocation5 + $0x380] sm:$0xff]  ;;  %v325_v56 = vld [vmem:[#allocation5 + $0x390] sm:$0xff] }
 0x113   :  { %v327_v55 = vld [vmem:[#allocation5 + $0x3a0] sm:$0xff]  ;;  %v2292_v57 = vpack.c.bf16 %v330_v50, %v326_v49  ;;  %v329_v58 = vld [vmem:[#allocation5 + $0x3b0] sm:$0xff]  ;;  %v332_v59 = vld [vmem:[#allocation5 + $0x3c8] sm:$0xff] }
 0x114   :  { %2083 = vmatpush1.bf16.msra.mxu0 %v2082_v63  ;;  %v336_v60 = vld [vmem:[#allocation5 + $0x3e8] sm:$0xff]  ;;  %v334_v62 = vld [vmem:[#allocation5 + $0x3d8] sm:$0xff]  ;;  %v331_v3 = vld [vmem:[#allocation5 + $0x3c0] sm:$0xff] }
 0x115   :  { %2275 = vmatpush1.bf16.msra.mxu1 %v2274_v0  ;;  %2085 = vmatprep.subr.bf16.mxu0 %v2084_v1  ;;  %v338_v63 = vld [vmem:[#allocation5 + $0x3f8] sm:$0xff]  ;;  %v2102_v0 = vpack.c.bf16 %v327_v55, %v323_v54  ;;  %v2294_v1 = vpack.c.bf16 %v329_v58, %v325_v56  ;;  %v2104_v2 = vpack.c.bf16 %v336_v60, %v332_v59  ;;  %v335_v4 = vld [vmem:[#allocation5 + $0x3e0] sm:$0xff]  ;;  %v337_v7 = vld [vmem:[#allocation5 + $0x3f0] sm:$0xff] }
 0x116   :  { %2277 = vmatprep.subr.bf16.mxu1 %v2276_v5  ;;  %v333_v5 = vld [vmem:[#allocation5 + $0x3d0] sm:$0xff]  ;;  %v2296_v6 = vpack.c.bf16 %v338_v63, %v334_v62  ;;  %v340_v9 = vld [vmem:[#allocation5 + $0x408] sm:$0xff]  ;;  %v346_v13 = vld [vmem:[#allocation5 + $0x438] sm:$0xff] }
 0x117   :  { %v344_v10 = vld [vmem:[#allocation5 + $0x428] sm:$0xff]  ;;  %v339_v17 = vld [vmem:[#allocation5 + $0x400] sm:$0xff]  ;;  %v345_v21 = vld [vmem:[#allocation5 + $0x430] sm:$0xff] }
 0x118   :  { %2087 = vmatpush1.bf16.msra.mxu0 %v2086_v12  ;;  %v342_v12 = vld [vmem:[#allocation5 + $0x418] sm:$0xff]  ;;  %v2108_v16 = vpack.c.bf16 %v344_v10, %v340_v9  ;;  %v343_v18 = vld [vmem:[#allocation5 + $0x420] sm:$0xff]  ;;  %v348_v23 = vld [vmem:[#allocation5 + $0x448] sm:$0xff] }
 0x119   :  { %2279 = vmatpush1.bf16.msra.mxu1 %v2278_v14  ;;  %2089 = vmatprep.subr.bf16.mxu0 %v2088_v15  ;;  %v2106_v14 = vpack.c.bf16 %v335_v4, %v331_v3  ;;  %v2298_v15 = vpack.c.bf16 %v337_v7, %v333_v5  ;;  %v2300_v20 = vpack.c.bf16 %v346_v13, %v342_v12  ;;  %v352_v24 = vld [vmem:[#allocation5 + $0x468] sm:$0xff]  ;;  %v347_v31 = vld [vmem:[#allocation5 + $0x440] sm:$0xff]  ;;  %v353_v35 = vld [vmem:[#allocation5 + $0x470] sm:$0xff] }
 0x11a   :  { %2281 = vmatprep.subr.bf16.mxu1 %v2280_v19  ;;  %v341_v19 = vld [vmem:[#allocation5 + $0x410] sm:$0xff]  ;;  %v2112_v30 = vpack.c.bf16 %v352_v24, %v348_v23  ;;  %v351_v32 = vld [vmem:[#allocation5 + $0x460] sm:$0xff]  ;;  %v356_v36 = vld [vmem:[#allocation5 + $0x488] sm:$0xff] }
 0x11b   :  { %v2302_v29 = vpack.c.bf16 %v345_v21, %v341_v19  ;;  %v360_v37 = vld [vmem:[#allocation5 + $0x4a8] sm:$0xff]  ;;  %v358_v38 = vld [vmem:[#allocation5 + $0x498] sm:$0xff]  ;;  %v355_v43 = vld [vmem:[#allocation5 + $0x480] sm:$0xff] }
 0x11c   :  { %2091 = vmatpush1.bf16.msra.mxu0 %v2090_v26  ;;  %v350_v26 = vld [vmem:[#allocation5 + $0x458] sm:$0xff]  ;;  %v2116_v42 = vpack.c.bf16 %v360_v37, %v356_v36  ;;  %v359_v44 = vld [vmem:[#allocation5 + $0x4a0] sm:$0xff]  ;;  %v361_v47 = vld [vmem:[#allocation5 + $0x4b0] sm:$0xff] }
 0x11d   :  { %2283 = vmatpush1.bf16.msra.mxu1 %v2282_v27  ;;  %2093 = vmatprep.subr.bf16.mxu0 %v2092_v28  ;;  %v354_v27 = vld [vmem:[#allocation5 + $0x478] sm:$0xff]  ;;  %v2110_v28 = vpack.c.bf16 %v343_v18, %v339_v17  ;;  %v364_v48 = vld [vmem:[#allocation5 + $0x4c8] sm:$0xff]  ;;  %v363_v54 = vld [vmem:[#allocation5 + $0x4c0] sm:$0xff] }
 0x11e   :  { %2285 = vmatprep.subr.bf16.mxu1 %v2284_v33  ;;  %v349_v33 = vld [vmem:[#allocation5 + $0x450] sm:$0xff]  ;;  %v2304_v34 = vpack.c.bf16 %v354_v27, %v350_v26  ;;  %v368_v49 = vld [vmem:[#allocation5 + $0x4e8] sm:$0xff]  ;;  %v366_v50 = vld [vmem:[#allocation5 + $0x4d8] sm:$0xff] }
 0x11f   :  { %v367_v55 = vld [vmem:[#allocation5 + $0x4e0] sm:$0xff]  ;;  %v365_v56 = vld [vmem:[#allocation5 + $0x4d0] sm:$0xff]  ;;  %v372_v59 = vld [vmem:[#allocation5 + $0x508] sm:$0xff] }
 0x120   :  { %2095 = vmatpush1.bf16.msra.mxu0 %v2094_v39  ;;  %v362_v39 = vld [vmem:[#allocation5 + $0x4b8] sm:$0xff]  ;;  %v369_v58 = vld [vmem:[#allocation5 + $0x4f0] sm:$0xff]  ;;  %v376_v60 = vld [vmem:[#allocation5 + $0x528] sm:$0xff] }
 0x121   :  { %2287 = vmatpush1.bf16.msra.mxu1 %v2286_v40  ;;  %2097 = vmatprep.subr.bf16.mxu0 %v2096_v41  ;;  %v2114_v40 = vpack.c.bf16 %v351_v32, %v347_v31  ;;  %v2306_v41 = vpack.c.bf16 %v353_v35, %v349_v33  ;;  %v2308_v46 = vpack.c.bf16 %v362_v39, %v358_v38  ;;  %v374_v62 = vld [vmem:[#allocation5 + $0x518] sm:$0xff]  ;;  %v371_v3 = vld [vmem:[#allocation5 + $0x500] sm:$0xff]  ;;  %v373_v5 = vld [vmem:[#allocation5 + $0x510] sm:$0xff] }
 0x122   :  { %2289 = vmatprep.subr.bf16.mxu1 %v2288_v45  ;;  %v357_v45 = vld [vmem:[#allocation5 + $0x490] sm:$0xff]  ;;  %v378_v63 = vld [vmem:[#allocation5 + $0x538] sm:$0xff]  ;;  %v375_v4 = vld [vmem:[#allocation5 + $0x520] sm:$0xff] }
 0x123   :  { %v377_v7 = vld [vmem:[#allocation5 + $0x530] sm:$0xff]  ;;  %v380_v8 = vld [vmem:[#allocation5 + $0x548] sm:$0xff]  ;;  %v382_v10 = vld [vmem:[#allocation5 + $0x558] sm:$0xff]  ;;  %v2126_v13 = vpack.c.bf16 %v375_v4, %v371_v3 }
 0x124   :  { %2099 = vmatpush1.bf16.msra.mxu0 %v2098_v51  ;;  %v370_v51 = vld [vmem:[#allocation5 + $0x4f8] sm:$0xff]  ;;  %v384_v9 = vld [vmem:[#allocation5 + $0x568] sm:$0xff]  ;;  %v383_v17 = vld [vmem:[#allocation5 + $0x560] sm:$0xff] }
 0x125   :  { %2291 = vmatpush1.bf16.msra.mxu1 %v2290_v52  ;;  %2101 = vmatprep.subr.bf16.mxu0 %v2100_v53  ;;  %v2118_v52 = vpack.c.bf16 %v359_v44, %v355_v43  ;;  %v2120_v53 = vpack.c.bf16 %v368_v49, %v364_v48  ;;  %v386_v12 = vld [vmem:[#allocation5 + $0x578] sm:$0xff]  ;;  %v381_v18 = vld [vmem:[#allocation5 + $0x550] sm:$0xff]  ;;  %v388_v21 = vld [vmem:[#allocation5 + $0x588] sm:$0xff] }
 0x126   :  { %2293 = vmatprep.subr.bf16.mxu1 %v2292_v57  ;;  %v2312_v57 = vpack.c.bf16 %v370_v51, %v366_v50  ;;  %v2320_v19 = vpack.c.bf16 %v386_v12, %v382_v10  ;;  %v392_v23 = vld [vmem:[#allocation5 + $0x5a8] sm:$0xff]  ;;  %v390_v24 = vld [vmem:[#allocation5 + $0x598] sm:$0xff]  ;;  %v391_v31 = vld [vmem:[#allocation5 + $0x5a0] sm:$0xff] }
 0x127   :  { %v394_v26 = vld [vmem:[#allocation5 + $0x5b8] sm:$0xff]  ;;  %v389_v32 = vld [vmem:[#allocation5 + $0x590] sm:$0xff]  ;;  %v396_v35 = vld [vmem:[#allocation5 + $0x5c8] sm:$0xff] }
 0x128   :  { %2103 = vmatpush1.bf16.msra.mxu0 %v2102_v0  ;;  %v2122_v0 = vpack.c.bf16 %v367_v55, %v363_v54  ;;  %v2324_v33 = vpack.c.bf16 %v394_v26, %v390_v24  ;;  %v400_v36 = vld [vmem:[#allocation5 + $0x5e8] sm:$0xff]  ;;  %v398_v37 = vld [vmem:[#allocation5 + $0x5d8] sm:$0xff]  ;;  %v397_v43 = vld [vmem:[#allocation5 + $0x5d0] sm:$0xff] }
 0x129   :  { %2295 = vmatpush1.bf16.msra.mxu1 %v2294_v1  ;;  %2105 = vmatprep.subr.bf16.mxu0 %v2104_v2  ;;  %v2314_v1 = vpack.c.bf16 %v369_v58, %v365_v56  ;;  %v2124_v2 = vpack.c.bf16 %v376_v60, %v372_v59  ;;  %v406_v48 = vld [vmem:[#allocation5 + $0x618] sm:$0xff]  ;;  %v405_v54 = vld [vmem:[#allocation5 + $0x610] sm:$0xff]  ;;  %v416_v58 = vld [vmem:[#allocation5 + $0x668] sm:$0xff] }
 0x12a   :  { %2297 = vmatprep.subr.bf16.mxu1 %v2296_v6  ;;  %v2316_v6 = vpack.c.bf16 %v378_v63, %v374_v62  ;;  %v410_v49 = vld [vmem:[#allocation5 + $0x638] sm:$0xff]  ;;  %v409_v56 = vld [vmem:[#allocation5 + $0x630] sm:$0xff] }
 0x12b   :  { %v2332_v55 = vpack.c.bf16 %v410_v49, %v406_v48  ;;  %v414_v59 = vld [vmem:[#allocation5 + $0x658] sm:$0xff]  ;;  %v2334_v63 = vpack.c.bf16 %v409_v56, %v405_v54  ;;  %v413_v3 = vld [vmem:[#allocation5 + $0x650] sm:$0xff]  ;;  %v456_v56 = vld [vmem:[#allocation5 + $0x7a8] sm:$0xff] }
 0x12c   :  { %2107 = vmatpush1.bf16.msra.mxu0 %v2106_v14  ;;  %v2318_v14 = vpack.c.bf16 %v377_v7, %v373_v5  ;;  %v418_v60 = vld [vmem:[#allocation5 + $0x678] sm:$0xff]  ;;  %v417_v5 = vld [vmem:[#allocation5 + $0x670] sm:$0xff]  ;;  %v424_v7 = vld [vmem:[#allocation5 + $0x6a8] sm:$0xff] }
 0x12d   :  { %2299 = vmatpush1.bf16.msra.mxu1 %v2298_v15  ;;  %2109 = vmatprep.subr.bf16.mxu0 %v2108_v16  ;;  %v2128_v15 = vpack.c.bf16 %v384_v9, %v380_v8  ;;  %v379_v16 = vld [vmem:[#allocation5 + $0x540] sm:$0xff]  ;;  %v2336_v4 = vpack.c.bf16 %v418_v60, %v414_v59  ;;  %v422_v8 = vld [vmem:[#allocation5 + $0x698] sm:$0xff]  ;;  %v2338_v12 = vpack.c.bf16 %v417_v5, %v413_v3  ;;  %v449_v54 = vld [vmem:[#allocation5 + $0x770] sm:$0xff] }
 0x12e   :  { %2301 = vmatprep.subr.bf16.mxu1 %v2300_v20  ;;  %v385_v20 = vld [vmem:[#allocation5 + $0x570] sm:$0xff]  ;;  %v2130_v27 = vpack.c.bf16 %v383_v17, %v379_v16  ;;  %v426_v9 = vld [vmem:[#allocation5 + $0x6b8] sm:$0xff]  ;;  %v464_v5 = vld [vmem:[#allocation5 + $0x7e8] sm:$0xff] }
 0x12f   :  { %715 = vmatmul.mubr.f32.vlgmr.msra.gmra.mrb[0].mxu0 %v3320_v25  ;;  %v421_v16 = vld [vmem:[#allocation5 + $0x690] sm:$0xff]  ;;  %v2340_v17 = vpack.c.bf16 %v426_v9, %v422_v8 }
 0x130   :  { %2111 = vmatpush1.bf16.msra.mxu0 %v2110_v28  ;;  %928 = vmatmul.mubr.f32.vlgmr.msra.gmra.mrb[0].mxu1 %v3320_v25  ;;  %v2310_v25 = vpack.c.bf16 %v361_v47, %v357_v45  ;;  %v2322_v28 = vpack.c.bf16 %v385_v20, %v381_v18  ;;  %v401_v45 = vld [vmem:[#allocation5 + $0x5f0] sm:$0xff]  ;;  %v408_v47 = vld [vmem:[#allocation5 + $0x628] sm:$0xff] }
 0x131   :  { %2303 = vmatpush1.bf16.msra.mxu1 %v2302_v29  ;;  %2113 = vmatprep.subr.bf16.mxu0 %v2112_v30  ;;  %v2132_v29 = vpack.c.bf16 %v392_v23, %v388_v21  ;;  %v387_v30 = vld [vmem:[#allocation5 + $0x580] sm:$0xff]  ;;  %v2330_v51 = vpack.c.bf16 %v401_v45, %v397_v43  ;;  %v425_v18 = vld [vmem:[#allocation5 + $0x6b0] sm:$0xff]  ;;  %v432_v20 = vld [vmem:[#allocation5 + $0x6e8] sm:$0xff] }
 0x132   :  { %2305 = vmatprep.subr.bf16.mxu1 %v2304_v34  ;;  %785 = vmatprep.mubr.f32.mxu0 %v635_v11  ;;  %v393_v34 = vld [vmem:[#allocation5 + $0x5b0] sm:$0xff]  ;;  %v2134_v38 = vpack.c.bf16 %v391_v31, %v387_v30  ;;  %v430_v21 = vld [vmem:[#allocation5 + $0x6d8] sm:$0xff]  ;;  %v2342_v26 = vpack.c.bf16 %v425_v18, %v421_v16  ;;  %v448_v45 = vld [vmem:[#allocation5 + $0x768] sm:$0xff] }
 0x133   :  { %998 = vmatprep.mubr.f32.mxu1 %v635_v11  ;;  %v402_v11 = vld [vmem:[#allocation5 + $0x5f8] sm:$0xff]  ;;  %v2326_v39 = vpack.c.bf16 %v393_v34, %v389_v32  ;;  %v429_v30 = vld [vmem:[#allocation5 + $0x6d0] sm:$0xff]  ;;  %v440_v34 = vld [vmem:[#allocation5 + $0x728] sm:$0xff] }
 0x134   :  { %2115 = vmatpush1.bf16.msra.mxu0 %v2114_v40  ;;  %v2136_v40 = vpack.c.bf16 %v400_v36, %v396_v35  ;;  %v2328_v44 = vpack.c.bf16 %v402_v11, %v398_v37  ;;  %v434_v23 = vld [vmem:[#allocation5 + $0x6f8] sm:$0xff]  ;;  %v433_v32 = vld [vmem:[#allocation5 + $0x6f0] sm:$0xff]  ;;  %v472_v18 = vld [vmem:[#allocation5 + $0x828] sm:$0xff] }
 0x135   :  { %2307 = vmatpush1.bf16.msra.mxu1 %v2306_v41  ;;  %2117 = vmatprep.subr.bf16.mxu0 %v2116_v42  ;;  %v395_v41 = vld [vmem:[#allocation5 + $0x5c0] sm:$0xff]  ;;  %v2344_v31 = vpack.c.bf16 %v434_v23, %v430_v21  ;;  %v438_v35 = vld [vmem:[#allocation5 + $0x718] sm:$0xff]  ;;  %v2346_v11 = vpack.c.bf16 %v433_v32, %v429_v30  ;;  %v441_v43 = vld [vmem:[#allocation5 + $0x730] sm:$0xff] }
 0x136   :  { %2309 = vmatprep.subr.bf16.mxu1 %v2308_v46  ;;  %v399_v42 = vld [vmem:[#allocation5 + $0x5e0] sm:$0xff]  ;;  %v404_v46 = vld [vmem:[#allocation5 + $0x608] sm:$0xff]  ;;  %v442_v36 = vld [vmem:[#allocation5 + $0x738] sm:$0xff] }
 0x137   :  { %v2138_v50 = vpack.c.bf16 %v399_v42, %v395_v41  ;;  %v437_v41 = vld [vmem:[#allocation5 + $0x710] sm:$0xff]  ;;  %v2348_v42 = vpack.c.bf16 %v442_v36, %v438_v35  ;;  %v480_v32 = vld [vmem:[#allocation5 + $0x868] sm:$0xff] }
 0x138   :  { %2119 = vmatpush1.bf16.msra.mxu0 %v2118_v52  ;;  %v2140_v52 = vpack.c.bf16 %v408_v47, %v404_v46  ;;  %v446_v46 = vld [vmem:[#allocation5 + $0x758] sm:$0xff]  ;;  %v2350_v49 = vpack.c.bf16 %v441_v43, %v437_v41  ;;  %v457_v3 = vld [vmem:[#allocation5 + $0x7b0] sm:$0xff]  ;;  %v3336_v36 = vld.sshfl [vmem:[%s3517_s0 + $0x8] sm:$0x33 pattern:$0x76325410] }
 0x139   :  { %2311 = vmatpush1.bf16.msra.mxu1 %v2310_v25  ;;  %2121 = vmatprep.subr.bf16.mxu0 %v2120_v53  ;;  %v403_v25 = vld [vmem:[#allocation5 + $0x600] sm:$0xff]  ;;  %v450_v47 = vld [vmem:[#allocation5 + $0x778] sm:$0xff]  ;;  %v465_v16 = vld [vmem:[#allocation5 + $0x7f0] sm:$0xff] }
 0x13a   :  { %2313 = vmatprep.subr.bf16.mxu1 %v2312_v57  ;;  %v407_v53 = vld [vmem:[#allocation5 + $0x620] sm:$0xff]  ;;  %v412_v57 = vld [vmem:[#allocation5 + $0x648] sm:$0xff]  ;;  %v473_v30 = vld [vmem:[#allocation5 + $0x830] sm:$0xff] }
 0x13b   :  { %v2142_v62 = vpack.c.bf16 %v407_v53, %v403_v25  ;;  %v445_v25 = vld [vmem:[#allocation5 + $0x750] sm:$0xff]  ;;  %v2352_v53 = vpack.c.bf16 %v450_v47, %v446_v46  ;;  %v484_v43 = vld [vmem:[#allocation5 + $0x888] sm:$0xff]  ;;  %v486_v46 = vld [vmem:[#allocation5 + $0x898] sm:$0xff] }
 0x13c   :  { %2123 = vmatpush1.bf16.msra.mxu0 %v2122_v0  ;;  %v2144_v0 = vpack.c.bf16 %v416_v58, %v412_v57  ;;  %v454_v57 = vld [vmem:[#allocation5 + $0x798] sm:$0xff]  ;;  %v2354_v60 = vpack.c.bf16 %v449_v54, %v445_v25  ;;  %v485_v25 = vld [vmem:[#allocation5 + $0x890] sm:$0xff] }
 0x13d   :  { %2315 = vmatpush1.bf16.msra.mxu1 %v2314_v1  ;;  %2125 = vmatprep.subr.bf16.mxu0 %v2124_v2  ;;  %v411_v1 = vld [vmem:[#allocation5 + $0x640] sm:$0xff]  ;;  %v458_v58 = vld [vmem:[#allocation5 + $0x7b8] sm:$0xff]  ;;  %v489_v54 = vld [vmem:[#allocation5 + $0x8b0] sm:$0xff] }
 0x13e   :  { %2317 = vmatprep.subr.bf16.mxu1 %v2316_v6  ;;  %v415_v2 = vld [vmem:[#allocation5 + $0x660] sm:$0xff]  ;;  %v420_v6 = vld [vmem:[#allocation5 + $0x688] sm:$0xff]  ;;  %v490_v47 = vld [vmem:[#allocation5 + $0x8b8] sm:$0xff] }
 0x13f   :  { %v2146_v10 = vpack.c.bf16 %v415_v2, %v411_v1  ;;  %v453_v1 = vld [vmem:[#allocation5 + $0x790] sm:$0xff]  ;;  %v2356_v2 = vpack.c.bf16 %v458_v58, %v454_v57  ;;  %v494_v57 = vld [vmem:[#allocation5 + $0x8d8] sm:$0xff] }
 0x140   :  { %2127 = vmatpush1.bf16.msra.mxu0 %v2126_v13  ;;  %v2148_v13 = vpack.c.bf16 %v424_v7, %v420_v6  ;;  %v462_v6 = vld [vmem:[#allocation5 + $0x7d8] sm:$0xff]  ;;  %v2358_v9 = vpack.c.bf16 %v457_v3, %v453_v1  ;;  %v500_v3 = vld [vmem:[#allocation5 + $0x908] sm:$0xff] }
 0x141   :  { %2319 = vmatpush1.bf16.msra.mxu1 %v2318_v14  ;;  %2129 = vmatprep.subr.bf16.mxu0 %v2128_v15  ;;  %v419_v14 = vld [vmem:[#allocation5 + $0x680] sm:$0xff]  ;;  %v466_v7 = vld [vmem:[#allocation5 + $0x7f8] sm:$0xff] }
 0x142   :  { %2321 = vmatprep.subr.bf16.mxu1 %v2320_v19  ;;  %v423_v15 = vld [vmem:[#allocation5 + $0x6a0] sm:$0xff]  ;;  %v428_v19 = vld [vmem:[#allocation5 + $0x6c8] sm:$0xff]  ;;  %v498_v58 = vld [vmem:[#allocation5 + $0x8f8] sm:$0xff] }
 0x143   :  { %v2150_v24 = vpack.c.bf16 %v423_v15, %v419_v14  ;;  %v461_v14 = vld [vmem:[#allocation5 + $0x7d0] sm:$0xff]  ;;  %v2360_v15 = vpack.c.bf16 %v466_v7, %v462_v6  ;;  %v2376_v1 = vpack.c.bf16 %v498_v58, %v494_v57  ;;  %v506_v6 = vld [vmem:[#allocation5 + $0x938] sm:$0xff] }
 0x144   :  { %2131 = vmatpush1.bf16.msra.mxu0 %v2130_v27  ;;  %v2152_v27 = vpack.c.bf16 %v432_v20, %v428_v19  ;;  %v470_v19 = vld [vmem:[#allocation5 + $0x818] sm:$0xff]  ;;  %v2362_v23 = vpack.c.bf16 %v465_v16, %v461_v14  ;;  %v508_v16 = vld [vmem:[#allocation5 + $0x948] sm:$0xff] }
 0x145   :  { %2323 = vmatpush1.bf16.msra.mxu1 %v2322_v28  ;;  %2133 = vmatprep.subr.bf16.mxu0 %v2132_v29  ;;  %v427_v28 = vld [vmem:[#allocation5 + $0x6c0] sm:$0xff]  ;;  %v474_v20 = vld [vmem:[#allocation5 + $0x838] sm:$0xff] }
 0x146   :  { %2325 = vmatprep.subr.bf16.mxu1 %v2324_v33  ;;  %v431_v29 = vld [vmem:[#allocation5 + $0x6e0] sm:$0xff]  ;;  %v436_v33 = vld [vmem:[#allocation5 + $0x708] sm:$0xff] }
 0x147   :  { %v2154_v37 = vpack.c.bf16 %v431_v29, %v427_v28  ;;  %v469_v28 = vld [vmem:[#allocation5 + $0x810] sm:$0xff]  ;;  %v2364_v29 = vpack.c.bf16 %v474_v20, %v470_v19  ;;  %v514_v19 = vld [vmem:[#allocation5 + $0x978] sm:$0xff] }
 0x148   :  { %2135 = vmatpush1.bf16.msra.mxu0 %v2134_v38  ;;  %v2156_v38 = vpack.c.bf16 %v440_v34, %v436_v33  ;;  %v478_v33 = vld [vmem:[#allocation5 + $0x858] sm:$0xff] }
 0x149   :  { %2327 = vmatpush1.bf16.msra.mxu1 %v2326_v39  ;;  %2137 = vmatprep.subr.bf16.mxu0 %v2136_v40  ;;  %v435_v39 = vld [vmem:[#allocation5 + $0x700] sm:$0xff]  ;;  %v482_v34 = vld [vmem:[#allocation5 + $0x878] sm:$0xff] }
 0x14a   :  { %2329 = vmatprep.subr.bf16.mxu1 %v2328_v44  ;;  %v439_v40 = vld [vmem:[#allocation5 + $0x720] sm:$0xff]  ;;  %v444_v44 = vld [vmem:[#allocation5 + $0x748] sm:$0xff]  ;;  %v2368_v41 = vpack.c.bf16 %v482_v34, %v478_v33  ;;  %v522_v33 = vld [vmem:[#allocation5 + $0x9b8] sm:$0xff] }
 0x14b   :  { %v2158_v48 = vpack.c.bf16 %v439_v40, %v435_v39  ;;  %v479_v39 = vld [vmem:[#allocation5 + $0x860] sm:$0xff]  ;;  %v477_v40 = vld [vmem:[#allocation5 + $0x850] sm:$0xff] }
 0x14c   :  { %2139 = vmatpush1.bf16.msra.mxu0 %v2138_v50  ;;  %v2160_v50 = vpack.c.bf16 %v448_v45, %v444_v44  ;;  %v488_v44 = vld [vmem:[#allocation5 + $0x8a8] sm:$0xff]  ;;  %v643_v45 = vcombine.high %v3336_v36, %v3336_v36 }
 0x14d   :  { %2331 = vmatpush1.bf16.msra.mxu1 %v2330_v51  ;;  %2141 = vmatprep.subr.bf16.mxu0 %v2140_v52  ;;  %v443_v51 = vld [vmem:[#allocation5 + $0x740] sm:$0xff] }
 0x14e   :  { %2333 = vmatprep.subr.bf16.mxu1 %v2332_v55  ;;  %v447_v52 = vld [vmem:[#allocation5 + $0x760] sm:$0xff]  ;;  %v452_v55 = vld [vmem:[#allocation5 + $0x788] sm:$0xff] }
 0x14f   :  { %v2162_v59 = vpack.c.bf16 %v447_v52, %v443_v51  ;;  %v483_v51 = vld [vmem:[#allocation5 + $0x880] sm:$0xff] }
 0x150   :  { %2143 = vmatpush1.bf16.msra.mxu0 %v2142_v62  ;;  %v2164_v62 = vpack.c.bf16 %v456_v56, %v452_v55  ;;  %v487_v52 = vld [vmem:[#allocation5 + $0x8a0] sm:$0xff]  ;;  %v492_v55 = vld [vmem:[#allocation5 + $0x8c8] sm:$0xff] }
 0x151   :  { %2335 = vmatpush1.bf16.msra.mxu1 %v2334_v63  ;;  %2145 = vmatprep.subr.bf16.mxu0 %v2144_v0  ;;  %v451_v63 = vld [vmem:[#allocation5 + $0x780] sm:$0xff]  ;;  %v496_v56 = vld [vmem:[#allocation5 + $0x8e8] sm:$0xff] }
 0x152   :  { %2337 = vmatprep.subr.bf16.mxu1 %v2336_v4  ;;  %v455_v0 = vld [vmem:[#allocation5 + $0x7a0] sm:$0xff]  ;;  %v460_v4 = vld [vmem:[#allocation5 + $0x7c8] sm:$0xff] }
 0x153   :  { %v2166_v8 = vpack.c.bf16 %v455_v0, %v451_v63  ;;  %v495_v63 = vld [vmem:[#allocation5 + $0x8e0] sm:$0xff]  ;;  %v493_v0 = vld [vmem:[#allocation5 + $0x8d0] sm:$0xff] }
 0x154   :  { %2147 = vmatpush1.bf16.msra.mxu0 %v2146_v10  ;;  %v2168_v10 = vpack.c.bf16 %v464_v5, %v460_v4  ;;  %v504_v4 = vld [vmem:[#allocation5 + $0x928] sm:$0xff]  ;;  %v502_v5 = vld [vmem:[#allocation5 + $0x918] sm:$0xff] }
 0x155   :  { %2339 = vmatpush1.bf16.msra.mxu1 %v2338_v12  ;;  %2149 = vmatprep.subr.bf16.mxu0 %v2148_v13  ;;  %v459_v12 = vld [vmem:[#allocation5 + $0x7c0] sm:$0xff]  ;;  %v2380_v14 = vpack.c.bf16 %v506_v6, %v502_v5 }
 0x156   :  { %2341 = vmatprep.subr.bf16.mxu1 %v2340_v17  ;;  %v463_v13 = vld [vmem:[#allocation5 + $0x7e0] sm:$0xff]  ;;  %v468_v17 = vld [vmem:[#allocation5 + $0x808] sm:$0xff] }
 0x157   :  { %v2170_v21 = vpack.c.bf16 %v463_v13, %v459_v12  ;;  %v503_v12 = vld [vmem:[#allocation5 + $0x920] sm:$0xff]  ;;  %v501_v13 = vld [vmem:[#allocation5 + $0x910] sm:$0xff] }
 0x158   :  { %2151 = vmatpush1.bf16.msra.mxu0 %v2150_v24  ;;  %v2172_v24 = vpack.c.bf16 %v472_v18, %v468_v17  ;;  %v512_v17 = vld [vmem:[#allocation5 + $0x968] sm:$0xff]  ;;  %v510_v18 = vld [vmem:[#allocation5 + $0x958] sm:$0xff] }
 0x159   :  { %2343 = vmatpush1.bf16.msra.mxu1 %v2342_v26  ;;  %2153 = vmatprep.subr.bf16.mxu0 %v2152_v27  ;;  %v467_v26 = vld [vmem:[#allocation5 + $0x800] sm:$0xff] }
 0x15a   :  { %2345 = vmatprep.subr.bf16.mxu1 %v2344_v31  ;;  %v471_v27 = vld [vmem:[#allocation5 + $0x820] sm:$0xff]  ;;  %v476_v31 = vld [vmem:[#allocation5 + $0x848] sm:$0xff] }
 0x15b   :  { %v2174_v35 = vpack.c.bf16 %v471_v27, %v467_v26  ;;  %v511_v26 = vld [vmem:[#allocation5 + $0x960] sm:$0xff]  ;;  %v509_v27 = vld [vmem:[#allocation5 + $0x950] sm:$0xff] }
 0x15c   :  { %2155 = vmatpush1.bf16.msra.mxu0 %v2154_v37  ;;  %v2366_v37 = vpack.c.bf16 %v473_v30, %v469_v28  ;;  %v2384_v28 = vpack.c.bf16 %v514_v19, %v510_v18  ;;  %v516_v30 = vld [vmem:[#allocation5 + $0x988] sm:$0xff] }
 0x15d   :  { %2347 = vmatpush1.bf16.msra.mxu1 %v2346_v11  ;;  %2157 = vmatprep.subr.bf16.mxu0 %v2156_v38  ;;  %v2176_v11 = vpack.c.bf16 %v480_v32, %v476_v31  ;;  %v475_v38 = vld [vmem:[#allocation5 + $0x840] sm:$0xff]  ;;  %v520_v31 = vld [vmem:[#allocation5 + $0x9a8] sm:$0xff]  ;;  %v518_v32 = vld [vmem:[#allocation5 + $0x998] sm:$0xff] }
 0x15e   :  { %2349 = vmatprep.subr.bf16.mxu1 %v2348_v42  ;;  %v481_v42 = vld [vmem:[#allocation5 + $0x870] sm:$0xff] }
 0x160   :  { %2159 = vmatpush1.bf16.msra.mxu0 %v2158_v48  ;;  %v2178_v48 = vpack.c.bf16 %v479_v39, %v475_v38  ;;  %v519_v38 = vld [vmem:[#allocation5 + $0x9a0] sm:$0xff]  ;;  %v517_v39 = vld [vmem:[#allocation5 + $0x990] sm:$0xff] }
 0x161   :  { %2351 = vmatpush1.bf16.msra.mxu1 %v2350_v49  ;;  %2161 = vmatprep.subr.bf16.mxu0 %v2160_v50  ;;  %v2370_v49 = vpack.c.bf16 %v481_v42, %v477_v40  ;;  %v2180_v50 = vpack.c.bf16 %v488_v44, %v484_v43  ;;  %v2388_v40 = vpack.c.bf16 %v522_v33, %v518_v32  ;;  %v524_v42 = vld [vmem:[#allocation5 + $0x9c8] sm:$0xff]  ;;  %v526_v44 = vld [vmem:[#allocation5 + $0x9d8] sm:$0xff] }
 0x162   :  { %2353 = vmatprep.subr.bf16.mxu1 %v2352_v53  ;;  %v2372_v53 = vpack.c.bf16 %v490_v47, %v486_v46  ;;  %v528_v43 = vld [vmem:[#allocation5 + $0x9e8] sm:$0xff] }
 0x164   :  { %2163 = vmatpush1.bf16.msra.mxu0 %v2162_v59  ;;  %v2182_v59 = vpack.c.bf16 %v487_v52, %v483_v51  ;;  %v525_v51 = vld [vmem:[#allocation5 + $0x9d0] sm:$0xff] }
 0x165   :  { %2355 = vmatpush1.bf16.msra.mxu1 %v2354_v60  ;;  %2165 = vmatprep.subr.bf16.mxu0 %v2164_v62  ;;  %v2184_v60 = vpack.c.bf16 %v496_v56, %v492_v55  ;;  %v491_v62 = vld [vmem:[#allocation5 + $0x8c0] sm:$0xff]  ;;  %v534_v55 = vld [vmem:[#allocation5 + $0xa18] sm:$0xff] }
 0x166   :  { %2357 = vmatprep.subr.bf16.mxu1 %v2356_v2  ;;  %v497_v2 = vld [vmem:[#allocation5 + $0x8f0] sm:$0xff]  ;;  %v2186_v7 = vpack.c.bf16 %v495_v63, %v491_v62  ;;  %v538_v56 = vld [vmem:[#allocation5 + $0xa38] sm:$0xff] }
 0x167   :  { %v533_v62 = vld [vmem:[#allocation5 + $0xa10] sm:$0xff]  ;;  %v2396_v63 = vpack.c.bf16 %v538_v56, %v534_v55 }
 0x168   :  { %2167 = vmatpush1.bf16.msra.mxu0 %v2166_v8  ;;  %v2378_v8 = vpack.c.bf16 %v497_v2, %v493_v0  ;;  %v537_v0 = vld [vmem:[#allocation5 + $0xa30] sm:$0xff]  ;;  %v544_v2 = vld [vmem:[#allocation5 + $0xa68] sm:$0xff] }
 0x169   :  { %2359 = vmatpush1.bf16.msra.mxu1 %v2358_v9  ;;  %2169 = vmatprep.subr.bf16.mxu0 %v2168_v10  ;;  %v2188_v9 = vpack.c.bf16 %v504_v4, %v500_v3  ;;  %v499_v10 = vld [vmem:[#allocation5 + $0x900] sm:$0xff]  ;;  %v542_v3 = vld [vmem:[#allocation5 + $0xa58] sm:$0xff]  ;;  %v2398_v6 = vpack.c.bf16 %v537_v0, %v533_v62  ;;  %v577_v62 = vld [vmem:[#allocation5 + $0xb70] sm:$0xff] }
 0x16a   :  { %2361 = vmatprep.subr.bf16.mxu1 %v2360_v15  ;;  %v505_v15 = vld [vmem:[#allocation5 + $0x930] sm:$0xff]  ;;  %v2190_v20 = vpack.c.bf16 %v503_v12, %v499_v10  ;;  %v546_v4 = vld [vmem:[#allocation5 + $0xa78] sm:$0xff]  ;;  %v584_v0 = vld [vmem:[#allocation5 + $0xba8] sm:$0xff] }
 0x16b   :  { %v541_v10 = vld [vmem:[#allocation5 + $0xa50] sm:$0xff]  ;;  %v2400_v12 = vpack.c.bf16 %v546_v4, %v542_v3 }
 0x16c   :  { %2171 = vmatpush1.bf16.msra.mxu0 %v2170_v21  ;;  %v2382_v21 = vpack.c.bf16 %v505_v15, %v501_v13  ;;  %v545_v13 = vld [vmem:[#allocation5 + $0xa70] sm:$0xff]  ;;  %v552_v15 = vld [vmem:[#allocation5 + $0xaa8] sm:$0xff] }
 0x16d   :  { %2363 = vmatpush1.bf16.msra.mxu1 %v2362_v23  ;;  %2173 = vmatprep.subr.bf16.mxu0 %v2172_v24  ;;  %v2192_v23 = vpack.c.bf16 %v512_v17, %v508_v16  ;;  %v507_v24 = vld [vmem:[#allocation5 + $0x940] sm:$0xff]  ;;  %v550_v16 = vld [vmem:[#allocation5 + $0xa98] sm:$0xff]  ;;  %v2402_v19 = vpack.c.bf16 %v545_v13, %v541_v10  ;;  %v585_v10 = vld [vmem:[#allocation5 + $0xbb0] sm:$0xff] }
 0x16e   :  { %2365 = vmatprep.subr.bf16.mxu1 %v2364_v29  ;;  %v513_v29 = vld [vmem:[#allocation5 + $0x970] sm:$0xff]  ;;  %v2194_v34 = vpack.c.bf16 %v511_v26, %v507_v24  ;;  %v554_v17 = vld [vmem:[#allocation5 + $0xab8] sm:$0xff]  ;;  %v592_v13 = vld [vmem:[#allocation5 + $0xbe8] sm:$0xff] }
 0x16f   :  { %786 = vmatmul.mubr.f32.vlgmr.msra.gmra.mrb[0].mxu0 %v3327_v22  ;;  %v549_v24 = vld [vmem:[#allocation5 + $0xa90] sm:$0xff]  ;;  %v2404_v26 = vpack.c.bf16 %v554_v17, %v550_v16 }
 0x170   :  { %2175 = vmatpush1.bf16.msra.mxu0 %v2174_v35  ;;  %999 = vmatmul.mubr.f32.vlgmr.msra.gmra.mrb[0].mxu1 %v3327_v22  ;;  %v2374_v22 = vpack.c.bf16 %v489_v54, %v485_v25  ;;  %v2386_v35 = vpack.c.bf16 %v513_v29, %v509_v27  ;;  %v529_v25 = vld [vmem:[#allocation5 + $0x9f0] sm:$0xff]  ;;  %v536_v54 = vld [vmem:[#allocation5 + $0xa28] sm:$0xff] }
 0x171   :  { %2367 = vmatpush1.bf16.msra.mxu1 %v2366_v37  ;;  %2177 = vmatprep.subr.bf16.mxu0 %v2176_v11  ;;  %v2196_v37 = vpack.c.bf16 %v520_v31, %v516_v30  ;;  %v515_v11 = vld [vmem:[#allocation5 + $0x980] sm:$0xff]  ;;  %v2394_v58 = vpack.c.bf16 %v529_v25, %v525_v51  ;;  %v553_v27 = vld [vmem:[#allocation5 + $0xab0] sm:$0xff]  ;;  %v560_v29 = vld [vmem:[#allocation5 + $0xae8] sm:$0xff] }
 0x172   :  { %2369 = vmatprep.subr.bf16.mxu1 %v2368_v41  ;;  %856 = vmatprep.mubr.f32.mxu0 %v643_v45  ;;  %v521_v41 = vld [vmem:[#allocation5 + $0x9b0] sm:$0xff]  ;;  %v2198_v46 = vpack.c.bf16 %v519_v38, %v515_v11  ;;  %v558_v30 = vld [vmem:[#allocation5 + $0xad8] sm:$0xff]  ;;  %v2406_v33 = vpack.c.bf16 %v553_v27, %v549_v24  ;;  %v576_v25 = vld [vmem:[#allocation5 + $0xb68] sm:$0xff] }
 0x173   :  { %1069 = vmatprep.mubr.f32.mxu1 %v643_v45  ;;  %v530_v45 = vld [vmem:[#allocation5 + $0x9f8] sm:$0xff]  ;;  %v2390_v47 = vpack.c.bf16 %v521_v41, %v517_v39  ;;  %v557_v11 = vld [vmem:[#allocation5 + $0xad0] sm:$0xff]  ;;  %v568_v41 = vld [vmem:[#allocation5 + $0xb28] sm:$0xff] }
 0x174   :  { %2179 = vmatpush1.bf16.msra.mxu0 %v2178_v48  ;;  %v2200_v48 = vpack.c.bf16 %v528_v43, %v524_v42  ;;  %v2392_v52 = vpack.c.bf16 %v530_v45, %v526_v44  ;;  %v562_v31 = vld [vmem:[#allocation5 + $0xaf8] sm:$0xff]  ;;  %v561_v39 = vld [vmem:[#allocation5 + $0xaf0] sm:$0xff] }
 0x175   :  { %2371 = vmatpush1.bf16.msra.mxu1 %v2370_v49  ;;  %2181 = vmatprep.subr.bf16.mxu0 %v2180_v50  ;;  %v523_v49 = vld [vmem:[#allocation5 + $0x9c0] sm:$0xff]  ;;  %v2408_v38 = vpack.c.bf16 %v562_v31, %v558_v30  ;;  %v566_v42 = vld [vmem:[#allocation5 + $0xb18] sm:$0xff]  ;;  %v2410_v45 = vpack.c.bf16 %v561_v39, %v557_v11  ;;  %v569_v51 = vld [vmem:[#allocation5 + $0xb30] sm:$0xff] }
 0x176   :  { %2373 = vmatprep.subr.bf16.mxu1 %v2372_v53  ;;  %v527_v50 = vld [vmem:[#allocation5 + $0x9e0] sm:$0xff]  ;;  %v532_v53 = vld [vmem:[#allocation5 + $0xa08] sm:$0xff]  ;;  %v570_v43 = vld [vmem:[#allocation5 + $0xb38] sm:$0xff] }
 0x177   :  { %v2202_v57 = vpack.c.bf16 %v527_v50, %v523_v49  ;;  %v565_v49 = vld [vmem:[#allocation5 + $0xb10] sm:$0xff]  ;;  %v2412_v50 = vpack.c.bf16 %v570_v43, %v566_v42  ;;  %v1091_v27 = vld [vmem:[#allocation8 + $0x18] sm:$0xff]  ;;  %v1088_v31 = vld [vmem:[#allocation8] sm:$0xff] }
 0x178   :  { %2183 = vmatpush1.bf16.msra.mxu0 %v2182_v59  ;;  %v2204_v59 = vpack.c.bf16 %v536_v54, %v532_v53  ;;  %v574_v53 = vld [vmem:[#allocation5 + $0xb58] sm:$0xff]  ;;  %v2414_v56 = vpack.c.bf16 %v569_v51, %v565_v49  ;;  %v593_v24 = vld [vmem:[#allocation5 + $0xbf0] sm:$0xff]  ;;  %v1092_v11 = vld [vmem:[#allocation8 + $0x20] sm:$0xff] }
 0x179   :  { %2375 = vmatpush1.bf16.msra.mxu1 %v2374_v22  ;;  %2185 = vmatprep.subr.bf16.mxu0 %v2184_v60  ;;  %v531_v22 = vld [vmem:[#allocation5 + $0xa00] sm:$0xff]  ;;  %v578_v54 = vld [vmem:[#allocation5 + $0xb78] sm:$0xff]  ;;  %v1097_v39 = vld [vmem:[#allocation8 + $0x48] sm:$0xff] }
 0x17a   :  { %2377 = vmatprep.subr.bf16.mxu1 %v2376_v1  ;;  %v535_v60 = vld [vmem:[#allocation5 + $0xa20] sm:$0xff]  ;;  %v540_v1 = vld [vmem:[#allocation5 + $0xa48] sm:$0xff] }
 0x17b   :  { %v2206_v5 = vpack.c.bf16 %v535_v60, %v531_v22  ;;  %v573_v22 = vld [vmem:[#allocation5 + $0xb50] sm:$0xff]  ;;  %v2416_v60 = vpack.c.bf16 %v578_v54, %v574_v53  ;;  %v1096_v43 = vld [vmem:[#allocation8 + $0x40] sm:$0xff] }
 0x17c   :  { %2187 = vmatpush1.bf16.msra.mxu0 %v2186_v7  ;;  %v2208_v7 = vpack.c.bf16 %v544_v2, %v540_v1  ;;  %v582_v1 = vld [vmem:[#allocation5 + $0xb98] sm:$0xff]  ;;  %v2418_v4 = vpack.c.bf16 %v577_v62, %v573_v22  ;;  %v1100_v49 = vld [vmem:[#allocation8 + $0x60] sm:$0xff]  ;;  %v1105_v51 = vld [vmem:[#allocation8 + $0x88] sm:$0xff] }
 0x17d   :  { %2379 = vmatpush1.bf16.msra.mxu1 %v2378_v8  ;;  %2189 = vmatprep.subr.bf16.mxu0 %v2188_v9  ;;  %v539_v8 = vld [vmem:[#allocation5 + $0xa40] sm:$0xff]  ;;  %v586_v2 = vld [vmem:[#allocation5 + $0xbb8] sm:$0xff] }
 0x17e   :  { %2381 = vmatprep.subr.bf16.mxu1 %v2380_v14  ;;  %v543_v9 = vld [vmem:[#allocation5 + $0xa60] sm:$0xff]  ;;  %v548_v14 = vld [vmem:[#allocation5 + $0xa88] sm:$0xff]  ;;  %v1106_v54 = vld [vmem:[#allocation8 + $0x90] sm:$0xff] }
 0x17f   :  { %v2210_v18 = vpack.c.bf16 %v543_v9, %v539_v8  ;;  %v581_v8 = vld [vmem:[#allocation5 + $0xb90] sm:$0xff]  ;;  %v2420_v9 = vpack.c.bf16 %v586_v2, %v582_v1  ;;  %v1104_v53 = vld [vmem:[#allocation8 + $0x80] sm:$0xff]  ;;  %v1115_v62 = vld [vmem:[#allocation8 + $0xd8] sm:$0xff] }
 0x180   :  { %2191 = vmatpush1.bf16.msra.mxu0 %v2190_v20  ;;  %v2212_v20 = vpack.c.bf16 %v552_v15, %v548_v14  ;;  %v590_v14 = vld [vmem:[#allocation5 + $0xbd8] sm:$0xff]  ;;  %v2422_v17 = vpack.c.bf16 %v585_v10, %v581_v8  ;;  %v1112_v1 = vld [vmem:[#allocation8 + $0xc0] sm:$0xff] }
 0x181   :  { %2383 = vmatpush1.bf16.msra.mxu1 %v2382_v21  ;;  %2193 = vmatprep.subr.bf16.mxu0 %v2192_v23  ;;  %v547_v21 = vld [vmem:[#allocation5 + $0xa80] sm:$0xff]  ;;  %v594_v15 = vld [vmem:[#allocation5 + $0xbf8] sm:$0xff] }
 0x182   :  { %2385 = vmatprep.subr.bf16.mxu1 %v2384_v28  ;;  %v551_v23 = vld [vmem:[#allocation5 + $0xaa0] sm:$0xff]  ;;  %v556_v28 = vld [vmem:[#allocation5 + $0xac8] sm:$0xff]  ;;  %v1110_v22 = vld [vmem:[#allocation8 + $0xb0] sm:$0xff] }
 0x183   :  { %v2214_v32 = vpack.c.bf16 %v551_v23, %v547_v21  ;;  %v589_v21 = vld [vmem:[#allocation5 + $0xbd0] sm:$0xff]  ;;  %v2424_v23 = vpack.c.bf16 %v594_v15, %v590_v14  ;;  %v1123_v10 = vld [vmem:[#allocation8 + $0x118] sm:$0xff]  ;;  %v1120_v14 = vld [vmem:[#allocation8 + $0x100] sm:$0xff] }
 0x184   :  { %2195 = vmatpush1.bf16.msra.mxu0 %v2194_v34  ;;  %v2216_v34 = vpack.c.bf16 %v560_v29, %v556_v28  ;;  %v2426_v29 = vpack.c.bf16 %v593_v24, %v589_v21  ;;  %v1114_v2 = vld [vmem:[#allocation8 + $0xd0] sm:$0xff]  ;;  %v1131_v24 = vld [vmem:[#allocation8 + $0x158] sm:$0xff] }
 0x185   :  { %2387 = vmatpush1.bf16.msra.mxu1 %v2386_v35  ;;  %2197 = vmatprep.subr.bf16.mxu0 %v2196_v37  ;;  %v555_v35 = vld [vmem:[#allocation5 + $0xac0] sm:$0xff]  ;;  %v1118_v8 = vld [vmem:[#allocation8 + $0xf0] sm:$0xff] }
 0x186   :  { %2389 = vmatprep.subr.bf16.mxu1 %v2388_v40  ;;  %v559_v37 = vld [vmem:[#allocation5 + $0xae0] sm:$0xff]  ;;  %v564_v40 = vld [vmem:[#allocation5 + $0xb08] sm:$0xff]  ;;  %v1122_v15 = vld [vmem:[#allocation8 + $0x110] sm:$0xff] }
 0x187   :  { %v2218_v44 = vpack.c.bf16 %v559_v37, %v555_v35  ;;  %v1126_v21 = vld [vmem:[#allocation8 + $0x130] sm:$0xff] }
 0x188   :  { %2199 = vmatpush1.bf16.msra.mxu0 %v2198_v46  ;;  %v2220_v46 = vpack.c.bf16 %v568_v41, %v564_v40  ;;  %v1099_v40 = vld [vmem:[#allocation8 + $0x58] sm:$0xff] }
 0x189   :  { %2391 = vmatpush1.bf16.msra.mxu1 %v2390_v47  ;;  %2201 = vmatprep.subr.bf16.mxu0 %v2200_v48  ;;  %v563_v47 = vld [vmem:[#allocation5 + $0xb00] sm:$0xff]  ;;  %v2436_v42 = vpack.c.bf16 %v1099_v40, %v1097_v39 }
 0x18a   :  { %2393 = vmatprep.subr.bf16.mxu1 %v2392_v52  ;;  %v567_v48 = vld [vmem:[#allocation5 + $0xb20] sm:$0xff]  ;;  %v572_v52 = vld [vmem:[#allocation5 + $0xb48] sm:$0xff] }
 0x18b   :  { %v2222_v55 = vpack.c.bf16 %v567_v48, %v563_v47  ;;  %v1136_v40 = vld [vmem:[#allocation8 + $0x180] sm:$0xff] }
 0x18c   :  { %2203 = vmatpush1.bf16.msra.mxu0 %v2202_v57  ;;  %v2224_v57 = vpack.c.bf16 %v576_v25, %v572_v52  ;;  %v1107_v52 = vld [vmem:[#allocation8 + $0x98] sm:$0xff] }
 0x18d   :  { %2395 = vmatpush1.bf16.msra.mxu1 %v2394_v58  ;;  %2205 = vmatprep.subr.bf16.mxu0 %v2204_v59  ;;  %v571_v58 = vld [vmem:[#allocation5 + $0xb40] sm:$0xff] }
 0x18e   :  { %2397 = vmatprep.subr.bf16.mxu1 %v2396_v63  ;;  %v575_v59 = vld [vmem:[#allocation5 + $0xb60] sm:$0xff]  ;;  %v580_v63 = vld [vmem:[#allocation5 + $0xb88] sm:$0xff] }
 0x18f   :  { %v2226_v3 = vpack.c.bf16 %v575_v59, %v571_v58  ;;  %v1108_v59 = vld [vmem:[#allocation8 + $0xa0] sm:$0xff] }
 0x190   :  { %2207 = vmatpush1.bf16.msra.mxu0 %v2206_v5  ;;  %v2228_v5 = vpack.c.bf16 %v584_v0, %v580_v63  ;;  %v2450_v63 = vpack.c.bf16 %v1110_v22, %v1108_v59  ;;  %v1153_v59 = vld [vmem:[#allocation8 + $0x208] sm:$0xff]  ;;  %v1155_v22 = vld [vmem:[#allocation8 + $0x218] sm:$0xff] }
 0x191   :  { %2399 = vmatpush1.bf16.msra.mxu1 %v2398_v6  ;;  %2209 = vmatprep.subr.bf16.mxu0 %v2208_v7  ;;  %v579_v6 = vld [vmem:[#allocation5 + $0xb80] sm:$0xff] }
 0x192   :  { %2401 = vmatprep.subr.bf16.mxu1 %v2400_v12  ;;  %v583_v7 = vld [vmem:[#allocation5 + $0xba0] sm:$0xff]  ;;  %v588_v12 = vld [vmem:[#allocation5 + $0xbc8] sm:$0xff] }
 0x193   :  { %v2230_v16 = vpack.c.bf16 %v583_v7, %v579_v6  ;;  %v1116_v7 = vld [vmem:[#allocation8 + $0xe0] sm:$0xff] }
 0x194   :  { %2211 = vmatpush1.bf16.msra.mxu0 %v2210_v18  ;;  %v2232_v18 = vpack.c.bf16 %v592_v13, %v588_v12  ;;  %v2458_v12 = vpack.c.bf16 %v1118_v8, %v1116_v7  ;;  %v1395_v8 = vld [vmem:[#allocation11 + $0x98] sm:$0xff] }
 0x195   :  { %2403 = vmatpush1.bf16.msra.mxu1 %v2402_v19  ;;  %2213 = vmatprep.subr.bf16.mxu0 %v2212_v20  ;;  %v587_v19 = vld [vmem:[#allocation5 + $0xbc0] sm:$0xff] }
 0x196   :  { %2405 = vmatprep.subr.bf16.mxu1 %v2404_v26  ;;  %v591_v20 = vld [vmem:[#allocation5 + $0xbe0] sm:$0xff]  ;;  %v1089_v26 = vld [vmem:[#allocation8 + $0x8] sm:$0xff] }
 0x197   :  { %v2234_v28 = vpack.c.bf16 %v591_v20, %v587_v19  ;;  %v2428_v30 = vpack.c.bf16 %v1091_v27, %v1089_v26  ;;  %v1124_v20 = vld [vmem:[#allocation8 + $0x120] sm:$0xff] }
 0x198   :  { %2215 = vmatpush1.bf16.msra.mxu0 %v2214_v32  ;;  %v1090_v32 = vld [vmem:[#allocation8 + $0x10] sm:$0xff]  ;;  %v2466_v26 = vpack.c.bf16 %v1126_v21, %v1124_v20 }
 0x199   :  { %2407 = vmatpush1.bf16.msra.mxu1 %v2406_v33  ;;  %2217 = vmatprep.subr.bf16.mxu0 %v2216_v34  ;;  %v1093_v33 = vld [vmem:[#allocation8 + $0x28] sm:$0xff]  ;;  %v1095_v34 = vld [vmem:[#allocation8 + $0x38] sm:$0xff]  ;;  %v2430_v35 = vpack.c.bf16 %v1090_v32, %v1088_v31 }
 0x19a   :  { %2409 = vmatprep.subr.bf16.mxu1 %v2408_v38  ;;  %v2432_v37 = vpack.c.bf16 %v1095_v34, %v1093_v33  ;;  %v1094_v38 = vld [vmem:[#allocation8 + $0x30] sm:$0xff]  ;;  %v1135_v31 = vld [vmem:[#allocation8 + $0x178] sm:$0xff]  ;;  %v1132_v34 = vld [vmem:[#allocation8 + $0x160] sm:$0xff] }
 0x19b   :  { %v2434_v41 = vpack.c.bf16 %v1094_v38, %v1092_v11  ;;  %v1139_v11 = vld [vmem:[#allocation8 + $0x198] sm:$0xff]  ;;  %v1381_v20 = vld [vmem:[#allocation11 + $0x28] sm:$0xff] }
 0x19c   :  { %2219 = vmatpush1.bf16.msra.mxu0 %v2218_v44  ;;  %v1098_v44 = vld [vmem:[#allocation8 + $0x50] sm:$0xff] }
 0x19d   :  { %2411 = vmatpush1.bf16.msra.mxu1 %v2410_v45  ;;  %2221 = vmatprep.subr.bf16.mxu0 %v2220_v46  ;;  %v1101_v45 = vld [vmem:[#allocation8 + $0x68] sm:$0xff]  ;;  %v1103_v46 = vld [vmem:[#allocation8 + $0x78] sm:$0xff]  ;;  %v2438_v47 = vpack.c.bf16 %v1098_v44, %v1096_v43 }
 0x19e   :  { %2413 = vmatprep.subr.bf16.mxu1 %v2412_v50  ;;  %v2440_v48 = vpack.c.bf16 %v1103_v46, %v1101_v45  ;;  %v1102_v50 = vld [vmem:[#allocation8 + $0x70] sm:$0xff]  ;;  %v1143_v43 = vld [vmem:[#allocation8 + $0x1b8] sm:$0xff]  ;;  %v1140_v46 = vld [vmem:[#allocation8 + $0x1a0] sm:$0xff] }
 0x19f   :  { %v2442_v25 = vpack.c.bf16 %v1102_v50, %v1100_v49  ;;  %v1147_v49 = vld [vmem:[#allocation8 + $0x1d8] sm:$0xff] }
 0x1a0   :  { %2223 = vmatpush1.bf16.msra.mxu0 %v2222_v55  ;;  %v1109_v55 = vld [vmem:[#allocation8 + $0xa8] sm:$0xff]  ;;  %v1398_v21 = vld [vmem:[#allocation11 + $0xb0] sm:$0xff] }
 0x1a1   :  { %2415 = vmatpush1.bf16.msra.mxu1 %v2414_v56  ;;  %2225 = vmatprep.subr.bf16.mxu0 %v2224_v57  ;;  %v1111_v56 = vld [vmem:[#allocation8 + $0xb8] sm:$0xff]  ;;  %v2446_v57 = vpack.c.bf16 %v1106_v54, %v1104_v53  ;;  %v1149_v53 = vld [vmem:[#allocation8 + $0x1e8] sm:$0xff] }
 0x1a2   :  { %2417 = vmatprep.subr.bf16.mxu1 %v2416_v60  ;;  %v2448_v58 = vpack.c.bf16 %v1111_v56, %v1109_v55  ;;  %v1113_v60 = vld [vmem:[#allocation8 + $0xc8] sm:$0xff]  ;;  %v1151_v54 = vld [vmem:[#allocation8 + $0x1f8] sm:$0xff]  ;;  %v1148_v56 = vld [vmem:[#allocation8 + $0x1e0] sm:$0xff] }
 0x1a3   :  { %v2452_v0 = vpack.c.bf16 %v1115_v62, %v1113_v60  ;;  %v2488_v55 = vpack.c.bf16 %v1151_v54, %v1149_v53  ;;  %v2492_v60 = vpack.c.bf16 %v1155_v22, %v1153_v59  ;;  %v3344_v62 = vld [vmem:[#allocation2] sm:$0x3] }
 0x1a4   :  { %2227 = vmatpush1.bf16.msra.mxu0 %v2226_v3  ;;  %v1117_v3 = vld [vmem:[#allocation8 + $0xe8] sm:$0xff] }
 0x1a5   :  { %2419 = vmatpush1.bf16.msra.mxu1 %v2418_v4  ;;  %2229 = vmatprep.subr.bf16.mxu0 %v2228_v5  ;;  %v1119_v4 = vld [vmem:[#allocation8 + $0xf8] sm:$0xff]  ;;  %v2454_v5 = vpack.c.bf16 %v1114_v2, %v1112_v1  ;;  %v1392_v1 = vld [vmem:[#allocation11 + $0x80] sm:$0xff]  ;;  %v1393_v2 = vld [vmem:[#allocation11 + $0x88] sm:$0xff] }
 0x1a6   :  { %2421 = vmatprep.subr.bf16.mxu1 %v2420_v9  ;;  %v2456_v6 = vpack.c.bf16 %v1119_v4, %v1117_v3  ;;  %v1121_v9 = vld [vmem:[#allocation8 + $0x108] sm:$0xff]  ;;  %v2556_v3 = vpack.c.bf16 %v1393_v2, %v1392_v1 }
 0x1a7   :  { %v2460_v13 = vpack.c.bf16 %v1123_v10, %v1121_v9  ;;  %v1376_v4 = vld [vmem:[#allocation11] sm:$0xff]  ;;  %v1378_v9 = vld [vmem:[#allocation11 + $0x10] sm:$0xff]  ;;  %v1379_v10 = vld [vmem:[#allocation11 + $0x18] sm:$0xff] }
 0x1a8   :  { %2231 = vmatpush1.bf16.msra.mxu0 %v2230_v16  ;;  %v1125_v16 = vld [vmem:[#allocation8 + $0x128] sm:$0xff] }
 0x1a9   :  { %2423 = vmatpush1.bf16.msra.mxu1 %v2422_v17  ;;  %2233 = vmatprep.subr.bf16.mxu0 %v2232_v18  ;;  %v1127_v17 = vld [vmem:[#allocation8 + $0x138] sm:$0xff]  ;;  %v2462_v18 = vpack.c.bf16 %v1122_v15, %v1120_v14  ;;  %v1397_v14 = vld [vmem:[#allocation11 + $0xa8] sm:$0xff]  ;;  %v2562_v15 = vpack.c.bf16 %v1379_v10, %v1378_v9 }
 0x1aa   :  { %2425 = vmatprep.subr.bf16.mxu1 %v2424_v23  ;;  %v2464_v19 = vpack.c.bf16 %v1127_v17, %v1125_v16  ;;  %v1129_v23 = vld [vmem:[#allocation8 + $0x148] sm:$0xff]  ;;  %v3048_v16 = vmov 3   ;;  %v3049_v17 = vmov 1   ;;  %v1163_v10 = vld [vmem:[#allocation8 + $0x258] sm:$0xff] }
 0x1ab   :  { %v2468_v27 = vpack.c.bf16 %v1131_v24, %v1129_v23  ;;  %v1399_v23 = vld [vmem:[#allocation11 + $0xb8] sm:$0xff]  ;;  %v1161_v9 = vld [vmem:[#allocation8 + $0x248] sm:$0xff] }
 0x1ac   :  { %2235 = vmatpush1.bf16.msra.mxu0 %v2234_v28  ;;  %v1128_v28 = vld [vmem:[#allocation8 + $0x140] sm:$0xff] }
 0x1ad   :  { %2427 = vmatpush1.bf16.msra.mxu1 %v2426_v29  ;;  %2429 = vmatprep.subr.bf16.mxu0 %v2428_v30  ;;  %v1130_v29 = vld [vmem:[#allocation8 + $0x150] sm:$0xff]  ;;  %v1133_v30 = vld [vmem:[#allocation8 + $0x168] sm:$0xff] }
 0x1ae   :  { %v2470_v32 = vpack.c.bf16 %v1130_v29, %v1128_v28  ;;  %v2472_v33 = vpack.c.bf16 %v1135_v31, %v1133_v30  ;;  %2557 = vmatprep.subr.bf16.mxu1 %v2556_v3  ;;  %v1383_v28 = vld [vmem:[#allocation11 + $0x38] sm:$0xff]  ;;  %v3050_v29 = vmov 4   ;;  %v3051_v30 = vmov 5   ;;  %v1400_v31 = vld [vmem:[#allocation11 + $0xc0] sm:$0xff] }
 0x1af   :  { %857 = vmatmul.mubr.f32.vlgmr.msra.gmra.mrb[0].mxu0 %v3336_v36 }
 0x1b0   :  { %1070 = vmatmul.mubr.f32.vlgmr.msra.gmra.mrb[0].mxu1 %v3336_v36  ;;  %2431 = vmatpush1.bf16.msra.mxu0 %v2430_v35  ;;  %v2444_v36 = vpack.c.bf16 %v1107_v52, %v1105_v51  ;;  %v1134_v35 = vld [vmem:[#allocation8 + $0x170] sm:$0xff]  ;;  %v1144_v52 = vld [vmem:[#allocation8 + $0x1c0] sm:$0xff] }
 0x1b1   :  { %2433 = vmatprep.subr.bf16.mxu0 %v2432_v37  ;;  %v1137_v37 = vld [vmem:[#allocation8 + $0x188] sm:$0xff]  ;;  %v2474_v38 = vpack.c.bf16 %v1134_v35, %v1132_v34 }
 0x1b2   :  { %v2476_v39 = vpack.c.bf16 %v1139_v11, %v1137_v37  ;;  %v1384_v35 = vld [vmem:[#allocation11 + $0x40] sm:$0xff]  ;;  %v1385_v37 = vld [vmem:[#allocation11 + $0x48] sm:$0xff]  ;;  %v1402_v11 = vld [vmem:[#allocation11 + $0xd0] sm:$0xff] }
 0x1b4   :  { %2435 = vmatpush1.bf16.msra.mxu0 %v2434_v41  ;;  %v1138_v41 = vld [vmem:[#allocation8 + $0x190] sm:$0xff] }
 0x1b5   :  { %2437 = vmatprep.subr.bf16.mxu0 %v2436_v42  ;;  %v1141_v42 = vld [vmem:[#allocation8 + $0x1a8] sm:$0xff]  ;;  %v2478_v44 = vpack.c.bf16 %v1138_v41, %v1136_v40  ;;  %v2574_v40 = vpack.c.bf16 %v1385_v37, %v1384_v35  ;;  %v1175_v37 = vld [vmem:[#allocation8 + $0x2b8] sm:$0xff] }
 0x1b6   :  { %v2480_v45 = vpack.c.bf16 %v1143_v43, %v1141_v42  ;;  %v1386_v42 = vld [vmem:[#allocation11 + $0x50] sm:$0xff]  ;;  %v1387_v43 = vld [vmem:[#allocation11 + $0x58] sm:$0xff]  ;;  %v1173_v35 = vld [vmem:[#allocation8 + $0x2a8] sm:$0xff] }
 0x1b8   :  { %2439 = vmatpush1.bf16.msra.mxu0 %v2438_v47  ;;  %v1142_v47 = vld [vmem:[#allocation8 + $0x1b0] sm:$0xff] }
 0x1b9   :  { %2441 = vmatprep.subr.bf16.mxu0 %v2440_v48  ;;  %v1145_v48 = vld [vmem:[#allocation8 + $0x1c8] sm:$0xff]  ;;  %v2482_v50 = vpack.c.bf16 %v1142_v47, %v1140_v46  ;;  %v3365_v46 = vsub.s32 0, %v3308_v61  ;;  %v3367_v47 = vld [vmem:[#allocation7] sm:$0xf] }
 0x1ba   :  { %v2484_v51 = vpack.c.bf16 %v1147_v49, %v1145_v48  ;;  %v3370_v48 = vsub.s32 1, %v3308_v61  ;;  %v3373_v49 = vsub.s32 3, %v3308_v61 }
 0x1bc   :  { %2443 = vmatpush1.bf16.msra.mxu0 %v2442_v25  ;;  %v1146_v25 = vld [vmem:[#allocation8 + $0x1d0] sm:$0xff] }
 0x1bd   :  { %2445 = vmatprep.subr.bf16.mxu0 %v2444_v36  ;;  %v2486_v36 = vpack.c.bf16 %v1146_v25, %v1144_v52  ;;  %v612_v52 = vrot.slane %v3367_v47, %v3373_v49 }
 0x1c0   :  { %2447 = vmatpush1.bf16.msra.mxu0 %v2446_v57  ;;  %v1150_v57 = vld [vmem:[#allocation8 + $0x1f0] sm:$0xff] }
 0x1c1   :  { %2449 = vmatprep.subr.bf16.mxu0 %v2448_v58  ;;  %v2490_v58 = vpack.c.bf16 %v1150_v57, %v1148_v56  ;;  %v1152_v57 = vld [vmem:[#allocation8 + $0x200] sm:$0xff] }
 0x1c4   :  { %2451 = vmatpush1.bf16.msra.mxu0 %v2450_v63  ;;  %v3046_v63 = vmov 2  }
 0x1c5   :  { %2453 = vmatprep.subr.bf16.mxu0 %v2452_v0  ;;  %2670 = vset.pattern.permute.xlu1 %v3046_v63  ;;  %v3047_v0 = vmov 0  }
 0x1c6   :  { %2668 = vset.pattern.permute.xlu0 %v3047_v0  ;;  %1528 = vperm.xlu1 %2670, %v3344_v62  }
 0x1c7   :  { %1509 = vperm.xlu0 %2668, %v3344_v62  }
 0x1c8   :  { %2455 = vmatpush1.bf16.msra.mxu0 %v2454_v5  ;;  %v1377_v5 = vld [vmem:[#allocation11 + $0x8] sm:$0xff] }
 0x1c9   :  { %2457 = vmatprep.subr.bf16.mxu0 %v2456_v6  ;;  %v1394_v6 = vld [vmem:[#allocation11 + $0x90] sm:$0xff]  ;;  %v2558_v7 = vpack.c.bf16 %v1377_v5, %v1376_v4 }
 0x1ca   :  { %2671 = vset.pattern.permute.xlu1 %v3048_v16 }
 0x1cb   :  { %2559 = vmatpush3.bf16.msra.mxu1 %v2558_v7  ;;  %2669 = vset.pattern.permute.xlu0 %v3049_v17  ;;  %v1158_v7 = vld [vmem:[#allocation8 + $0x230] sm:$0xff] }
 0x1cc   :  { %2459 = vmatpush1.bf16.msra.mxu0 %v2458_v12  ;;  %v2560_v12 = vpack.c.bf16 %v1395_v8, %v1394_v6  ;;  %1538 = vperm.xlu1 %2671, %v3344_v62   ;;  %v1156_v6 = vld [vmem:[#allocation8 + $0x220] sm:$0xff] }
 0x1cd   :  { %2461 = vmatprep.subr.bf16.mxu0 %v2460_v13  ;;  %v1396_v13 = vld [vmem:[#allocation11 + $0xa0] sm:$0xff]  ;;  %1518 = vperm.xlu0 %2669, %v3344_v62  }
 0x1ce   :  { %2561 = vmatprep.subr.bf16.mxu1 %v2560_v12 }
 0x1cf   :  { %2563 = vmatpush3.bf16.msra.mxu1 %v2562_v15  ;;  %v1160_v15 = vld [vmem:[#allocation8 + $0x240] sm:$0xff] }
 0x1d0   :  { %2463 = vmatpush1.bf16.msra.mxu0 %v2462_v18  ;;  %v2564_v18 = vpack.c.bf16 %v1397_v14, %v1396_v13  ;;  %2672 = vset.pattern.permute.xlu1 %v3050_v29  ;;  %v2498_v13 = vpack.c.bf16 %v1158_v7, %v1156_v6  ;;  %v2500_v14 = vpack.c.bf16 %v1163_v10, %v1161_v9  ;;  %v1188_v6 = vld [vmem:[#allocation8 + $0x320] sm:$0xff]  ;;  %v1190_v7 = vld [vmem:[#allocation8 + $0x330] sm:$0xff]  ;;  %v1195_v9 = vld [vmem:[#allocation8 + $0x358] sm:$0xff] }
 0x1d1   :  { %2465 = vmatprep.subr.bf16.mxu0 %v2464_v19  ;;  %v1380_v19 = vld [vmem:[#allocation11 + $0x20] sm:$0xff]  ;;  %2673 = vset.pattern.permute.xlu0 %v3051_v30  ;;  %v2530_v10 = vpack.c.bf16 %v1190_v7, %v1188_v6 }
 0x1d2   :  { %v2566_v24 = vpack.c.bf16 %v1381_v20, %v1380_v19  ;;  %2565 = vmatprep.subr.bf16.mxu1 %v2564_v18  ;;  %1548 = vperm.xlu1 %2672, %v3344_v62   ;;  %v1162_v18 = vld [vmem:[#allocation8 + $0x250] sm:$0xff]  ;;  %v1165_v19 = vld [vmem:[#allocation8 + $0x268] sm:$0xff]  ;;  %v1167_v20 = vld [vmem:[#allocation8 + $0x278] sm:$0xff] }
 0x1d3   :  { %1558 = vperm.xlu0 %2673, %v3344_v62  }
 0x1d4   :  { %2467 = vmatpush1.bf16.msra.mxu0 %v2466_v26  ;;  %v2568_v26 = vpack.c.bf16 %v1399_v23, %v1398_v21  ;;  %2567 = vmatpush3.bf16.msra.mxu1 %v2566_v24  ;;  %v2502_v21 = vpack.c.bf16 %v1162_v18, %v1160_v15  ;;  %v2504_v23 = vpack.c.bf16 %v1167_v20, %v1165_v19  ;;  %v1164_v24 = vld [vmem:[#allocation8 + $0x260] sm:$0xff]  ;;  %v1197_v15 = vld [vmem:[#allocation8 + $0x368] sm:$0xff]  ;;  %v1199_v18 = vld [vmem:[#allocation8 + $0x378] sm:$0xff] }
 0x1d5   :  { %2469 = vmatprep.subr.bf16.mxu0 %v2468_v27  ;;  %v1382_v27 = vld [vmem:[#allocation11 + $0x30] sm:$0xff]  ;;  %v2536_v20 = vpack.c.bf16 %v1199_v18, %v1197_v15 }
 0x1d6   :  { %2569 = vmatprep.subr.bf16.mxu1 %v2568_v26  ;;  %v1166_v26 = vld [vmem:[#allocation8 + $0x270] sm:$0xff] }
 0x1d7   :  { %2676 = vset.pattern.permute.xlu0 %v3047_v0 }
 0x1d8   :  { %2471 = vmatpush1.bf16.msra.mxu0 %v2470_v32  ;;  %v1401_v32 = vld [vmem:[#allocation11 + $0xc8] sm:$0xff] }
 0x1d9   :  { %2473 = vmatprep.subr.bf16.mxu0 %v2472_v33  ;;  %v2570_v33 = vpack.c.bf16 %v1383_v28, %v1382_v27  ;;  %v2572_v34 = vpack.c.bf16 %v1401_v32, %v1400_v31  ;;  %v1169_v27 = vld [vmem:[#allocation8 + $0x288] sm:$0xff]  ;;  %v1171_v28 = vld [vmem:[#allocation8 + $0x298] sm:$0xff]  ;;  %v2506_v31 = vpack.c.bf16 %v1166_v26, %v1164_v24 }
 0x1da   :  { %v2508_v32 = vpack.c.bf16 %v1171_v28, %v1169_v27  ;;  %v1201_v24 = vld [vmem:[#allocation8 + $0x388] sm:$0xff]  ;;  %v1203_v26 = vld [vmem:[#allocation8 + $0x398] sm:$0xff] }
 0x1db   :  { %2571 = vmatpush3.bf16.msra.mxu1 %v2570_v33  ;;  %v1168_v33 = vld [vmem:[#allocation8 + $0x280] sm:$0xff]  ;;  %v2540_v28 = vpack.c.bf16 %v1203_v26, %v1201_v24  ;;  %v3398_v26 = vsub.s32 5, %v3308_v61 }
 0x1dc   :  { %2475 = vmatpush1.bf16.msra.mxu0 %v2474_v38  ;;  %v1403_v38 = vld [vmem:[#allocation11 + $0xd8] sm:$0xff]  ;;  %2573 = vmatprep.subr.bf16.mxu1 %v2572_v34  ;;  %v1170_v34 = vld [vmem:[#allocation8 + $0x290] sm:$0xff] }
 0x1dd   :  { %2477 = vmatprep.subr.bf16.mxu0 %v2476_v39  ;;  %v3052_v39 = vmov 6   ;;  %v2576_v41 = vpack.c.bf16 %v1403_v38, %v1402_v11  ;;  %v2510_v11 = vpack.c.bf16 %v1170_v34, %v1168_v33  ;;  %v2512_v38 = vpack.c.bf16 %v1175_v37, %v1173_v35  ;;  %v1205_v33 = vld [vmem:[#allocation8 + $0x3a8] sm:$0xff]  ;;  %v1207_v34 = vld [vmem:[#allocation8 + $0x3b8] sm:$0xff] }
 0x1de   :  { %2674 = vset.pattern.permute.xlu1 %v3052_v39  ;;  %v2544_v37 = vpack.c.bf16 %v1207_v34, %v1205_v33  ;;  %v3401_v33 = vsub.s32 6, %v3308_v61 }
 0x1df   :  { %1568 = vperm.xlu1 %2674, %v3344_v62   ;;  %2575 = vmatpush3.bf16.msra.mxu1 %v2574_v40  ;;  %v1172_v40 = vld [vmem:[#allocation8 + $0x2a0] sm:$0xff] }
 0x1e0   :  { %2479 = vmatpush1.bf16.msra.mxu0 %v2478_v44  ;;  %v3053_v44 = vmov 7   ;;  %2577 = vmatprep.subr.bf16.mxu1 %v2576_v41  ;;  %v1174_v41 = vld [vmem:[#allocation8 + $0x2b0] sm:$0xff] }
 0x1e1   :  { %2481 = vmatprep.subr.bf16.mxu0 %v2480_v45  ;;  %v2578_v45 = vpack.c.bf16 %v1387_v43, %v1386_v42  ;;  %v1177_v42 = vld [vmem:[#allocation8 + $0x2c8] sm:$0xff]  ;;  %v1179_v43 = vld [vmem:[#allocation8 + $0x2d8] sm:$0xff] }
 0x1e3   :  { %2675 = vset.pattern.permute.xlu1 %v3053_v44  ;;  %2579 = vmatpush3.bf16.msra.mxu1 %v2578_v45  ;;  %v2514_v45 = vpack.c.bf16 %v1174_v41, %v1172_v40  ;;  %v3384_v40 = vsub.s32 2, %v3308_v61  ;;  %v1209_v41 = vld [vmem:[#allocation8 + $0x3c8] sm:$0xff] }
 0x1e4   :  { %2483 = vmatpush1.bf16.msra.mxu0 %v2482_v50  ;;  %1578 = vperm.xlu1 %2675, %v3344_v62   ;;  %v600_v50 = vrot.slane %v3367_v47, %v3365_v46  ;;  %v1159_v62 = vld [vmem:[#allocation8 + $0x238] sm:$0xff] }
 0x1e5   :  { %2485 = vmatprep.subr.bf16.mxu0 %v2484_v51  ;;  %v604_v51 = vrot.slane %v3367_v47, %v3370_v48 }
 0x1e8   :  { %2487 = vmatpush1.bf16.msra.mxu0 %v2486_v36  ;;  %2677 = vset.pattern.permute.xlu1 %v3049_v17 }
 0x1e9   :  { %2489 = vmatprep.subr.bf16.mxu0 %v2488_v55 }
 0x1ec   :  { %2491 = vmatpush1.bf16.msra.mxu0 %v2490_v58  ;;  %v1154_v58 = vld [vmem:[#allocation8 + $0x210] sm:$0xff] }
 0x1ed   :  { %2493 = vmatprep.subr.bf16.mxu0 %v2492_v60  ;;  %v1157_v60 = vld [vmem:[#allocation8 + $0x228] sm:$0xff]  ;;  %v2494_v3 = vpack.c.bf16 %v1154_v58, %v1152_v57  ;;  %v1182_v57 = vld [vmem:[#allocation8 + $0x2f0] sm:$0xff] }
 0x1ee   :  { %v2496_v5 = vpack.c.bf16 %v1159_v62, %v1157_v60  ;;  %v1185_v58 = vld [vmem:[#allocation8 + $0x308] sm:$0xff]  ;;  %v1184_v62 = vld [vmem:[#allocation8 + $0x300] sm:$0xff] }
 0x282   :  { %v858_v25 = vpop.f32.mrb[0].mxu0 }
 0x283   :  { %v2612_v36 = vadd.f32 %v858_v25, %v600_v50  ;;  %v3381_v53 = vpop.f32.mrb[0].mxu1  ;;  %v860_v54 = vpop.f32.mrb[1].mxu0  ;;  %v2516_v50 = vpack.c.bf16 %v1179_v43, %v1177_v42  ;;  %v1181_v25 = vld [vmem:[#allocation8 + $0x2e8] sm:$0xff]  ;;  %v1211_v42 = vld [vmem:[#allocation8 + $0x3d8] sm:$0xff] }
 0x284   :  { %v2613_v55 = vadd.f32 %v860_v54, %v604_v51  ;;  %v1073_v56 = vpop.f32.mrb[1].mxu1  ;;  %v1176_v51 = vld [vmem:[#allocation8 + $0x2c0] sm:$0xff] }
 0x285   :  { %v1080_v59 = vmul.f32 0.2, %v2612_v36  ;;  %v2615_v22 = vadd.f32 %v1073_v56, %v612_v52  ;;  %vm1076_vm0 = vcmp.ge.f32.partialorder %v2612_v36, 0.0  ;;  %v1178_v52 = vld [vmem:[#allocation8 + $0x2d0] sm:$0xff]  ;;  %v1180_v56 = vld [vmem:[#allocation8 + $0x2e0] sm:$0xff] }
 0x286   :  { %v1081_v1 = vmul.f32 0.2, %v2613_v55  ;;  %vm1077_vm1 = vcmp.ge.f32.partialorder %v2613_v55, 0.0  ;;  %v2518_v54 = vpack.c.bf16 %v1178_v52, %v1176_v51  ;;  %v1210_v51 = vld [vmem:[#allocation8 + $0x3d0] sm:$0xff]  ;;  %v608_v52 = vrot.slane %v3367_v47, %v3384_v40  ;;  %v1505_v47 = vld [vmem:[#allocation14] sm:$0xff] }
 0x287   :  { %v1083_v2 = vmul.f32 0.2, %v2615_v22  ;;  %vm1079_vm2 = vcmp.ge.f32.partialorder %v2615_v22, 0.0  ;;  %v1084_v8 = vsel %vm1076_vm0, %v2612_v36, %v1080_v59  ;;  %v1183_v36 = vld [vmem:[#allocation8 + $0x2f8] sm:$0xff]  ;;  %v1564_v34 = vrot.slane %v1505_v47, %v3398_v26 }
 0x288   :  { %v1085_v4 = vsel %vm1077_vm1, %v2613_v55, %v1081_v1  ;;  %v2520_v55 = vpack.c.bf16 %v1183_v36, %v1181_v25  ;;  %v1187_v59 = vld [vmem:[#allocation8 + $0x318] sm:$0xff]  ;;  %v1186_v1 = vld [vmem:[#allocation8 + $0x310] sm:$0xff]  ;;  %v1213_v25 = vld [vmem:[#allocation8 + $0x3e8] sm:$0xff] }
 0x289   :  { %1292 = vmatprep.mubr.f32.mxu0 %v1085_v4  ;;  %v1087_v12 = vsel %vm1079_vm2, %v2615_v22, %v1083_v2  ;;  %v2522_v22 = vpack.c.bf16 %v1182_v57, %v1180_v56  ;;  %v2524_v60 = vpack.c.bf16 %v1187_v59, %v1185_v58  ;;  %v1189_v2 = vld [vmem:[#allocation8 + $0x328] sm:$0xff]  ;;  %v2526_v4 = vpack.c.bf16 %v1186_v1, %v1184_v62  ;;  %v1215_v36 = vld [vmem:[#allocation8 + $0x3f8] sm:$0xff]  ;;  %v1212_v56 = vld [vmem:[#allocation8 + $0x3e0] sm:$0xff]  ;;  %v1510_v62 = vpop.permute.xlu0 %1509 }
 0x28a   :  { %1293 = vmatmul.mubr.f32.vlgmr.msra.gmra.mrb[2].mxu0 %v1084_v8  ;;  %v1193_v8 = vld [vmem:[#allocation8 + $0x348] sm:$0xff]  ;;  %v1214_v57 = vld [vmem:[#allocation8 + $0x3f0] sm:$0xff]  ;;  %v2614_v58 = vadd.f32 %v3381_v53, %v608_v52  ;;  %v1515_v1 = vrot.slane %v1505_v47, %v3365_v46 }
 0x28b   :  { %2495 = vmatpush1.bf16.msra.mxu0 %v2494_v3  ;;  %1363 = vmatprep.mubr.f32.mxu0 %v1087_v12  ;;  %v1191_v3 = vld [vmem:[#allocation8 + $0x338] sm:$0xff]  ;;  %v2532_v12 = vpack.c.bf16 %v1195_v9, %v1193_v8  ;;  %v2554_v59 = vpack.c.bf16 %v1214_v57, %v1212_v56  ;;  %v1544_v8 = vrot.slane %v1505_v47, %v3373_v49 }
 0x28c   :  { %2497 = vmatprep.subr.bf16.mxu0 %v2496_v5  ;;  %v2528_v5 = vpack.c.bf16 %v1191_v3, %v1189_v2  ;;  %vm1078_vm3 = vcmp.ge.f32.partialorder %v2614_v58, 0.0  ;;  %v1524_v2 = vrot.slane %v1505_v47, %v3370_v48  ;;  %v1516_v6 = vmul.f32 %v1515_v1, %v1510_v62 }
 0x28d   :  { %v1519_v3 = vpop.permute.xlu0 %1518 }
 0x28e   :  { %v1525_v53 = vmul.f32 %v1524_v2, %v1519_v3 }
 0x28f   :  { %2499 = vmatpush1.bf16.msra.mxu0 %v2498_v13  ;;  %v1192_v13 = vld [vmem:[#allocation8 + $0x340] sm:$0xff] }
 0x290   :  { %2501 = vmatprep.subr.bf16.mxu0 %v2500_v14  ;;  %v1194_v14 = vld [vmem:[#allocation8 + $0x350] sm:$0xff]  ;;  %v1526_v9 = vadd.f32 %v1525_v53, %v1516_v6 }
 0x291   :  { %v2534_v19 = vpack.c.bf16 %v1194_v14, %v1192_v13 }
 0x293   :  { %2503 = vmatpush1.bf16.msra.mxu0 %v2502_v21  ;;  %v1196_v21 = vld [vmem:[#allocation8 + $0x360] sm:$0xff] }
 0x294   :  { %2505 = vmatprep.subr.bf16.mxu0 %v2504_v23  ;;  %v1198_v23 = vld [vmem:[#allocation8 + $0x370] sm:$0xff] }
 0x295   :  { %v2538_v27 = vpack.c.bf16 %v1198_v23, %v1196_v21  ;;  %v1404_v21 = vld [vmem:[#allocation11 + $0xe0] sm:$0xff]  ;;  %v1405_v23 = vld [vmem:[#allocation11 + $0xe8] sm:$0xff] }
 0x296   :  { %v2580_v24 = vpack.c.bf16 %v1405_v23, %v1404_v21 }
 0x297   :  { %2507 = vmatpush1.bf16.msra.mxu0 %v2506_v31  ;;  %v1200_v31 = vld [vmem:[#allocation8 + $0x380] sm:$0xff] }
 0x298   :  { %2509 = vmatprep.subr.bf16.mxu0 %v2508_v32  ;;  %v1202_v32 = vld [vmem:[#allocation8 + $0x390] sm:$0xff]  ;;  %2581 = vmatprep.subr.bf16.mxu1 %v2580_v24 }
 0x299   :  { %v2542_v35 = vpack.c.bf16 %v1202_v32, %v1200_v31 }
 0x29b   :  { %2511 = vmatpush1.bf16.msra.mxu0 %v2510_v11  ;;  %v1204_v11 = vld [vmem:[#allocation8 + $0x3a0] sm:$0xff] }
 0x29c   :  { %2513 = vmatprep.subr.bf16.mxu0 %v2512_v38  ;;  %v1206_v38 = vld [vmem:[#allocation8 + $0x3b0] sm:$0xff] }
 0x29d   :  { %v2546_v43 = vpack.c.bf16 %v1206_v38, %v1204_v11  ;;  %v1406_v11 = vld [vmem:[#allocation11 + $0xf0] sm:$0xff]  ;;  %v1407_v38 = vld [vmem:[#allocation11 + $0xf8] sm:$0xff] }
 0x29f   :  { %2515 = vmatpush1.bf16.msra.mxu0 %v2514_v45  ;;  %v2548_v45 = vpack.c.bf16 %v1211_v42, %v1209_v41  ;;  %v1574_v41 = vrot.slane %v1505_v47, %v3401_v33 }
 0x2a0   :  { %2517 = vmatprep.subr.bf16.mxu0 %v2516_v50  ;;  %v1208_v50 = vld [vmem:[#allocation8 + $0x3c0] sm:$0xff] }
 0x2a3   :  { %2519 = vmatpush1.bf16.msra.mxu0 %v2518_v54  ;;  %v2550_v54 = vpack.c.bf16 %v1210_v51, %v1208_v50  ;;  %v1390_v50 = vld [vmem:[#allocation11 + $0x70] sm:$0xff]  ;;  %v1391_v51 = vld [vmem:[#allocation11 + $0x78] sm:$0xff] }
 0x2a4   :  { %2521 = vmatprep.subr.bf16.mxu0 %v2520_v55  ;;  %v2552_v55 = vpack.c.bf16 %v1215_v36, %v1213_v25  ;;  %v2586_v52 = vpack.c.bf16 %v1391_v51, %v1390_v50 }
 0x2a7   :  { %2523 = vmatpush1.bf16.msra.mxu0 %v2522_v22  ;;  %v1082_v22 = vmul.f32 0.2, %v2614_v58 }
 0x2a8   :  { %2525 = vmatprep.subr.bf16.mxu0 %v2524_v60 }
 0x2a9   :  { %v1086_v60 = vsel %vm1078_vm3, %v2614_v58, %v1082_v22  ;;  %v1954_v58 = vld [vmem:[#allocation16] ss:$0 sm:$0xff] }
 0x2ab   :  { %2527 = vmatpush1.bf16.msra.mxu0 %v2526_v4  ;;  %v1529_v4 = vpop.permute.xlu1 %1528 }
 0x2ac   :  { %2529 = vmatprep.subr.bf16.mxu0 %v2528_v5  ;;  %v1534_v5 = vrot.slane %v1505_v47, %v3384_v40 }
 0x2ae   :  { %v1535_v7 = vmul.f32 %v1534_v5, %v1529_v4 }
 0x2af   :  { %2531 = vmatpush1.bf16.msra.mxu0 %v2530_v10  ;;  %v3394_v10 = vsub.s32 4, %v3308_v61 }
 0x2b0   :  { %2533 = vmatprep.subr.bf16.mxu0 %v2532_v12  ;;  %v1539_v12 = vpop.permute.xlu1 %1538  ;;  %v1536_v14 = vadd.f32 %v1535_v7, %v1526_v9 }
 0x2b1   :  { %v1545_v13 = vmul.f32 %v1544_v8, %v1539_v12  ;;  %v1554_v15 = vrot.slane %v1505_v47, %v3394_v10  ;;  %v1490_v12 = vld [vmem:[%s3525_s8 + $0x10] sm:$0xff] }
 0x2b3   :  { %2535 = vmatpush1.bf16.msra.mxu0 %v2534_v19  ;;  %v1546_v19 = vadd.f32 %v1545_v13, %v1536_v14  ;;  %v1491_v13 = vld [vmem:[%s3525_s8 + $0x18] sm:$0xff] }
 0x2b4   :  { %2537 = vmatprep.subr.bf16.mxu0 %v2536_v20  ;;  %v1549_v18 = vpop.permute.xlu1 %1548 }
 0x2b5   :  { %v1555_v20 = vmul.f32 %v1554_v15, %v1549_v18  ;;  %v1597_v15 = vld [vmem:[#allocation17] sm:$0xff]  ;;  %v2592_v18 = vpack.c.bf16 %v1491_v13, %v1490_v12 }
 0x2b6   :  { %v1616_v21 = vrot.slane %v1597_v15, %v3370_v48  ;;  %v1607_v23 = vrot.slane %v1597_v15, %v3365_v46 }
 0x2b7   :  { %2539 = vmatpush1.bf16.msra.mxu0 %v2538_v27  ;;  %v1388_v27 = vld [vmem:[#allocation11 + $0x60] sm:$0xff]  ;;  %v1556_v32 = vadd.f32 %v1555_v20, %v1546_v19  ;;  %v1492_v19 = vld [vmem:[%s3525_s8 + $0x20] sm:$0xff] }
 0x2b8   :  { %2541 = vmatprep.subr.bf16.mxu0 %v2540_v28  ;;  %v1389_v28 = vld [vmem:[#allocation11 + $0x68] sm:$0xff]  ;;  %v1493_v20 = vld [vmem:[%s3525_s8 + $0x28] sm:$0xff] }
 0x2b9   :  { %v2582_v31 = vpack.c.bf16 %v1389_v28, %v1388_v27  ;;  %v2595_v24 = vpack.c.bf16 %v1493_v20, %v1492_v19  ;;  %v1501_v19 = vld [vmem:[%s3525_s8 + $0x68] sm:$0xff] }
 0x2bb   :  { %2543 = vmatpush1.bf16.msra.mxu0 %v2542_v35  ;;  %v1569_v35 = vpop.permute.xlu1 %1568  ;;  %2583 = vmatpush3.bf16.msra.mxu1 %v2582_v31  ;;  %v1494_v31 = vld [vmem:[%s3525_s8 + $0x30] sm:$0xff] }
 0x2bc   :  { %2545 = vmatprep.subr.bf16.mxu0 %v2544_v37  ;;  %v1559_v37 = vpop.permute.xlu0 %1558  ;;  %v1575_v25 = vmul.f32 %v1574_v41, %v1569_v35 }
 0x2bd   :  { %v1565_v42 = vmul.f32 %v1564_v34, %v1559_v37  ;;  %v1626_v37 = vrot.slane %v1597_v15, %v3384_v40 }
 0x2bf   :  { %2547 = vmatpush1.bf16.msra.mxu0 %v2546_v43  ;;  %v2584_v43 = vpack.c.bf16 %v1407_v38, %v1406_v11  ;;  %v1566_v36 = vadd.f32 %v1565_v42, %v1556_v32  ;;  %v1495_v32 = vld [vmem:[%s3525_s8 + $0x38] sm:$0xff]  ;;  %v1636_v11 = vrot.slane %v1597_v15, %v3373_v49  ;;  %v1496_v42 = vld [vmem:[%s3525_s8 + $0x40] sm:$0xff] }
 0x2c0   :  { %2549 = vmatprep.subr.bf16.mxu0 %v2548_v45  ;;  %v3406_v45 = vsub.s32 7, %v3308_v61  ;;  %v3054_v61 = vmov 0.0|0.0   ;;  %v2598_v38 = vpack.c.bf16 %v1495_v32, %v1494_v31  ;;  %v1953_v32 = vld [vmem:[#allocation13] ss:$0 sm:$0xff] }
 0x2c1   :  { %2585 = vmatprep.subr.bf16.mxu1 %v2584_v43  ;;  %v1576_v56 = vadd.f32 %v1575_v25, %v1566_v36  ;;  %v1497_v43 = vld [vmem:[%s3525_s8 + $0x48] sm:$0xff]  ;;  %v1646_v36 = vrot.slane %v1597_v15, %v3394_v10 }
 0x2c2   :  { %2587 = vmatpush3.bf16.msra.mxu1 %v2586_v52 }
 0x2c3   :  { %2551 = vmatpush1.bf16.msra.mxu0 %v2550_v54  ;;  %v1584_v54 = vrot.slane %v1505_v47, %v3406_v45  ;;  %2588 = vmatprep.subr.bf16.mxu1 %v3054_v61  ;;  %v1216_v47 = vld [vmem:[#allocation10] sm:$0x3] }
 0x2c4   :  { %2553 = vmatprep.subr.bf16.mxu0 %v2552_v55  ;;  %v1579_v55 = vpop.permute.xlu1 %1578  ;;  %v1221_v1 = vrot.slane %v1216_v47, %v3365_v46  ;;  %v1225_v2 = vrot.slane %v1216_v47, %v3370_v48  ;;  %v1666_v47 = vrot.slane %v1597_v15, %v3401_v33 }
 0x2c5   :  { %v1585_v57 = vmul.f32 %v1584_v54, %v1579_v55  ;;  %v2601_v54 = vpack.c.bf16 %v1497_v43, %v1496_v42 }
 0x2c7   :  { %2555 = vmatpush1.bf16.msra.mxu0 %v2554_v59  ;;  %v1586_v59 = vadd.f32 %v1585_v57, %v1576_v56  ;;  %v1498_v56 = vld [vmem:[%s3525_s8 + $0x50] sm:$0xff]  ;;  %v1499_v57 = vld [vmem:[%s3525_s8 + $0x58] sm:$0xff] }
 0x2c9   :  { %v1593_v22 = vadd.f32 %v1954_v58, %v1586_v59 }
 0x2ca   :  { %1364 = vmatmul.mubr.f32.vlgmr.msra.gmra.mrb[2].mxu0 %v1086_v60 }
 0x2cb   :  { %vm1594_vm4 = vcmp.ge.f32.partialorder %v1593_v22, 0.0  ;;  %v1595_v60 = vmul.f32 0.2, %v1593_v22 }
 0x2cd   :  { %v1596_v62 = vsel %vm1594_vm4, %v1593_v22, %v1595_v60  ;;  %v2604_v60 = vpack.c.bf16 %v1499_v57, %v1498_v56 }
 0x2ce   :  { %1610 = vperm.xlu1 %2677, %v1596_v62   ;;  %1601 = vperm.xlu0 %2676, %v1596_v62  }
 0x2d2   :  { %2678 = vset.pattern.permute.xlu1 %v3046_v63  ;;  %2679 = vset.pattern.permute.xlu0 %v3048_v16 }
 0x2d3   :  { %1620 = vperm.xlu1 %2678, %v1596_v62   ;;  %1630 = vperm.xlu0 %2679, %v1596_v62  }
 0x2d7   :  { %2680 = vset.pattern.permute.xlu1 %v3050_v29  ;;  %2682 = vset.pattern.permute.xlu0 %v3052_v39 }
 0x2d8   :  { %1640 = vperm.xlu1 %2680, %v1596_v62   ;;  %1660 = vperm.xlu0 %2682, %v1596_v62  }
 0x2dc   :  { %2681 = vset.pattern.permute.xlu1 %v3051_v30  ;;  %2685 = vset.pattern.permute.xlu0 %v3049_v17  ;;  %v1488_v17 = vld [vmem:[%s3525_s8] sm:$0xff] }
 0x2dd   :  { %1650 = vperm.xlu1 %2681, %v1596_v62  }
 0x2e1   :  { %2683 = vset.pattern.permute.xlu1 %v3053_v44 }
 0x2e2   :  { %1670 = vperm.xlu1 %2683, %v1596_v62   ;;  %v1656_v62 = vrot.slane %v1597_v15, %v3398_v26 }
 0x2e6   :  { %2684 = vset.pattern.permute.xlu1 %v3047_v0  ;;  %v1489_v0 = vld [vmem:[%s3525_s8 + $0x8] sm:$0xff] }
 0x2e7   :  { %v2589_v8 = vpack.c.bf16 %v1489_v0, %v1488_v17 }
 0x34d   :  { %v1611_v27 = vpop.permute.xlu1 %1610  ;;  %v1602_v28 = vpop.permute.xlu0 %1601 }
 0x34e   :  { %v1617_v34 = vmul.f32 %v1616_v21, %v1611_v27  ;;  %v1608_v35 = vmul.f32 %v1607_v23, %v1602_v28  ;;  %v3062_v21 = vmov 15   ;;  %v1502_v23 = vld [vmem:[%s3525_s8 + $0x70] sm:$0xff]  ;;  %v3064_v28 = vmov 0.0  }
 0x350   :  { %v1618_v41 = vadd.f32 %v1617_v34, %v1608_v35 }
 0x352   :  { %v1621_v50 = vpop.permute.xlu1 %1620  ;;  %v1631_v51 = vpop.permute.xlu0 %1630 }
 0x353   :  { %v1627_v52 = vmul.f32 %v1626_v37, %v1621_v50  ;;  %v1637_v25 = vmul.f32 %v1636_v11, %v1631_v51 }
 0x355   :  { %v1628_v55 = vadd.f32 %v1627_v52, %v1618_v41 }
 0x357   :  { %v1641_v58 = vpop.permute.xlu1 %1640  ;;  %v1638_v59 = vadd.f32 %v1637_v25, %v1628_v55 }
 0x358   :  { %v1647_v22 = vmul.f32 %v1646_v36, %v1641_v58 }
 0x39d   :  { %v1365_v3 = vpop.f32.mrb[2].mxu0 }
 0x39e   :  { %v2616_v4 = vadd.f32 %v1365_v3, %v1221_v1  ;;  %v1367_v5 = vpop.f32.mrb[3].mxu0  ;;  %v1661_v1 = vpop.permute.xlu0 %1660 }
 0x39f   :  { %v2617_v6 = vadd.f32 %v1367_v5, %v1225_v2  ;;  %v1648_v2 = vadd.f32 %v1647_v22, %v1638_v59  ;;  %v1651_v3 = vpop.permute.xlu1 %1650  ;;  %v1667_v5 = vmul.f32 %v1666_v47, %v1661_v1 }
 0x3a0   :  { %v1372_v53 = vmul.f32 0.2, %v2616_v4  ;;  %vm1370_vm5 = vcmp.ge.f32.partialorder %v2616_v4, 0.0 }
 0x3a1   :  { %v1373_v7 = vmul.f32 0.2, %v2617_v6  ;;  %vm1371_vm6 = vcmp.ge.f32.partialorder %v2617_v6, 0.0 }
 0x3a2   :  { %v1374_v14 = vsel %vm1370_vm5, %v2616_v4, %v1372_v53  ;;  %v1657_v4 = vmul.f32 %v1656_v62, %v1651_v3 }
 0x3a3   :  { %v1375_v9 = vsel %vm1371_vm6, %v2617_v6, %v1373_v7  ;;  %v1676_v6 = vrot.slane %v1597_v15, %v3406_v45  ;;  %v1671_v53 = vpop.permute.xlu1 %1670  ;;  %v3055_v15 = vmov 10  }
 0x3a4   :  { %1479 = vmatprep.mubr.f32.mxu1 %v1375_v9  ;;  %v1658_v17 = vadd.f32 %v1657_v4, %v1648_v2 }
 0x3a5   :  { %1480 = vmatmul.mubr.f32.vlgmr.msra.gmra.mrb[2].mxu1 %v1374_v14  ;;  %v1677_v7 = vmul.f32 %v1676_v6, %v1671_v53 }
 0x3a6   :  { %2590 = vmatpush3.bf16.msra.mxu1 %v2589_v8  ;;  %v1668_v0 = vadd.f32 %v1667_v5, %v1658_v17  ;;  %v1955_v8 = vld [vmem:[#allocation19] ss:$0 sm:$0xff]  ;;  %2041 = vmatprep.mubr.msk.f32.mxu1 %vm3063_vm8, %v3064_v28 }
 0x3a7   :  { %2591 = vmatprep.subr.bf16.mxu1 %v3054_v61 }
 0x3a8   :  { %v1678_v9 = vadd.f32 %v1677_v7, %v1668_v0  ;;  %v1690_v7 = vld [vmem:[#allocation20 + $0x8] sm:$0xff] }
 0x3aa   :  { %2593 = vmatpush3.bf16.msra.mxu1 %v2592_v18  ;;  %v1685_v12 = vadd.f32 %v1955_v8, %v1678_v9  ;;  %v3056_v18 = vmov 13  }
 0x3ab   :  { %2594 = vmatprep.subr.bf16.mxu1 %v3054_v61 }
 0x3ac   :  { %vm1686_vm7 = vcmp.ge.f32.partialorder %v1685_v12, 0.0  ;;  %v1687_v13 = vmul.f32 0.2, %v1685_v12 }
 0x3ae   :  { %2596 = vmatpush3.bf16.msra.mxu1 %v2595_v24  ;;  %v1688_v14 = vsel %vm1686_vm7, %v1685_v12, %v1687_v13  ;;  %v1503_v24 = vld [vmem:[%s3525_s8 + $0x78] sm:$0xff]  ;;  %v1779_v12 = vrot.slane %v1690_v7, %v3365_v46 }
 0x3af   :  { %2597 = vmatprep.subr.bf16.mxu1 %v3054_v61  ;;  %1694 = vperm.xlu1 %2684, %v1688_v14   ;;  %v2610_v27 = vpack.c.bf16 %v1503_v24, %v1502_v23 }
 0x3b0   :  { %1703 = vperm.xlu0 %2685, %v1688_v14  }
 0x3b2   :  { %2599 = vmatpush3.bf16.msra.mxu1 %v2598_v38  ;;  %v1689_v38 = vld [vmem:[#allocation20] sm:$0xff] }
 0x3b3   :  { %2600 = vmatprep.subr.bf16.mxu1 %v3054_v61  ;;  %2686 = vset.pattern.permute.xlu1 %v3046_v63  ;;  %v3057_v63 = vmov 8   ;;  %v1700_v42 = vrot.slane %v1689_v38, %v3365_v46  ;;  %v1709_v43 = vrot.slane %v1689_v38, %v3370_v48  ;;  %v1719_v25 = vrot.slane %v1689_v38, %v3384_v40 }
 0x3b4   :  { %2688 = vset.pattern.permute.xlu0 %v3050_v29  ;;  %1713 = vperm.xlu1 %2686, %v1688_v14   ;;  %v3059_v29 = vmov 11   ;;  %v1729_v55 = vrot.slane %v1689_v38, %v3373_v49  ;;  %v1739_v22 = vrot.slane %v1689_v38, %v3394_v10  ;;  %v1749_v47 = vrot.slane %v1689_v38, %v3398_v26 }
 0x3b5   :  { %1733 = vperm.xlu0 %2688, %v1688_v14   ;;  %v1759_v4 = vrot.slane %v1689_v38, %v3401_v33  ;;  %v1769_v53 = vrot.slane %v1689_v38, %v3406_v45  ;;  %v1819_v46 = vrot.slane %v1690_v7, %v3394_v10  ;;  %v1956_v10 = vld [vmem:[#allocation22] ss:$0 sm:$0xff] }
 0x3b6   :  { %2602 = vmatpush3.bf16.msra.mxu1 %v2601_v54 }
 0x3b7   :  { %2603 = vmatprep.subr.bf16.mxu1 %v3054_v61 }
 0x3b8   :  { %2687 = vset.pattern.permute.xlu1 %v3048_v16  ;;  %v3058_v16 = vmov 9  }
 0x3b9   :  { %2691 = vset.pattern.permute.xlu0 %v3053_v44  ;;  %1723 = vperm.xlu1 %2687, %v1688_v14   ;;  %v3061_v44 = vmov 14  }
 0x3ba   :  { %2605 = vmatpush3.bf16.msra.mxu1 %v2604_v60  ;;  %1763 = vperm.xlu0 %2691, %v1688_v14  }
 0x3bb   :  { %2606 = vmatprep.subr.bf16.mxu1 %v3054_v61 }
 0x3bd   :  { %2689 = vset.pattern.permute.xlu1 %v3051_v30  ;;  %v3060_v30 = vmov 12  }
 0x3be   :  { %2694 = vset.pattern.permute.xlu0 %v3055_v15  ;;  %1743 = vperm.xlu1 %2689, %v1688_v14  }
 0x3bf   :  { %1793 = vperm.xlu0 %2694, %v1688_v14  }
 0x3c2   :  { %2690 = vset.pattern.permute.xlu1 %v3052_v39  ;;  %v1500_v39 = vld [vmem:[%s3525_s8 + $0x60] sm:$0xff]  ;;  %s3065_s8 = smov [#allocation23]  }
 0x3c3   :  { %2697 = vset.pattern.permute.xlu0 %v3056_v18  ;;  %1753 = vperm.xlu1 %2690, %v1688_v14   ;;  %v2607_v20 = vpack.c.bf16 %v1501_v19, %v1500_v39  ;;  %s1937_s30 = sshll.u32 %s3065_s8, 4  ;;  %s1938_s30 = int_to_ptr.vmem [resolvable:$true] %s1937_s30 }
 0x3c4   :  { %1823 = vperm.xlu0 %2697, %v1688_v14   ;;  %s2988_s20 = scalar_lea.vmem %s1938_s30, 32  ;;  %p2993_p7 = scmp.lt.s32.totalorder %s1938_s30, %s1938_s30 }
 0x3c5   :  { %2608 = vmatpush3.bf16.msra.mxu1 %v2607_v20  ;;  %p2989_p6 = scmp.ne.s32.totalorder %s1938_s30, %s2988_s20  ;;  %p2994_p8 = scmp.lt.s32.totalorder %s2988_s20, %s2988_s20 }
 0x3c6   :  { %2609 = vmatprep.subr.bf16.mxu1 %v3054_v61 }
 0x3c7   :  { %2692 = vset.pattern.permute.xlu1 %v3057_v63  ;;  %v1789_v63 = vrot.slane %v1690_v7, %v3370_v48  ;;  %v1829_v48 = vrot.slane %v1690_v7, %v3398_v26  ;;  %p2995_p9 = por %p2994_p8, %p2993_p7 }
 0x3c8   :  { %1773 = vperm.xlu1 %2692, %v1688_v14   ;;  %2700 = vset.pattern.permute.xlu0 %v3062_v21 }
 0x3c9   :  { %2611 = vmatpush3.bf16.msra.mxu1 %v2610_v27  ;;  %p2996_p10 = pnand %p2995_p9, %p2989_p6 }
 0x3cc   :  { %2693 = vset.pattern.permute.xlu1 %v3058_v16 }
 0x3cd   :  { %1783 = vperm.xlu1 %2693, %v1688_v14  }
 0x3d1   :  { %2695 = vset.pattern.permute.xlu1 %v3059_v29 }
 0x3d2   :  { %1803 = vperm.xlu1 %2695, %v1688_v14  }
 0x3d6   :  { %2696 = vset.pattern.permute.xlu1 %v3060_v30 }
 0x3d7   :  { %1813 = vperm.xlu1 %2696, %v1688_v14  }
 0x3db   :  { %2698 = vset.pattern.permute.xlu1 %v3061_v44  ;;  %v1799_v44 = vrot.slane %v1690_v7, %v3384_v40  ;;  %v1839_v40 = vrot.slane %v1690_v7, %v3401_v33 }
 0x3dc   :  { %1833 = vperm.xlu1 %2698, %v1688_v14  }
 0x3e0   :  { %2699 = vset.pattern.permute.xlu1 %v3062_v21  ;;  %v1809_v21 = vrot.slane %v1690_v7, %v3373_v49  ;;  %v1849_v49 = vrot.slane %v1690_v7, %v3406_v45 }
 0x3e1   :  { %1843 = vperm.xlu1 %2699, %v1688_v14  }
 0x42e   :  { %v1695_v41 = vpop.permute.xlu1 %1694 }
 0x42f   :  { %v1704_v50 = vpop.permute.xlu0 %1703  ;;  %v1701_v52 = vmul.f32 %v1700_v42, %v1695_v41 }
 0x430   :  { %v1710_v36 = vmul.f32 %v1709_v43, %v1704_v50 }
 0x432   :  { %v1711_v56 = vadd.f32 %v1710_v36, %v1701_v52 }
 0x433   :  { %v1714_v51 = vpop.permute.xlu1 %1713 }
 0x434   :  { %v1720_v54 = vmul.f32 %v1719_v25, %v1714_v51  ;;  %v1734_v60 = vpop.permute.xlu0 %1733 }
 0x435   :  { %v1740_v2 = vmul.f32 %v1739_v22, %v1734_v60 }
 0x436   :  { %v1721_v59 = vadd.f32 %v1720_v54, %v1711_v56 }
 0x438   :  { %v1724_v57 = vpop.permute.xlu1 %1723 }
 0x439   :  { %v1730_v58 = vmul.f32 %v1729_v55, %v1724_v57  ;;  %v1764_v8 = vpop.permute.xlu0 %1763 }
 0x43a   :  { %v1770_v14 = vmul.f32 %v1769_v53, %v1764_v8 }
 0x43b   :  { %v1731_v1 = vadd.f32 %v1730_v58, %v1721_v59 }
 0x43d   :  { %v1744_v62 = vpop.permute.xlu1 %1743  ;;  %v1741_v5 = vadd.f32 %v1740_v2, %v1731_v1 }
 0x43e   :  { %v1750_v3 = vmul.f32 %v1749_v47, %v1744_v62  ;;  %v1794_v39 = vpop.permute.xlu0 %1793 }
 0x43f   :  { %v1800_v23 = vmul.f32 %v1799_v44, %v1794_v39 }
 0x440   :  { %v1751_v0 = vadd.f32 %v1750_v3, %v1741_v5 }
 0x442   :  { %v1754_v6 = vpop.permute.xlu1 %1753 }
 0x443   :  { %v1760_v17 = vmul.f32 %v1759_v4, %v1754_v6 }
 0x445   :  { %v1761_v13 = vadd.f32 %v1760_v17, %v1751_v0 }
 0x447   :  { %v1774_v9 = vpop.permute.xlu1 %1773  ;;  %v1771_v18 = vadd.f32 %v1770_v14, %v1761_v13 }
 0x448   :  { %v1780_v15 = vmul.f32 %v1779_v12, %v1774_v9 }
 0x44a   :  { %v1781_v29 = vadd.f32 %v1780_v15, %v1771_v18 }
 0x44c   :  { %v1784_v16 = vpop.permute.xlu1 %1783 }
 0x44d   :  { %v1790_v30 = vmul.f32 %v1789_v63, %v1784_v16 }
 0x44f   :  { %v1791_v20 = vadd.f32 %v1790_v30, %v1781_v29 }
 0x451   :  { %v1804_v19 = vpop.permute.xlu1 %1803  ;;  %v1801_v27 = vadd.f32 %v1800_v23, %v1791_v20 }
 0x452   :  { %v1810_v24 = vmul.f32 %v1809_v21, %v1804_v19 }
 0x456   :  { %v1814_v28 = vpop.permute.xlu1 %1813 }
 0x478   :  { %v1989_v31 = vpop.f32.mrb[2].mxu1 }
 0x479   :  { %v1990_v34 = vpop.f32.mrb[3].mxu1 }
 0x47a   :  { %v1991_v35 = vadd.f32 %v1990_v34, %v1989_v31  ;;  %v1811_v31 = vadd.f32 %v1810_v24, %v1801_v27  ;;  %v1824_v34 = vpop.permute.xlu0 %1823 }
 0x47c   :  { %v1482_v37 = vadd.f32 %v1991_v35, %v1953_v32  ;;  %v1820_v32 = vmul.f32 %v1819_v46, %v1814_v28  ;;  %v1834_v35 = vpop.permute.xlu1 %1833 }
 0x47d   :  { %v1840_v38 = vmul.f32 %v1839_v40, %v1834_v35 }
 0x47e   :  { %v1486_v61 = vmul.f32 0.2, %v1482_v37  ;;  %vm1485_vm9 = vcmp.ge.f32.partialorder %v1482_v37, 0.0 }
 0x480   :  { %v1487_v11 = vsel %vm1485_vm9, %v1482_v37, %v1486_v61  ;;  %v1821_v37 = vadd.f32 %v1820_v32, %v1811_v31  ;;  %v1830_v61 = vmul.f32 %v1829_v48, %v1824_v34  ;;  %v1844_v41 = vpop.permute.xlu1 %1843 }
 0x481   :  { %2042 = vmatmul.mubr.f32.vlgmr.msra.gmra.mrb[4].mxu1 %v1487_v11  ;;  %v1850_v43 = vmul.f32 %v1849_v49, %v1844_v41 }
 0x482   :  { %v1831_v11 = vadd.f32 %v1830_v61, %v1821_v37 }
 0x484   :  { %v1841_v42 = vadd.f32 %v1840_v38, %v1831_v11 }
 0x486   :  { %v1851_v50 = vadd.f32 %v1850_v43, %v1841_v42 }
 0x488   :  { %v1858_v51 = vadd.f32 %v1956_v10, %v1851_v50 }
 0x554   :  { %v1925_v52 = vpop.f32.mrb[4].mxu1 }
 0x555   :  { %v1926_v26 = vadd.f32 %v1925_v52, %v1858_v51  ;;  %v2043_v25 = vpop.f32.mrb[5].mxu1 }
 0x557   :  { %1930 = vst.msk [vmem:[#allocation23] sm:$0x3] %vm1929_vm10, %v1926_v26 }
 0x558   :  { %2999 = shalt.err (!%p2996_p10)
}
 0x559   :  { %s3000_s6 = scalar_lea.hbm %s3532_s15, 32 }
 0x55a   :  { %p3001_p11 = scmp.ne.s32.totalorder %s3532_s15, %s3000_s6  ;;  %p3004_p12 = scmp.lt.u32.totalorder %s3000_s6, %s3532_s15 }
 0x55c   :  { %p3006_p13 = pnand %p3004_p12, %p3001_p11 }
 0x55e   :  { %3009 = shalt.err (!%p3006_p13)
}
 0x55f   :  { %1940 = dma.vmem_to_hbm [thread:$0]  %s1938_s30, 32, %s3532_s15, [#allocation4]  }
 0x560   :  { %3024 = dma.done.wait [#allocation4], 32  }
 0x561   :  { %3025 = vsyncadd [#allocation4], 4294967264 }
 0x562   :  { %1944 = vsyncpa [#allocation3], 1 }
 0x563   :  { %1945 = vsyncpa [#allocation6], 1 }
 0x564   :  { %1946 = vsyncpa [#allocation9], 1 }
 0x565   :  { %1947 = vsyncpa [#allocation12], 1 }
 0x566   :  { %1948 = vsyncpa [#allocation15], 1 }
 0x567   :  { %1949 = vsyncpa [#allocation18], 1 }
 0x568   :  { %1950 = vsyncpa [#allocation21], 1 }
 0x569   :  { %1951 = vsyncpa [#allocation4], 1 }

</bundles_post_ra>
